<compile_context>
chip_gen: v5e
topology: v5e:2x2
jax: 0.10.0
libtpu: 0.0.40
codegen_flags: <defaults>
</compile_context>

<pallas_src>
import math
from functools import partial

import numpy as np
import jax
import jax.numpy as jnp
from jax.experimental import pallas as pl
from jax.experimental.pallas import tpu as pltpu


# --------------------------------------------------------------------------------------
# Fused Pallas kernel: entire DWT -> IDWT forward in one launch.
# --------------------------------------------------------------------------------------

def _make_fused_kernel(max_rank, inv_sqrt_c, compute_dtype):
    def _normalize(y, subtract_mean, extra_scale=1.0):
        # One-pass statistics (review): single sweep for sum / sum-of-squares; EUP rsqrt.
        cnt = y.size
        s = jnp.sum(y)
        ss = jnp.sum(y * y)
        mean = s * (1.0 / cnt)
        var = (ss - cnt * mean * mean) * (1.0 / (cnt - 1))        # unbiased, like torch.std
        inv = jax.lax.rsqrt(var) * extra_scale
        return (y - mean) * inv if subtract_mean else y * inv

    def kernel(*refs):
        x_ref, o_ref = refs[0], refs[-1]
        w = refs[1:-1]
        dwt = [w[6 * l:6 * l + 6] for l in range(max_rank)]
        base = 6 * max_rank
        idwt = [w[base + 3 * l:base + 3 * l + 3] for l in range(max_rank)]

        cA = x_ref[...].astype(jnp.float32)                        # (B, CK*N) flat activations
        details = []

        # ---- DWT: per level & branch, 2 chained MXU matmuls through the low-rank (2*CK*l)
        #      bottleneck, bf16 operands / f32 accumulation, then one-pass normalize ----
        for l in range(max_rank):
            a1_lp, a2_lp, b_lp, a1_hp, a2_hp, b_hp = dwt[l]
            xin = cA.astype(compute_dtype)
            th = jnp.dot(xin, a1_hp[...], preferred_element_type=jnp.float32)
            cD = jnp.dot(th.astype(compute_dtype), a2_hp[...],
                         preferred_element_type=jnp.float32) + b_hp[...]
            details.append(_normalize(cD, subtract_mean=True))
            tl = jnp.dot(xin, a1_lp[...], preferred_element_type=jnp.float32)
            cA = jnp.dot(tl.astype(compute_dtype), a2_lp[...],
                         preferred_element_type=jnp.float32) + b_lp[...]
            cA = _normalize(cA, subtract_mean=True)

        # ---- IDWT: upsample+conv (and any length truncation) folded into the matrices;
        #      y = lp(cA) + hp(cD) + bias; y /= std ----
        for lv in range(max_rank):
            r_lp, r_hp, b_sum = idwt[lv]
            cD = details[max_rank - 1 - lv]
            y = (jnp.dot(cA.astype(compute_dtype), r_lp[...], preferred_element_type=jnp.float32)
                 + jnp.dot(cD.astype(compute_dtype), r_hp[...], preferred_element_type=jnp.float32)
                 + b_sum[...])
            scale = inv_sqrt_c if lv == max_rank - 1 else 1.0      # fold final /sqrt(c)
            cA = _normalize(y, subtract_mean=False, extra_scale=scale)

        o_ref[...] = cA                                            # lane-dense (B, CK*N_out)
    return kernel


# --------------------------------------------------------------------------------------
# Weight folding (numpy float64 preprocessing, OUTSIDE the jitted forward; cached DFT mats).
# --------------------------------------------------------------------------------------

_DFT_CACHE = {}


def _dft_mats_np(n, l):
    """Real float64 matrices implementing rfft (first l modes) / irfft(n=n) of an l-mode spectrum."""
    key = (n, l)
    if key not in _DFT_CACHE:
        F = np.fft.rfft(np.eye(n))[:, :l]                          # (n, l) complex
        eye = np.zeros((l, n // 2 + 1), dtype=np.complex128)
        eye[np.arange(l), np.arange(l)] = 1.0
        b_re = np.fft.irfft(eye, n=n, axis=1)                      # (l, n)
        b_im = np.fft.irfft(1j * eye, n=n, axis=1)                 # (l, n)
        _DFT_CACHE[key] = (np.ascontiguousarray(F.real), np.ascontiguousarray(F.imag), b_re, b_im)
    return _DFT_CACHE[key]


def _spectral_factors_np(wre, wim, nh, modes):
    """Low-rank factorization of sparseKernelFT1d acting on per-batch flat memory.

    Returns P (nh*ck, 2*ck*l) and Q (2*ck*l, nh*ck) with M_spec = P @ Q. Rows of P / cols of Q
    are flat-memory indices g = m*ck + i (the torch .view/.permute/.reshape semantics)."""
    ck = wre.shape[0]
    l = min(modes, nh // 2 + 1)
    f_re, f_im, b_re, b_im = _dft_mats_np(nh, l)
    wre_l = np.asarray(wre, np.float64)[:, :, :l]
    wim_l = np.asarray(wim, np.float64)[:, :, :l]
    # rfft + per-mode complex mix: flat input (m, i) -> (o, u) spectral coefficients (re / im)
    p_re = np.einsum('mu,iou->miou', f_re, wre_l) - np.einsum('mu,iou->miou', f_im, wim_l)
    p_im = np.einsum('mu,iou->miou', f_re, wim_l) + np.einsum('mu,iou->miou', f_im, wre_l)
    P = np.concatenate([p_re.reshape(nh * ck, ck * l), p_im.reshape(nh * ck, ck * l)], axis=1)
    # irfft scatter: (o, u) -> flat output (m', o)  (weight-free, block diagonal over channels)
    q_re = np.zeros((ck, l, nh, ck), np.float64)
    q_im = np.zeros((ck, l, nh, ck), np.float64)
    for o in range(ck):
        q_re[o, :, :, o] = b_re
        q_im[o, :, :, o] = b_im
    Q = np.concatenate([q_re.reshape(ck * l, nh * ck), q_im.reshape(ck * l, nh * ck)], axis=0)
    return P, Q, l


def _stride2_conv_struct(n_in, n_out, fs):
    pad = (fs - 1) // 2
    s = np.zeros((fs, n_in, n_out), np.float64)
    for t in range(fs):
        for b in range(n_out):
            a = 2 * b + t - pad
            if 0 <= a < n_in:
                s[t, a, b] = 1.0
    return s


def _upsample_conv_struct(ld, n_cur, fs):
    """nearest-x2 upsample + stride-1 conv, with the cA[:, :, :ld] truncation folded in:
    rows indexed by the *current* per-channel length n_cur (positions >= ld contribute 0)."""
    n_out = 2 * ld
    pad = (fs - 1) // 2
    s = np.zeros((fs, n_cur, n_out), np.float64)
    for t in range(fs):
        for n in range(n_out):
            m = n + t - pad
            if 0 <= m < n_out:
                s[t, m // 2, n] = 1.0
    return s


def _fold_dwt_level_np(conv_w, conv_b, wre, wim, n_in, modes, seq_major_input, rank_pad=128):
    """Fold (stride-2 Conv1d + decimation) and the rfft+complex-mix into A1=(L_in, 2*ck*l),
    keep the irfft as A2=(2*ck*l, L_out); bias pushed through the spectral map."""
    ck, fs = conv_w.shape[0], conv_w.shape[-1]
    pad = (fs - 1) // 2
    n_out = (n_in + 2 * pad - fs) // 2 + 1
    s = _stride2_conv_struct(n_in, n_out, fs)
    w64 = np.asarray(conv_w, np.float64)
    if seq_major_input:   # level 0: rows indexed by the original (B, N, C, D) flat memory
        c_mat = np.einsum('oit,tab->aiob', w64, s).reshape(n_in * ck, ck * n_out)
    else:                 # later levels: rows indexed by channels-first flat memory
        c_mat = np.einsum('oit,tab->iaob', w64, s).reshape(ck * n_in, ck * n_out)
    P, Q, _ = _spectral_factors_np(wre, wim, n_out, modes)
    a1 = c_mat @ P                                                 # (L_in, 2*ck*l)
    a2 = Q                                                         # (2*ck*l, L_out)
    bias_row = np.repeat(np.asarray(conv_b, np.float64), n_out)[None, :]
    b_vec = (bias_row @ P) @ Q                                     # (1, L_out)
    # pad the low-rank inner dim to a lane multiple for clean MXU tiles (review)
    r = a1.shape[1]
    r_pad = -(-r // rank_pad) * rank_pad
    if r_pad != r:
        a1 = np.concatenate([a1, np.zeros((a1.shape[0], r_pad - r))], axis=1)
        a2 = np.concatenate([a2, np.zeros((r_pad - r, a2.shape[1]))], axis=0)
    return a1, a2, b_vec, n_out


def _fold_idwt_level_np(rc_lp_w, rc_lp_b, rc_hp_w, rc_hp_b, ld, n_cur):
    """Fold nearest-x2 upsample + stride-1 Conv1d (both IDWT branches, and the cA length
    truncation) into matrices + bias."""
    ck, fs = rc_lp_w.shape[0], rc_lp_w.shape[-1]
    n_out = 2 * ld
    s_a = _upsample_conv_struct(ld, n_cur, fs)                     # cA branch (may be longer)
    s_d = _upsample_conv_struct(ld, ld, fs)                        # cD branch is exactly ld long
    r_lp = np.einsum('oit,tan->iaon', np.asarray(rc_lp_w, np.float64), s_a).reshape(ck * n_cur, ck * n_out)
    r_hp = np.einsum('oit,tan->iaon', np.asarray(rc_hp_w, np.float64), s_d).reshape(ck * ld, ck * n_out)
    b_sum = (np.repeat(np.asarray(rc_lp_b, np.float64), n_out)
             + np.repeat(np.asarray(rc_hp_b, np.float64), n_out))[None, :]
    return r_lp, r_hp, b_sum


def fold_wavelet_params(params, N, C, D, weight_dtype=jnp.bfloat16):
    """Weights-only preprocessing (float64 numpy), done ONCE per parameter set and cached by the
    caller; returns the folded/factored matrices consumed by the fused kernel."""
    max_rank = int(math.floor(math.log2(N)))
    assert max_rank > 0
    modes = int(params["hp_wre"].shape[-1])

    dwt, dwt_lens = [], []
    n_l = N
    for lvl in range(max_rank):
        seq_major = (lvl == 0)
        a1_hp, a2_hp, b_hp, n_out = _fold_dwt_level_np(params["ec_hp_w"], params["ec_hp_b"],
                                                       params["hp_wre"], params["hp_wim"],
                                                       n_l, modes, seq_major)
        a1_lp, a2_lp, b_lp, _ = _fold_dwt_level_np(params["ec_lp_w"], params["ec_lp_b"],
                                                   params["lp_wre"], params["lp_wim"],
                                                   n_l, modes, seq_major)
        dwt.append((jnp.asarray(a1_lp, weight_dtype), jnp.asarray(a2_lp, weight_dtype),
                    jnp.asarray(b_lp, jnp.float32),
                    jnp.asarray(a1_hp, weight_dtype), jnp.asarray(a2_hp, weight_dtype),
                    jnp.asarray(b_hp, jnp.float32)))
        dwt_lens.append(n_out)
        n_l = n_out

    idwt = []
    n_cur = dwt_lens[-1]
    for lv in range(max_rank):
        ld = dwt_lens[max_rank - 1 - lv]
        r_lp, r_hp, b_sum = _fold_idwt_level_np(params["rc_lp_w"], params["rc_lp_b"],
                                                params["rc_hp_w"], params["rc_hp_b"], ld, n_cur)
        idwt.append((jnp.asarray(r_lp, weight_dtype), jnp.asarray(r_hp, weight_dtype),
                     jnp.asarray(b_sum, jnp.float32)))
        n_cur = 2 * ld
    return {"dwt": tuple(dwt), "idwt": tuple(idwt)}


# --------------------------------------------------------------------------------------
# WaveletBlock forward: one fused pallas_call over pre-folded weights.
# --------------------------------------------------------------------------------------

@partial(jax.jit, static_argnames=("c",))
def wavelet_block_forward(x, folded, c):
    B, N, C, D = x.shape
    CK = C * D
    dwt, idwt = folded["dwt"], folded["idwt"]
    max_rank = len(dwt)
    compute_dtype = dwt[0][0].dtype
    out_cols = idwt[-1][0].shape[1]                                # CK * N_out

    x_flat = x.astype(jnp.float32).reshape(B, N * CK)              # bitcast of (B,N,C,D) memory

    operands = [x_flat]
    for level in dwt:
        operands.extend(level)
    for level in idwt:
        operands.extend(level)

    # Explicit VMEM budget (review): weights are single-buffered whole-array residents, plus
    # the f32 activation/details intermediates; cap at v7x's 64 MiB physical VMEM.
    data_bytes = sum(int(np.prod(a.shape)) * a.dtype.itemsize for a in operands)
    data_bytes += 8 * B * out_cols * 4
    vmem_limit = int(min(64 << 20, max(32 << 20, 2 * data_bytes + (8 << 20))))

    # Weights/biases: whole-array VMEM residents -> copied in once, no pipeline double-buffering.
    resident = pl.BlockSpec(memory_space=pltpu.MemorySpace.VMEM)
    in_specs = [pl.BlockSpec((B, N * CK), lambda i: (0, 0))] + [resident] * (len(operands) - 1)

    out_flat = pl.pallas_call(
        _make_fused_kernel(max_rank, 1.0 / math.sqrt(c), compute_dtype),
        out_shape=jax.ShapeDtypeStruct((B, out_cols), jnp.float32),
        grid=(1,),
        in_specs=in_specs,
        out_specs=pl.BlockSpec((B, out_cols), lambda i: (0, 0)),
        compiler_params=pltpu.CompilerParams(
            dimension_semantics=("arbitrary",),
            vmem_limit_bytes=vmem_limit),
    )(*operands)

    # torch: cA.reshape(B, -1, C, D) -- pure memory reinterpretation (zero-copy)
    return out_flat.reshape(B, -1, C, D)


# --------------------------------------------------------------------------------------
# Pure-JAX op-by-op reference (mirrors the PyTorch module) for the in-script sanity check.
# --------------------------------------------------------------------------------------

def _ref_conv1d(x, w, b, stride):
    fs = w.shape[-1]
    pad = (fs - 1) // 2
    n_out = (x.shape[-1] + 2 * pad - fs) // stride + 1
    xp = jnp.pad(x, ((0, 0), (0, 0), (pad, pad)))
    acc = jnp.zeros((x.shape[0], w.shape[0], n_out), jnp.float32)
    for t in range(fs):
        sl = xp[:, :, t: t + stride * (n_out - 1) + 1: stride]
        acc = acc + jnp.einsum('oi,bin->bon', w[:, :, t], sl)
    return acc + b[None, :, None]


def _ref_sparse_ft(x, wre, wim):
    B, N, c_, k_ = x.shape
    ck = c_ * k_
    xv = jnp.transpose(x.reshape(B, N, ck), (0, 2, 1))
    l = min(wre.shape[-1], N // 2 + 1)
    f_re, f_im, b_re, b_im = [np.asarray(m, np.float32) for m in _dft_mats_np(N, l)]
    x2 = xv.reshape(B * ck, N)
    xre = (x2 @ f_re).reshape(B, ck, l)
    xim = (x2 @ f_im).reshape(B, ck, l)
    wre_l, wim_l = wre[:, :, :l], wim[:, :, :l]
    yre = jnp.einsum('bix,iox->box', xre, wre_l) - jnp.einsum('bix,iox->box', xim, wim_l)
    yim = jnp.einsum('bix,iox->box', xre, wim_l) + jnp.einsum('bix,iox->box', xim, wre_l)
    out = (yre.reshape(B * ck, l) @ b_re + yim.reshape(B * ck, l) @ b_im).reshape(B, ck, N)
    out = jnp.transpose(out, (0, 2, 1)).reshape(B, N, c_, k_)
    mean = jnp.mean(out)
    std = jnp.sqrt(jnp.sum((out - mean) ** 2) / (out.size - 1))
    return (out - mean) / std


def _reference_forward(x, params, c):
    B, N, C, D = x.shape
    CK = C * D
    x = x.astype(jnp.float32)
    cA = jnp.transpose(x, (0, 2, 3, 1)).reshape(B, CK, N)
    max_rank = int(math.floor(math.log2(N)))
    details = []
    for _ in range(max_rank):
        cur = cA.reshape(B, CK, -1)
        y_hp = _ref_conv1d(cur, params["ec_hp_w"], params["ec_hp_b"], 2)
        cD = _ref_sparse_ft(y_hp.reshape(B, -1, C, D), params["hp_wre"], params["hp_wim"])
        y_lp = _ref_conv1d(cur, params["ec_lp_w"], params["ec_lp_b"], 2)
        cA = _ref_sparse_ft(y_lp.reshape(B, -1, C, D), params["lp_wre"], params["lp_wim"])
        details.append(cD)
    cA = cA.reshape(B, CK, -1)
    for lv in range(max_rank):
        cD = details[-lv - 1].reshape(B, CK, -1)
        ld = cD.shape[-1]
        cA = cA[:, :, :ld]
        y = (_ref_conv1d(jnp.repeat(cA, 2, axis=-1), params["rc_lp_w"], params["rc_lp_b"], 1)
             + _ref_conv1d(jnp.repeat(cD, 2, axis=-1), params["rc_hp_w"], params["rc_hp_b"], 1))
        std = jnp.sqrt(jnp.sum((y - jnp.mean(y)) ** 2) / (y.size - 1))
        cA = y / std
    return cA.reshape(B, -1, C, D) / math.sqrt(c)


# --------------------------------------------------------------------------------------
# Deterministic parameter initialization (shapes as in the PyTorch __init__).
# --------------------------------------------------------------------------------------

def init_params(key, c, ich, M, fs):
    CK = c * ich
    ks = jax.random.split(key, 12)
    bound = 1.0 / math.sqrt(CK * fs)

    def conv_w(k):
        return jax.random.uniform(k, (CK, CK, fs), jnp.float32, -bound, bound)

    def conv_b(k):
        return jax.random.uniform(k, (CK,), jnp.float32, -bound, bound)

    scale = 1.0 / (CK * CK)

    def spec_w(k):
        return scale * jax.random.uniform(k, (CK, CK, M), jnp.float32)

    return dict(
        ec_hp_w=conv_w(ks[0]), ec_hp_b=conv_b(ks[1]),
        ec_lp_w=conv_w(ks[2]), ec_lp_b=conv_b(ks[3]),
        rc_lp_w=conv_w(ks[4]), rc_lp_b=conv_b(ks[5]),
        rc_hp_w=conv_w(ks[6]), rc_hp_b=conv_b(ks[7]),
        hp_wre=spec_w(ks[8]), hp_wim=spec_w(ks[9]),
        lp_wre=spec_w(ks[10]), lp_wim=spec_w(ks[11]),
    )


if __name__ == "__main__":
    # WaveletBlock(filter_initialization='random', filter_size=3, c=4, M=4, ich=8, d_model=8)
    B, N, c, ich = 2, 16, 4, 8
    M_modes, fs = 4, 3

    key = jax.random.PRNGKey(0)
    kx, kp = jax.random.split(key)
    x = jax.random.normal(kx, (B, N, c, ich), dtype=jnp.float32)   # (batch, seq, c, ich)
    params = init_params(kp, c, ich, M_modes, fs)
    params_np = {k: np.asarray(v) for k, v in params.items()}

    ref = _reference_forward(x, params, c)

    # Strict structural check: f32-weight path of the fused kernel vs the op-by-op reference.
    folded_f32 = fold_wavelet_params(params_np, N, c, ich, weight_dtype=jnp.float32)
    out_f32 = jax.block_until_ready(wavelet_block_forward(x, folded_f32, c))
    assert out_f32.shape == (B, N, c, ich), out_f32.shape
    assert bool(jnp.all(jnp.isfinite(out_f32)))
    err_f32 = float(jnp.max(jnp.abs(out_f32 - ref)))
    assert err_f32 < 1e-2, f"f32 mismatch vs reference: {err_f32}"

    # Fast path: bf16 weights / bf16 matmul operands with f32 accumulation.
    folded_bf16 = fold_wavelet_params(params_np, N, c, ich, weight_dtype=jnp.bfloat16)
    out = jax.block_until_ready(wavelet_block_forward(x, folded_bf16, c))
    assert out.shape == (B, N, c, ich), out.shape
    assert bool(jnp.all(jnp.isfinite(out)))
    max_err = float(jnp.max(jnp.abs(out - ref)))
    rms_err = float(jnp.sqrt(jnp.mean((out - ref) ** 2)))
    assert max_err < 1.5e-1 and rms_err < 3e-2, f"bf16 mismatch: max={max_err} rms={rms_err}"

    print("KERNEL_OK")
</pallas_src>

<mosaic_0001>
module attributes {stable_mosaic.version = 11 : i64} {
  func.func @kernel(%arg0: i32, %arg1: memref<2x512xf32, #tpu.memory_space<vmem>>, %arg2: memref<512x256xf32, #tpu.memory_space<vmem>>, %arg3: memref<256x256xf32, #tpu.memory_space<vmem>>, %arg4: memref<1x256xf32, #tpu.memory_space<vmem>>, %arg5: memref<512x256xf32, #tpu.memory_space<vmem>>, %arg6: memref<256x256xf32, #tpu.memory_space<vmem>>, %arg7: memref<1x256xf32, #tpu.memory_space<vmem>>, %arg8: memref<256x256xf32, #tpu.memory_space<vmem>>, %arg9: memref<256x128xf32, #tpu.memory_space<vmem>>, %arg10: memref<1x128xf32, #tpu.memory_space<vmem>>, %arg11: memref<256x256xf32, #tpu.memory_space<vmem>>, %arg12: memref<256x128xf32, #tpu.memory_space<vmem>>, %arg13: memref<1x128xf32, #tpu.memory_space<vmem>>, %arg14: memref<128x128xf32, #tpu.memory_space<vmem>>, %arg15: memref<128x64xf32, #tpu.memory_space<vmem>>, %arg16: memref<1x64xf32, #tpu.memory_space<vmem>>, %arg17: memref<128x128xf32, #tpu.memory_space<vmem>>, %arg18: memref<128x64xf32, #tpu.memory_space<vmem>>, %arg19: memref<1x64xf32, #tpu.memory_space<vmem>>, %arg20: memref<64x128xf32, #tpu.memory_space<vmem>>, %arg21: memref<128x32xf32, #tpu.memory_space<vmem>>, %arg22: memref<1x32xf32, #tpu.memory_space<vmem>>, %arg23: memref<64x128xf32, #tpu.memory_space<vmem>>, %arg24: memref<128x32xf32, #tpu.memory_space<vmem>>, %arg25: memref<1x32xf32, #tpu.memory_space<vmem>>, %arg26: memref<32x64xf32, #tpu.memory_space<vmem>>, %arg27: memref<32x64xf32, #tpu.memory_space<vmem>>, %arg28: memref<1x64xf32, #tpu.memory_space<vmem>>, %arg29: memref<64x128xf32, #tpu.memory_space<vmem>>, %arg30: memref<64x128xf32, #tpu.memory_space<vmem>>, %arg31: memref<1x128xf32, #tpu.memory_space<vmem>>, %arg32: memref<128x256xf32, #tpu.memory_space<vmem>>, %arg33: memref<128x256xf32, #tpu.memory_space<vmem>>, %arg34: memref<1x256xf32, #tpu.memory_space<vmem>>, %arg35: memref<256x512xf32, #tpu.memory_space<vmem>>, %arg36: memref<256x512xf32, #tpu.memory_space<vmem>>, %arg37: memref<1x512xf32, #tpu.memory_space<vmem>>, %arg38: memref<2x512xf32, #tpu.memory_space<vmem>>) attributes {dimension_semantics = [#tpu.dimension_semantics<arbitrary>], iteration_bounds = array<i64: 1>, scalar_prefetch = 0 : i64, scratch_operands = 0 : i64, tpu.core_type = #tpu.core_type<tc>, window_params = [{pipeline_mode = #tpu.pipeline_mode<synchronous>, transform_indices = @transform_0, window_bounds = array<i64: 2, 512>}, {pipeline_mode = #tpu.pipeline_mode<synchronous>, transform_indices = @transform_1, window_bounds = array<i64: 512, 256>}, {pipeline_mode = #tpu.pipeline_mode<synchronous>, transform_indices = @transform_2, window_bounds = array<i64: 256, 256>}, {pipeline_mode = #tpu.pipeline_mode<synchronous>, transform_indices = @transform_3, window_bounds = array<i64: 1, 256>}, {pipeline_mode = #tpu.pipeline_mode<synchronous>, transform_indices = @transform_4, window_bounds = array<i64: 512, 256>}, {pipeline_mode = #tpu.pipeline_mode<synchronous>, transform_indices = @transform_5, window_bounds = array<i64: 256, 256>}, {pipeline_mode = #tpu.pipeline_mode<synchronous>, transform_indices = @transform_6, window_bounds = array<i64: 1, 256>}, {pipeline_mode = #tpu.pipeline_mode<synchronous>, transform_indices = @transform_7, window_bounds = array<i64: 256, 256>}, {pipeline_mode = #tpu.pipeline_mode<synchronous>, transform_indices = @transform_8, window_bounds = array<i64: 256, 128>}, {pipeline_mode = #tpu.pipeline_mode<synchronous>, transform_indices = @transform_9, window_bounds = array<i64: 1, 128>}, {pipeline_mode = #tpu.pipeline_mode<synchronous>, transform_indices = @transform_10, window_bounds = array<i64: 256, 256>}, {pipeline_mode = #tpu.pipeline_mode<synchronous>, transform_indices = @transform_11, window_bounds = array<i64: 256, 128>}, {pipeline_mode = #tpu.pipeline_mode<synchronous>, transform_indices = @transform_12, window_bounds = array<i64: 1, 128>}, {pipeline_mode = #tpu.pipeline_mode<synchronous>, transform_indices = @transform_13, window_bounds = array<i64: 128, 128>}, {pipeline_mode = #tpu.pipeline_mode<synchronous>, transform_indices = @transform_14, window_bounds = array<i64: 128, 64>}, {pipeline_mode = #tpu.pipeline_mode<synchronous>, transform_indices = @transform_15, window_bounds = array<i64: 1, 64>}, {pipeline_mode = #tpu.pipeline_mode<synchronous>, transform_indices = @transform_16, window_bounds = array<i64: 128, 128>}, {pipeline_mode = #tpu.pipeline_mode<synchronous>, transform_indices = @transform_17, window_bounds = array<i64: 128, 64>}, {pipeline_mode = #tpu.pipeline_mode<synchronous>, transform_indices = @transform_18, window_bounds = array<i64: 1, 64>}, {pipeline_mode = #tpu.pipeline_mode<synchronous>, transform_indices = @transform_19, window_bounds = array<i64: 64, 128>}, {pipeline_mode = #tpu.pipeline_mode<synchronous>, transform_indices = @transform_20, window_bounds = array<i64: 128, 32>}, {pipeline_mode = #tpu.pipeline_mode<synchronous>, transform_indices = @transform_21, window_bounds = array<i64: 1, 32>}, {pipeline_mode = #tpu.pipeline_mode<synchronous>, transform_indices = @transform_22, window_bounds = array<i64: 64, 128>}, {pipeline_mode = #tpu.pipeline_mode<synchronous>, transform_indices = @transform_23, window_bounds = array<i64: 128, 32>}, {pipeline_mode = #tpu.pipeline_mode<synchronous>, transform_indices = @transform_24, window_bounds = array<i64: 1, 32>}, {pipeline_mode = #tpu.pipeline_mode<synchronous>, transform_indices = @transform_25, window_bounds = array<i64: 32, 64>}, {pipeline_mode = #tpu.pipeline_mode<synchronous>, transform_indices = @transform_26, window_bounds = array<i64: 32, 64>}, {pipeline_mode = #tpu.pipeline_mode<synchronous>, transform_indices = @transform_27, window_bounds = array<i64: 1, 64>}, {pipeline_mode = #tpu.pipeline_mode<synchronous>, transform_indices = @transform_28, window_bounds = array<i64: 64, 128>}, {pipeline_mode = #tpu.pipeline_mode<synchronous>, transform_indices = @transform_29, window_bounds = array<i64: 64, 128>}, {pipeline_mode = #tpu.pipeline_mode<synchronous>, transform_indices = @transform_30, window_bounds = array<i64: 1, 128>}, {pipeline_mode = #tpu.pipeline_mode<synchronous>, transform_indices = @transform_31, window_bounds = array<i64: 128, 256>}, {pipeline_mode = #tpu.pipeline_mode<synchronous>, transform_indices = @transform_32, window_bounds = array<i64: 128, 256>}, {pipeline_mode = #tpu.pipeline_mode<synchronous>, transform_indices = @transform_33, window_bounds = array<i64: 1, 256>}, {pipeline_mode = #tpu.pipeline_mode<synchronous>, transform_indices = @transform_34, window_bounds = array<i64: 256, 512>}, {pipeline_mode = #tpu.pipeline_mode<synchronous>, transform_indices = @transform_35, window_bounds = array<i64: 256, 512>}, {pipeline_mode = #tpu.pipeline_mode<synchronous>, transform_indices = @transform_36, window_bounds = array<i64: 1, 512>}, {pipeline_mode = #tpu.pipeline_mode<synchronous>, transform_indices = @transform_37, window_bounds = array<i64: 2, 512>}]} {
    %c0 = arith.constant 0 : index
    %c0_0 = arith.constant 0 : index
    %0 = vector.load %arg1[%c0, %c0_0] : memref<2x512xf32, #tpu.memory_space<vmem>>, vector<2x512xf32>
    %c0_1 = arith.constant 0 : index
    %c0_2 = arith.constant 0 : index
    %1 = vector.load %arg5[%c0_1, %c0_2] : memref<512x256xf32, #tpu.memory_space<vmem>>, vector<512x256xf32>
    %cst = arith.constant dense<0.000000e+00> : vector<2x256xf32>
    %2 = tpu.matmul %0, %1, %cst {dimension_numbers = #tpu.dot_dimension_numbers<[1], [0], [0], [1], [0, 0, 1, 1], [], []>} : vector<2x512xf32>, vector<512x256xf32>, vector<2x256xf32> -> vector<2x256xf32>
    %c0_3 = arith.constant 0 : index
    %c0_4 = arith.constant 0 : index
    %3 = vector.load %arg6[%c0_3, %c0_4] : memref<256x256xf32, #tpu.memory_space<vmem>>, vector<256x256xf32>
    %cst_5 = arith.constant dense<0.000000e+00> : vector<2x256xf32>
    %4 = tpu.matmul %2, %3, %cst_5 {dimension_numbers = #tpu.dot_dimension_numbers<[1], [0], [0], [1], [0, 0, 1, 1], [], []>} : vector<2x256xf32>, vector<256x256xf32>, vector<2x256xf32> -> vector<2x256xf32>
    %c0_6 = arith.constant 0 : index
    %c0_7 = arith.constant 0 : index
    %5 = vector.load %arg7[%c0_6, %c0_7] : memref<1x256xf32, #tpu.memory_space<vmem>>, vector<1x256xf32>
    %6 = vector.broadcast %5 : vector<1x256xf32> to vector<2x256xf32>
    %7 = arith.addf %4, %6 : vector<2x256xf32>
    %8 = vector.shape_cast %7 : vector<2x256xf32> to vector<1x2x256xf32>
    %cst_8 = arith.constant dense<0.000000e+00> : vector<1xf32>
    %9 = vector.multi_reduction <add>, %8, %cst_8 [1, 2] : vector<1x2x256xf32> to vector<1xf32>
    %10 = vector.shape_cast %9 : vector<1xf32> to vector<1x1x1xf32>
    %11 = vector.extract %10[0, 0, 0] : f32 from vector<1x1x1xf32>
    %12 = arith.mulf %7, %7 : vector<2x256xf32>
    %13 = vector.shape_cast %12 : vector<2x256xf32> to vector<1x2x256xf32>
    %cst_9 = arith.constant dense<0.000000e+00> : vector<1xf32>
    %14 = vector.multi_reduction <add>, %13, %cst_9 [1, 2] : vector<1x2x256xf32> to vector<1xf32>
    %15 = vector.shape_cast %14 : vector<1xf32> to vector<1x1x1xf32>
    %16 = vector.extract %15[0, 0, 0] : f32 from vector<1x1x1xf32>
    %cst_10 = arith.constant 0.001953125 : f32
    %17 = arith.mulf %11, %cst_10 : f32
    %cst_11 = arith.constant 5.120000e+02 : f32
    %18 = arith.mulf %cst_11, %17 : f32
    %19 = arith.mulf %18, %17 : f32
    %20 = arith.subf %16, %19 : f32
    %cst_12 = arith.constant 0.00195694715 : f32
    %21 = arith.mulf %20, %cst_12 : f32
    %22 = math.rsqrt %21 : f32
    %cst_13 = arith.constant 1.000000e+00 : f32
    %23 = arith.mulf %22, %cst_13 : f32
    %24 = vector.broadcast %17 : f32 to vector<2x256xf32>
    %25 = arith.subf %7, %24 : vector<2x256xf32>
    %26 = vector.broadcast %23 : f32 to vector<2x256xf32>
    %27 = arith.mulf %25, %26 : vector<2x256xf32>
    %c0_14 = arith.constant 0 : index
    %c0_15 = arith.constant 0 : index
    %28 = vector.load %arg2[%c0_14, %c0_15] : memref<512x256xf32, #tpu.memory_space<vmem>>, vector<512x256xf32>
    %cst_16 = arith.constant dense<0.000000e+00> : vector<2x256xf32>
    %29 = tpu.matmul %0, %28, %cst_16 {dimension_numbers = #tpu.dot_dimension_numbers<[1], [0], [0], [1], [0, 0, 1, 1], [], []>} : vector<2x512xf32>, vector<512x256xf32>, vector<2x256xf32> -> vector<2x256xf32>
    %c0_17 = arith.constant 0 : index
    %c0_18 = arith.constant 0 : index
    %30 = vector.load %arg3[%c0_17, %c0_18] : memref<256x256xf32, #tpu.memory_space<vmem>>, vector<256x256xf32>
    %cst_19 = arith.constant dense<0.000000e+00> : vector<2x256xf32>
    %31 = tpu.matmul %29, %30, %cst_19 {dimension_numbers = #tpu.dot_dimension_numbers<[1], [0], [0], [1], [0, 0, 1, 1], [], []>} : vector<2x256xf32>, vector<256x256xf32>, vector<2x256xf32> -> vector<2x256xf32>
    %c0_20 = arith.constant 0 : index
    %c0_21 = arith.constant 0 : index
    %32 = vector.load %arg4[%c0_20, %c0_21] : memref<1x256xf32, #tpu.memory_space<vmem>>, vector<1x256xf32>
    %33 = vector.broadcast %32 : vector<1x256xf32> to vector<2x256xf32>
    %34 = arith.addf %31, %33 : vector<2x256xf32>
    %35 = vector.shape_cast %34 : vector<2x256xf32> to vector<1x2x256xf32>
    %cst_22 = arith.constant dense<0.000000e+00> : vector<1xf32>
    %36 = vector.multi_reduction <add>, %35, %cst_22 [1, 2] : vector<1x2x256xf32> to vector<1xf32>
    %37 = vector.shape_cast %36 : vector<1xf32> to vector<1x1x1xf32>
    %38 = vector.extract %37[0, 0, 0] : f32 from vector<1x1x1xf32>
    %39 = arith.mulf %34, %34 : vector<2x256xf32>
    %40 = vector.shape_cast %39 : vector<2x256xf32> to vector<1x2x256xf32>
    %cst_23 = arith.constant dense<0.000000e+00> : vector<1xf32>
    %41 = vector.multi_reduction <add>, %40, %cst_23 [1, 2] : vector<1x2x256xf32> to vector<1xf32>
    %42 = vector.shape_cast %41 : vector<1xf32> to vector<1x1x1xf32>
    %43 = vector.extract %42[0, 0, 0] : f32 from vector<1x1x1xf32>
    %cst_24 = arith.constant 0.001953125 : f32
    %44 = arith.mulf %38, %cst_24 : f32
    %cst_25 = arith.constant 5.120000e+02 : f32
    %45 = arith.mulf %cst_25, %44 : f32
    %46 = arith.mulf %45, %44 : f32
    %47 = arith.subf %43, %46 : f32
    %cst_26 = arith.constant 0.00195694715 : f32
    %48 = arith.mulf %47, %cst_26 : f32
    %49 = math.rsqrt %48 : f32
    %cst_27 = arith.constant 1.000000e+00 : f32
    %50 = arith.mulf %49, %cst_27 : f32
    %51 = vector.broadcast %44 : f32 to vector<2x256xf32>
    %52 = arith.subf %34, %51 : vector<2x256xf32>
    %53 = vector.broadcast %50 : f32 to vector<2x256xf32>
    %54 = arith.mulf %52, %53 : vector<2x256xf32>
    %c0_28 = arith.constant 0 : index
    %c0_29 = arith.constant 0 : index
    %55 = vector.load %arg11[%c0_28, %c0_29] : memref<256x256xf32, #tpu.memory_space<vmem>>, vector<256x256xf32>
    %cst_30 = arith.constant dense<0.000000e+00> : vector<2x256xf32>
    %56 = tpu.matmul %54, %55, %cst_30 {dimension_numbers = #tpu.dot_dimension_numbers<[1], [0], [0], [1], [0, 0, 1, 1], [], []>} : vector<2x256xf32>, vector<256x256xf32>, vector<2x256xf32> -> vector<2x256xf32>
    %c0_31 = arith.constant 0 : index
    %c0_32 = arith.constant 0 : index
    %57 = vector.load %arg12[%c0_31, %c0_32] : memref<256x128xf32, #tpu.memory_space<vmem>>, vector<256x128xf32>
    %cst_33 = arith.constant dense<0.000000e+00> : vector<2x128xf32>
    %58 = tpu.matmul %56, %57, %cst_33 {dimension_numbers = #tpu.dot_dimension_numbers<[1], [0], [0], [1], [0, 0, 1, 1], [], []>} : vector<2x256xf32>, vector<256x128xf32>, vector<2x128xf32> -> vector<2x128xf32>
    %c0_34 = arith.constant 0 : index
    %c0_35 = arith.constant 0 : index
    %59 = vector.load %arg13[%c0_34, %c0_35] : memref<1x128xf32, #tpu.memory_space<vmem>>, vector<1x128xf32>
    %60 = vector.broadcast %59 : vector<1x128xf32> to vector<2x128xf32>
    %61 = arith.addf %58, %60 : vector<2x128xf32>
    %62 = vector.shape_cast %61 : vector<2x128xf32> to vector<1x2x128xf32>
    %cst_36 = arith.constant dense<0.000000e+00> : vector<1xf32>
    %63 = vector.multi_reduction <add>, %62, %cst_36 [1, 2] : vector<1x2x128xf32> to vector<1xf32>
    %64 = vector.shape_cast %63 : vector<1xf32> to vector<1x1x1xf32>
    %65 = vector.extract %64[0, 0, 0] : f32 from vector<1x1x1xf32>
    %66 = arith.mulf %61, %61 : vector<2x128xf32>
    %67 = vector.shape_cast %66 : vector<2x128xf32> to vector<1x2x128xf32>
    %cst_37 = arith.constant dense<0.000000e+00> : vector<1xf32>
    %68 = vector.multi_reduction <add>, %67, %cst_37 [1, 2] : vector<1x2x128xf32> to vector<1xf32>
    %69 = vector.shape_cast %68 : vector<1xf32> to vector<1x1x1xf32>
    %70 = vector.extract %69[0, 0, 0] : f32 from vector<1x1x1xf32>
    %cst_38 = arith.constant 3.906250e-03 : f32
    %71 = arith.mulf %65, %cst_38 : f32
    %cst_39 = arith.constant 2.560000e+02 : f32
    %72 = arith.mulf %cst_39, %71 : f32
    %73 = arith.mulf %72, %71 : f32
    %74 = arith.subf %70, %73 : f32
    %cst_40 = arith.constant 0.00392156886 : f32
    %75 = arith.mulf %74, %cst_40 : f32
    %76 = math.rsqrt %75 : f32
    %cst_41 = arith.constant 1.000000e+00 : f32
    %77 = arith.mulf %76, %cst_41 : f32
    %78 = vector.broadcast %71 : f32 to vector<2x128xf32>
    %79 = arith.subf %61, %78 : vector<2x128xf32>
    %80 = vector.broadcast %77 : f32 to vector<2x128xf32>
    %81 = arith.mulf %79, %80 : vector<2x128xf32>
    %c0_42 = arith.constant 0 : index
    %c0_43 = arith.constant 0 : index
    %82 = vector.load %arg8[%c0_42, %c0_43] : memref<256x256xf32, #tpu.memory_space<vmem>>, vector<256x256xf32>
    %cst_44 = arith.constant dense<0.000000e+00> : vector<2x256xf32>
    %83 = tpu.matmul %54, %82, %cst_44 {dimension_numbers = #tpu.dot_dimension_numbers<[1], [0], [0], [1], [0, 0, 1, 1], [], []>} : vector<2x256xf32>, vector<256x256xf32>, vector<2x256xf32> -> vector<2x256xf32>
    %c0_45 = arith.constant 0 : index
    %c0_46 = arith.constant 0 : index
    %84 = vector.load %arg9[%c0_45, %c0_46] : memref<256x128xf32, #tpu.memory_space<vmem>>, vector<256x128xf32>
    %cst_47 = arith.constant dense<0.000000e+00> : vector<2x128xf32>
    %85 = tpu.matmul %83, %84, %cst_47 {dimension_numbers = #tpu.dot_dimension_numbers<[1], [0], [0], [1], [0, 0, 1, 1], [], []>} : vector<2x256xf32>, vector<256x128xf32>, vector<2x128xf32> -> vector<2x128xf32>
    %c0_48 = arith.constant 0 : index
    %c0_49 = arith.constant 0 : index
    %86 = vector.load %arg10[%c0_48, %c0_49] : memref<1x128xf32, #tpu.memory_space<vmem>>, vector<1x128xf32>
    %87 = vector.broadcast %86 : vector<1x128xf32> to vector<2x128xf32>
    %88 = arith.addf %85, %87 : vector<2x128xf32>
    %89 = vector.shape_cast %88 : vector<2x128xf32> to vector<1x2x128xf32>
    %cst_50 = arith.constant dense<0.000000e+00> : vector<1xf32>
    %90 = vector.multi_reduction <add>, %89, %cst_50 [1, 2] : vector<1x2x128xf32> to vector<1xf32>
    %91 = vector.shape_cast %90 : vector<1xf32> to vector<1x1x1xf32>
    %92 = vector.extract %91[0, 0, 0] : f32 from vector<1x1x1xf32>
    %93 = arith.mulf %88, %88 : vector<2x128xf32>
    %94 = vector.shape_cast %93 : vector<2x128xf32> to vector<1x2x128xf32>
    %cst_51 = arith.constant dense<0.000000e+00> : vector<1xf32>
    %95 = vector.multi_reduction <add>, %94, %cst_51 [1, 2] : vector<1x2x128xf32> to vector<1xf32>
    %96 = vector.shape_cast %95 : vector<1xf32> to vector<1x1x1xf32>
    %97 = vector.extract %96[0, 0, 0] : f32 from vector<1x1x1xf32>
    %cst_52 = arith.constant 3.906250e-03 : f32
    %98 = arith.mulf %92, %cst_52 : f32
    %cst_53 = arith.constant 2.560000e+02 : f32
    %99 = arith.mulf %cst_53, %98 : f32
    %100 = arith.mulf %99, %98 : f32
    %101 = arith.subf %97, %100 : f32
    %cst_54 = arith.constant 0.00392156886 : f32
    %102 = arith.mulf %101, %cst_54 : f32
    %103 = math.rsqrt %102 : f32
    %cst_55 = arith.constant 1.000000e+00 : f32
    %104 = arith.mulf %103, %cst_55 : f32
    %105 = vector.broadcast %98 : f32 to vector<2x128xf32>
    %106 = arith.subf %88, %105 : vector<2x128xf32>
    %107 = vector.broadcast %104 : f32 to vector<2x128xf32>
    %108 = arith.mulf %106, %107 : vector<2x128xf32>
    %c0_56 = arith.constant 0 : index
    %c0_57 = arith.constant 0 : index
    %109 = vector.load %arg17[%c0_56, %c0_57] : memref<128x128xf32, #tpu.memory_space<vmem>>, vector<128x128xf32>
    %cst_58 = arith.constant dense<0.000000e+00> : vector<2x128xf32>
    %110 = tpu.matmul %108, %109, %cst_58 {dimension_numbers = #tpu.dot_dimension_numbers<[1], [0], [0], [1], [0, 0, 1, 1], [], []>} : vector<2x128xf32>, vector<128x128xf32>, vector<2x128xf32> -> vector<2x128xf32>
    %c0_59 = arith.constant 0 : index
    %c0_60 = arith.constant 0 : index
    %111 = vector.load %arg18[%c0_59, %c0_60] : memref<128x64xf32, #tpu.memory_space<vmem>>, vector<128x64xf32>
    %cst_61 = arith.constant dense<0.000000e+00> : vector<2x64xf32>
    %112 = tpu.matmul %110, %111, %cst_61 {dimension_numbers = #tpu.dot_dimension_numbers<[1], [0], [0], [1], [0, 0, 1, 1], [], []>} : vector<2x128xf32>, vector<128x64xf32>, vector<2x64xf32> -> vector<2x64xf32>
    %c0_62 = arith.constant 0 : index
    %c0_63 = arith.constant 0 : index
    %113 = vector.load %arg19[%c0_62, %c0_63] : memref<1x64xf32, #tpu.memory_space<vmem>>, vector<1x64xf32>
    %114 = vector.broadcast %113 : vector<1x64xf32> to vector<2x64xf32>
    %115 = arith.addf %112, %114 : vector<2x64xf32>
    %116 = vector.shape_cast %115 : vector<2x64xf32> to vector<1x2x64xf32>
    %cst_64 = arith.constant dense<0.000000e+00> : vector<1xf32>
    %117 = vector.multi_reduction <add>, %116, %cst_64 [1, 2] : vector<1x2x64xf32> to vector<1xf32>
    %118 = vector.shape_cast %117 : vector<1xf32> to vector<1x1x1xf32>
    %119 = vector.extract %118[0, 0, 0] : f32 from vector<1x1x1xf32>
    %120 = arith.mulf %115, %115 : vector<2x64xf32>
    %121 = vector.shape_cast %120 : vector<2x64xf32> to vector<1x2x64xf32>
    %cst_65 = arith.constant dense<0.000000e+00> : vector<1xf32>
    %122 = vector.multi_reduction <add>, %121, %cst_65 [1, 2] : vector<1x2x64xf32> to vector<1xf32>
    %123 = vector.shape_cast %122 : vector<1xf32> to vector<1x1x1xf32>
    %124 = vector.extract %123[0, 0, 0] : f32 from vector<1x1x1xf32>
    %cst_66 = arith.constant 7.812500e-03 : f32
    %125 = arith.mulf %119, %cst_66 : f32
    %cst_67 = arith.constant 1.280000e+02 : f32
    %126 = arith.mulf %cst_67, %125 : f32
    %127 = arith.mulf %126, %125 : f32
    %128 = arith.subf %124, %127 : f32
    %cst_68 = arith.constant 0.00787401571 : f32
    %129 = arith.mulf %128, %cst_68 : f32
    %130 = math.rsqrt %129 : f32
    %cst_69 = arith.constant 1.000000e+00 : f32
    %131 = arith.mulf %130, %cst_69 : f32
    %132 = vector.broadcast %125 : f32 to vector<2x64xf32>
    %133 = arith.subf %115, %132 : vector<2x64xf32>
    %134 = vector.broadcast %131 : f32 to vector<2x64xf32>
    %135 = arith.mulf %133, %134 : vector<2x64xf32>
    %c0_70 = arith.constant 0 : index
    %c0_71 = arith.constant 0 : index
    %136 = vector.load %arg14[%c0_70, %c0_71] : memref<128x128xf32, #tpu.memory_space<vmem>>, vector<128x128xf32>
    %cst_72 = arith.constant dense<0.000000e+00> : vector<2x128xf32>
    %137 = tpu.matmul %108, %136, %cst_72 {dimension_numbers = #tpu.dot_dimension_numbers<[1], [0], [0], [1], [0, 0, 1, 1], [], []>} : vector<2x128xf32>, vector<128x128xf32>, vector<2x128xf32> -> vector<2x128xf32>
    %c0_73 = arith.constant 0 : index
    %c0_74 = arith.constant 0 : index
    %138 = vector.load %arg15[%c0_73, %c0_74] : memref<128x64xf32, #tpu.memory_space<vmem>>, vector<128x64xf32>
    %cst_75 = arith.constant dense<0.000000e+00> : vector<2x64xf32>
    %139 = tpu.matmul %137, %138, %cst_75 {dimension_numbers = #tpu.dot_dimension_numbers<[1], [0], [0], [1], [0, 0, 1, 1], [], []>} : vector<2x128xf32>, vector<128x64xf32>, vector<2x64xf32> -> vector<2x64xf32>
    %c0_76 = arith.constant 0 : index
    %c0_77 = arith.constant 0 : index
    %140 = vector.load %arg16[%c0_76, %c0_77] : memref<1x64xf32, #tpu.memory_space<vmem>>, vector<1x64xf32>
    %141 = vector.broadcast %140 : vector<1x64xf32> to vector<2x64xf32>
    %142 = arith.addf %139, %141 : vector<2x64xf32>
    %143 = vector.shape_cast %142 : vector<2x64xf32> to vector<1x2x64xf32>
    %cst_78 = arith.constant dense<0.000000e+00> : vector<1xf32>
    %144 = vector.multi_reduction <add>, %143, %cst_78 [1, 2] : vector<1x2x64xf32> to vector<1xf32>
    %145 = vector.shape_cast %144 : vector<1xf32> to vector<1x1x1xf32>
    %146 = vector.extract %145[0, 0, 0] : f32 from vector<1x1x1xf32>
    %147 = arith.mulf %142, %142 : vector<2x64xf32>
    %148 = vector.shape_cast %147 : vector<2x64xf32> to vector<1x2x64xf32>
    %cst_79 = arith.constant dense<0.000000e+00> : vector<1xf32>
    %149 = vector.multi_reduction <add>, %148, %cst_79 [1, 2] : vector<1x2x64xf32> to vector<1xf32>
    %150 = vector.shape_cast %149 : vector<1xf32> to vector<1x1x1xf32>
    %151 = vector.extract %150[0, 0, 0] : f32 from vector<1x1x1xf32>
    %cst_80 = arith.constant 7.812500e-03 : f32
    %152 = arith.mulf %146, %cst_80 : f32
    %cst_81 = arith.constant 1.280000e+02 : f32
    %153 = arith.mulf %cst_81, %152 : f32
    %154 = arith.mulf %153, %152 : f32
    %155 = arith.subf %151, %154 : f32
    %cst_82 = arith.constant 0.00787401571 : f32
    %156 = arith.mulf %155, %cst_82 : f32
    %157 = math.rsqrt %156 : f32
    %cst_83 = arith.constant 1.000000e+00 : f32
    %158 = arith.mulf %157, %cst_83 : f32
    %159 = vector.broadcast %152 : f32 to vector<2x64xf32>
    %160 = arith.subf %142, %159 : vector<2x64xf32>
    %161 = vector.broadcast %158 : f32 to vector<2x64xf32>
    %162 = arith.mulf %160, %161 : vector<2x64xf32>
    %c0_84 = arith.constant 0 : index
    %c0_85 = arith.constant 0 : index
    %163 = vector.load %arg23[%c0_84, %c0_85] : memref<64x128xf32, #tpu.memory_space<vmem>>, vector<64x128xf32>
    %cst_86 = arith.constant dense<0.000000e+00> : vector<2x128xf32>
    %164 = tpu.matmul %162, %163, %cst_86 {dimension_numbers = #tpu.dot_dimension_numbers<[1], [0], [0], [1], [0, 0, 1, 1], [], []>} : vector<2x64xf32>, vector<64x128xf32>, vector<2x128xf32> -> vector<2x128xf32>
    %c0_87 = arith.constant 0 : index
    %c0_88 = arith.constant 0 : index
    %165 = vector.load %arg24[%c0_87, %c0_88] : memref<128x32xf32, #tpu.memory_space<vmem>>, vector<128x32xf32>
    %cst_89 = arith.constant dense<0.000000e+00> : vector<2x32xf32>
    %166 = tpu.matmul %164, %165, %cst_89 {dimension_numbers = #tpu.dot_dimension_numbers<[1], [0], [0], [1], [0, 0, 1, 1], [], []>} : vector<2x128xf32>, vector<128x32xf32>, vector<2x32xf32> -> vector<2x32xf32>
    %c0_90 = arith.constant 0 : index
    %c0_91 = arith.constant 0 : index
    %167 = vector.load %arg25[%c0_90, %c0_91] : memref<1x32xf32, #tpu.memory_space<vmem>>, vector<1x32xf32>
    %168 = vector.broadcast %167 : vector<1x32xf32> to vector<2x32xf32>
    %169 = arith.addf %166, %168 : vector<2x32xf32>
    %170 = vector.shape_cast %169 : vector<2x32xf32> to vector<1x2x32xf32>
    %cst_92 = arith.constant dense<0.000000e+00> : vector<1xf32>
    %171 = vector.multi_reduction <add>, %170, %cst_92 [1, 2] : vector<1x2x32xf32> to vector<1xf32>
    %172 = vector.shape_cast %171 : vector<1xf32> to vector<1x1x1xf32>
    %173 = vector.extract %172[0, 0, 0] : f32 from vector<1x1x1xf32>
    %174 = arith.mulf %169, %169 : vector<2x32xf32>
    %175 = vector.shape_cast %174 : vector<2x32xf32> to vector<1x2x32xf32>
    %cst_93 = arith.constant dense<0.000000e+00> : vector<1xf32>
    %176 = vector.multi_reduction <add>, %175, %cst_93 [1, 2] : vector<1x2x32xf32> to vector<1xf32>
    %177 = vector.shape_cast %176 : vector<1xf32> to vector<1x1x1xf32>
    %178 = vector.extract %177[0, 0, 0] : f32 from vector<1x1x1xf32>
    %cst_94 = arith.constant 1.562500e-02 : f32
    %179 = arith.mulf %173, %cst_94 : f32
    %cst_95 = arith.constant 6.400000e+01 : f32
    %180 = arith.mulf %cst_95, %179 : f32
    %181 = arith.mulf %180, %179 : f32
    %182 = arith.subf %178, %181 : f32
    %cst_96 = arith.constant 0.0158730168 : f32
    %183 = arith.mulf %182, %cst_96 : f32
    %184 = math.rsqrt %183 : f32
    %cst_97 = arith.constant 1.000000e+00 : f32
    %185 = arith.mulf %184, %cst_97 : f32
    %186 = vector.broadcast %179 : f32 to vector<2x32xf32>
    %187 = arith.subf %169, %186 : vector<2x32xf32>
    %188 = vector.broadcast %185 : f32 to vector<2x32xf32>
    %189 = arith.mulf %187, %188 : vector<2x32xf32>
    %c0_98 = arith.constant 0 : index
    %c0_99 = arith.constant 0 : index
    %190 = vector.load %arg20[%c0_98, %c0_99] : memref<64x128xf32, #tpu.memory_space<vmem>>, vector<64x128xf32>
    %cst_100 = arith.constant dense<0.000000e+00> : vector<2x128xf32>
    %191 = tpu.matmul %162, %190, %cst_100 {dimension_numbers = #tpu.dot_dimension_numbers<[1], [0], [0], [1], [0, 0, 1, 1], [], []>} : vector<2x64xf32>, vector<64x128xf32>, vector<2x128xf32> -> vector<2x128xf32>
    %c0_101 = arith.constant 0 : index
    %c0_102 = arith.constant 0 : index
    %192 = vector.load %arg21[%c0_101, %c0_102] : memref<128x32xf32, #tpu.memory_space<vmem>>, vector<128x32xf32>
    %cst_103 = arith.constant dense<0.000000e+00> : vector<2x32xf32>
    %193 = tpu.matmul %191, %192, %cst_103 {dimension_numbers = #tpu.dot_dimension_numbers<[1], [0], [0], [1], [0, 0, 1, 1], [], []>} : vector<2x128xf32>, vector<128x32xf32>, vector<2x32xf32> -> vector<2x32xf32>
    %c0_104 = arith.constant 0 : index
    %c0_105 = arith.constant 0 : index
    %194 = vector.load %arg22[%c0_104, %c0_105] : memref<1x32xf32, #tpu.memory_space<vmem>>, vector<1x32xf32>
    %195 = vector.broadcast %194 : vector<1x32xf32> to vector<2x32xf32>
    %196 = arith.addf %193, %195 : vector<2x32xf32>
    %197 = vector.shape_cast %196 : vector<2x32xf32> to vector<1x2x32xf32>
    %cst_106 = arith.constant dense<0.000000e+00> : vector<1xf32>
    %198 = vector.multi_reduction <add>, %197, %cst_106 [1, 2] : vector<1x2x32xf32> to vector<1xf32>
    %199 = vector.shape_cast %198 : vector<1xf32> to vector<1x1x1xf32>
    %200 = vector.extract %199[0, 0, 0] : f32 from vector<1x1x1xf32>
    %201 = arith.mulf %196, %196 : vector<2x32xf32>
    %202 = vector.shape_cast %201 : vector<2x32xf32> to vector<1x2x32xf32>
    %cst_107 = arith.constant dense<0.000000e+00> : vector<1xf32>
    %203 = vector.multi_reduction <add>, %202, %cst_107 [1, 2] : vector<1x2x32xf32> to vector<1xf32>
    %204 = vector.shape_cast %203 : vector<1xf32> to vector<1x1x1xf32>
    %205 = vector.extract %204[0, 0, 0] : f32 from vector<1x1x1xf32>
    %cst_108 = arith.constant 1.562500e-02 : f32
    %206 = arith.mulf %200, %cst_108 : f32
    %cst_109 = arith.constant 6.400000e+01 : f32
    %207 = arith.mulf %cst_109, %206 : f32
    %208 = arith.mulf %207, %206 : f32
    %209 = arith.subf %205, %208 : f32
    %cst_110 = arith.constant 0.0158730168 : f32
    %210 = arith.mulf %209, %cst_110 : f32
    %211 = math.rsqrt %210 : f32
    %cst_111 = arith.constant 1.000000e+00 : f32
    %212 = arith.mulf %211, %cst_111 : f32
    %213 = vector.broadcast %206 : f32 to vector<2x32xf32>
    %214 = arith.subf %196, %213 : vector<2x32xf32>
    %215 = vector.broadcast %212 : f32 to vector<2x32xf32>
    %216 = arith.mulf %214, %215 : vector<2x32xf32>
    %c0_112 = arith.constant 0 : index
    %c0_113 = arith.constant 0 : index
    %217 = vector.load %arg26[%c0_112, %c0_113] : memref<32x64xf32, #tpu.memory_space<vmem>>, vector<32x64xf32>
    %cst_114 = arith.constant dense<0.000000e+00> : vector<2x64xf32>
    %218 = tpu.matmul %216, %217, %cst_114 {dimension_numbers = #tpu.dot_dimension_numbers<[1], [0], [0], [1], [0, 0, 1, 1], [], []>} : vector<2x32xf32>, vector<32x64xf32>, vector<2x64xf32> -> vector<2x64xf32>
    %c0_115 = arith.constant 0 : index
    %c0_116 = arith.constant 0 : index
    %219 = vector.load %arg27[%c0_115, %c0_116] : memref<32x64xf32, #tpu.memory_space<vmem>>, vector<32x64xf32>
    %cst_117 = arith.constant dense<0.000000e+00> : vector<2x64xf32>
    %220 = tpu.matmul %189, %219, %cst_117 {dimension_numbers = #tpu.dot_dimension_numbers<[1], [0], [0], [1], [0, 0, 1, 1], [], []>} : vector<2x32xf32>, vector<32x64xf32>, vector<2x64xf32> -> vector<2x64xf32>
    %221 = arith.addf %218, %220 : vector<2x64xf32>
    %c0_118 = arith.constant 0 : index
    %c0_119 = arith.constant 0 : index
    %222 = vector.load %arg28[%c0_118, %c0_119] : memref<1x64xf32, #tpu.memory_space<vmem>>, vector<1x64xf32>
    %223 = vector.broadcast %222 : vector<1x64xf32> to vector<2x64xf32>
    %224 = arith.addf %221, %223 : vector<2x64xf32>
    %225 = vector.shape_cast %224 : vector<2x64xf32> to vector<1x2x64xf32>
    %cst_120 = arith.constant dense<0.000000e+00> : vector<1xf32>
    %226 = vector.multi_reduction <add>, %225, %cst_120 [1, 2] : vector<1x2x64xf32> to vector<1xf32>
    %227 = vector.shape_cast %226 : vector<1xf32> to vector<1x1x1xf32>
    %228 = vector.extract %227[0, 0, 0] : f32 from vector<1x1x1xf32>
    %229 = arith.mulf %224, %224 : vector<2x64xf32>
    %230 = vector.shape_cast %229 : vector<2x64xf32> to vector<1x2x64xf32>
    %cst_121 = arith.constant dense<0.000000e+00> : vector<1xf32>
    %231 = vector.multi_reduction <add>, %230, %cst_121 [1, 2] : vector<1x2x64xf32> to vector<1xf32>
    %232 = vector.shape_cast %231 : vector<1xf32> to vector<1x1x1xf32>
    %233 = vector.extract %232[0, 0, 0] : f32 from vector<1x1x1xf32>
    %cst_122 = arith.constant 7.812500e-03 : f32
    %234 = arith.mulf %228, %cst_122 : f32
    %cst_123 = arith.constant 1.280000e+02 : f32
    %235 = arith.mulf %cst_123, %234 : f32
    %236 = arith.mulf %235, %234 : f32
    %237 = arith.subf %233, %236 : f32
    %cst_124 = arith.constant 0.00787401571 : f32
    %238 = arith.mulf %237, %cst_124 : f32
    %239 = math.rsqrt %238 : f32
    %cst_125 = arith.constant 1.000000e+00 : f32
    %240 = arith.mulf %239, %cst_125 : f32
    %241 = vector.broadcast %240 : f32 to vector<2x64xf32>
    %242 = arith.mulf %224, %241 : vector<2x64xf32>
    %c0_126 = arith.constant 0 : index
    %c0_127 = arith.constant 0 : index
    %243 = vector.load %arg29[%c0_126, %c0_127] : memref<64x128xf32, #tpu.memory_space<vmem>>, vector<64x128xf32>
    %cst_128 = arith.constant dense<0.000000e+00> : vector<2x128xf32>
    %244 = tpu.matmul %242, %243, %cst_128 {dimension_numbers = #tpu.dot_dimension_numbers<[1], [0], [0], [1], [0, 0, 1, 1], [], []>} : vector<2x64xf32>, vector<64x128xf32>, vector<2x128xf32> -> vector<2x128xf32>
    %c0_129 = arith.constant 0 : index
    %c0_130 = arith.constant 0 : index
    %245 = vector.load %arg30[%c0_129, %c0_130] : memref<64x128xf32, #tpu.memory_space<vmem>>, vector<64x128xf32>
    %cst_131 = arith.constant dense<0.000000e+00> : vector<2x128xf32>
    %246 = tpu.matmul %135, %245, %cst_131 {dimension_numbers = #tpu.dot_dimension_numbers<[1], [0], [0], [1], [0, 0, 1, 1], [], []>} : vector<2x64xf32>, vector<64x128xf32>, vector<2x128xf32> -> vector<2x128xf32>
    %247 = arith.addf %244, %246 : vector<2x128xf32>
    %c0_132 = arith.constant 0 : index
    %c0_133 = arith.constant 0 : index
    %248 = vector.load %arg31[%c0_132, %c0_133] : memref<1x128xf32, #tpu.memory_space<vmem>>, vector<1x128xf32>
    %249 = vector.broadcast %248 : vector<1x128xf32> to vector<2x128xf32>
    %250 = arith.addf %247, %249 : vector<2x128xf32>
    %251 = vector.shape_cast %250 : vector<2x128xf32> to vector<1x2x128xf32>
    %cst_134 = arith.constant dense<0.000000e+00> : vector<1xf32>
    %252 = vector.multi_reduction <add>, %251, %cst_134 [1, 2] : vector<1x2x128xf32> to vector<1xf32>
    %253 = vector.shape_cast %252 : vector<1xf32> to vector<1x1x1xf32>
    %254 = vector.extract %253[0, 0, 0] : f32 from vector<1x1x1xf32>
    %255 = arith.mulf %250, %250 : vector<2x128xf32>
    %256 = vector.shape_cast %255 : vector<2x128xf32> to vector<1x2x128xf32>
    %cst_135 = arith.constant dense<0.000000e+00> : vector<1xf32>
    %257 = vector.multi_reduction <add>, %256, %cst_135 [1, 2] : vector<1x2x128xf32> to vector<1xf32>
    %258 = vector.shape_cast %257 : vector<1xf32> to vector<1x1x1xf32>
    %259 = vector.extract %258[0, 0, 0] : f32 from vector<1x1x1xf32>
    %cst_136 = arith.constant 3.906250e-03 : f32
    %260 = arith.mulf %254, %cst_136 : f32
    %cst_137 = arith.constant 2.560000e+02 : f32
    %261 = arith.mulf %cst_137, %260 : f32
    %262 = arith.mulf %261, %260 : f32
    %263 = arith.subf %259, %262 : f32
    %cst_138 = arith.constant 0.00392156886 : f32
    %264 = arith.mulf %263, %cst_138 : f32
    %265 = math.rsqrt %264 : f32
    %cst_139 = arith.constant 1.000000e+00 : f32
    %266 = arith.mulf %265, %cst_139 : f32
    %267 = vector.broadcast %266 : f32 to vector<2x128xf32>
    %268 = arith.mulf %250, %267 : vector<2x128xf32>
    %c0_140 = arith.constant 0 : index
    %c0_141 = arith.constant 0 : index
    %269 = vector.load %arg32[%c0_140, %c0_141] : memref<128x256xf32, #tpu.memory_space<vmem>>, vector<128x256xf32>
    %cst_142 = arith.constant dense<0.000000e+00> : vector<2x256xf32>
    %270 = tpu.matmul %268, %269, %cst_142 {dimension_numbers = #tpu.dot_dimension_numbers<[1], [0], [0], [1], [0, 0, 1, 1], [], []>} : vector<2x128xf32>, vector<128x256xf32>, vector<2x256xf32> -> vector<2x256xf32>
    %c0_143 = arith.constant 0 : index
    %c0_144 = arith.constant 0 : index
    %271 = vector.load %arg33[%c0_143, %c0_144] : memref<128x256xf32, #tpu.memory_space<vmem>>, vector<128x256xf32>
    %cst_145 = arith.constant dense<0.000000e+00> : vector<2x256xf32>
    %272 = tpu.matmul %81, %271, %cst_145 {dimension_numbers = #tpu.dot_dimension_numbers<[1], [0], [0], [1], [0, 0, 1, 1], [], []>} : vector<2x128xf32>, vector<128x256xf32>, vector<2x256xf32> -> vector<2x256xf32>
    %273 = arith.addf %270, %272 : vector<2x256xf32>
    %c0_146 = arith.constant 0 : index
    %c0_147 = arith.constant 0 : index
    %274 = vector.load %arg34[%c0_146, %c0_147] : memref<1x256xf32, #tpu.memory_space<vmem>>, vector<1x256xf32>
    %275 = vector.broadcast %274 : vector<1x256xf32> to vector<2x256xf32>
    %276 = arith.addf %273, %275 : vector<2x256xf32>
    %277 = vector.shape_cast %276 : vector<2x256xf32> to vector<1x2x256xf32>
    %cst_148 = arith.constant dense<0.000000e+00> : vector<1xf32>
    %278 = vector.multi_reduction <add>, %277, %cst_148 [1, 2] : vector<1x2x256xf32> to vector<1xf32>
    %279 = vector.shape_cast %278 : vector<1xf32> to vector<1x1x1xf32>
    %280 = vector.extract %279[0, 0, 0] : f32 from vector<1x1x1xf32>
    %281 = arith.mulf %276, %276 : vector<2x256xf32>
    %282 = vector.shape_cast %281 : vector<2x256xf32> to vector<1x2x256xf32>
    %cst_149 = arith.constant dense<0.000000e+00> : vector<1xf32>
    %283 = vector.multi_reduction <add>, %282, %cst_149 [1, 2] : vector<1x2x256xf32> to vector<1xf32>
    %284 = vector.shape_cast %283 : vector<1xf32> to vector<1x1x1xf32>
    %285 = vector.extract %284[0, 0, 0] : f32 from vector<1x1x1xf32>
    %cst_150 = arith.constant 0.001953125 : f32
    %286 = arith.mulf %280, %cst_150 : f32
    %cst_151 = arith.constant 5.120000e+02 : f32
    %287 = arith.mulf %cst_151, %286 : f32
    %288 = arith.mulf %287, %286 : f32
    %289 = arith.subf %285, %288 : f32
    %cst_152 = arith.constant 0.00195694715 : f32
    %290 = arith.mulf %289, %cst_152 : f32
    %291 = math.rsqrt %290 : f32
    %cst_153 = arith.constant 1.000000e+00 : f32
    %292 = arith.mulf %291, %cst_153 : f32
    %293 = vector.broadcast %292 : f32 to vector<2x256xf32>
    %294 = arith.mulf %276, %293 : vector<2x256xf32>
    %c0_154 = arith.constant 0 : index
    %c0_155 = arith.constant 0 : index
    %295 = vector.load %arg35[%c0_154, %c0_155] : memref<256x512xf32, #tpu.memory_space<vmem>>, vector<256x512xf32>
    %cst_156 = arith.constant dense<0.000000e+00> : vector<2x512xf32>
    %296 = tpu.matmul %294, %295, %cst_156 {dimension_numbers = #tpu.dot_dimension_numbers<[1], [0], [0], [1], [0, 0, 1, 1], [], []>} : vector<2x256xf32>, vector<256x512xf32>, vector<2x512xf32> -> vector<2x512xf32>
    %c0_157 = arith.constant 0 : index
    %c0_158 = arith.constant 0 : index
    %297 = vector.load %arg36[%c0_157, %c0_158] : memref<256x512xf32, #tpu.memory_space<vmem>>, vector<256x512xf32>
    %cst_159 = arith.constant dense<0.000000e+00> : vector<2x512xf32>
    %298 = tpu.matmul %27, %297, %cst_159 {dimension_numbers = #tpu.dot_dimension_numbers<[1], [0], [0], [1], [0, 0, 1, 1], [], []>} : vector<2x256xf32>, vector<256x512xf32>, vector<2x512xf32> -> vector<2x512xf32>
    %299 = arith.addf %296, %298 : vector<2x512xf32>
    %c0_160 = arith.constant 0 : index
    %c0_161 = arith.constant 0 : index
    %300 = vector.load %arg37[%c0_160, %c0_161] : memref<1x512xf32, #tpu.memory_space<vmem>>, vector<1x512xf32>
    %301 = vector.broadcast %300 : vector<1x512xf32> to vector<2x512xf32>
    %302 = arith.addf %299, %301 : vector<2x512xf32>
    %303 = vector.shape_cast %302 : vector<2x512xf32> to vector<1x2x512xf32>
    %cst_162 = arith.constant dense<0.000000e+00> : vector<1xf32>
    %304 = vector.multi_reduction <add>, %303, %cst_162 [1, 2] : vector<1x2x512xf32> to vector<1xf32>
    %305 = vector.shape_cast %304 : vector<1xf32> to vector<1x1x1xf32>
    %306 = vector.extract %305[0, 0, 0] : f32 from vector<1x1x1xf32>
    %307 = arith.mulf %302, %302 : vector<2x512xf32>
    %308 = vector.shape_cast %307 : vector<2x512xf32> to vector<1x2x512xf32>
    %cst_163 = arith.constant dense<0.000000e+00> : vector<1xf32>
    %309 = vector.multi_reduction <add>, %308, %cst_163 [1, 2] : vector<1x2x512xf32> to vector<1xf32>
    %310 = vector.shape_cast %309 : vector<1xf32> to vector<1x1x1xf32>
    %311 = vector.extract %310[0, 0, 0] : f32 from vector<1x1x1xf32>
    %cst_164 = arith.constant 9.765625E-4 : f32
    %312 = arith.mulf %306, %cst_164 : f32
    %cst_165 = arith.constant 1.024000e+03 : f32
    %313 = arith.mulf %cst_165, %312 : f32
    %314 = arith.mulf %313, %312 : f32
    %315 = arith.subf %311, %314 : f32
    %cst_166 = arith.constant 9.77517105E-4 : f32
    %316 = arith.mulf %315, %cst_166 : f32
    %317 = math.rsqrt %316 : f32
    %cst_167 = arith.constant 5.000000e-01 : f32
    %318 = arith.mulf %317, %cst_167 : f32
    %319 = vector.broadcast %318 : f32 to vector<2x512xf32>
    %320 = arith.mulf %302, %319 : vector<2x512xf32>
    %c0_168 = arith.constant 0 : index
    %c0_169 = arith.constant 0 : index
    %321 = vector.load %arg38[%c0_168, %c0_169] : memref<2x512xf32, #tpu.memory_space<vmem>>, vector<2x512xf32>
    tpu.vector_store %arg38[%c0_168, %c0_169], %320 {strides = array<i32>} : memref<2x512xf32, #tpu.memory_space<vmem>>, vector<2x512xf32>,
    return
  }
  func.func @transform_0(%arg0: i32) -> (i32, i32) {
    %c0_i32 = arith.constant 0 : i32
    %c0_i32_0 = arith.constant 0 : i32
    %c0_i32_1 = arith.constant 0 : i32
    return %c0_i32, %c0_i32_0 : i32, i32
  }
  func.func @transform_1(%arg0: i32) -> (i32, i32) {
    %c0_i32 = arith.constant 0 : i32
    %c0_i32_0 = arith.constant 0 : i32
    %c0_i32_1 = arith.constant 0 : i32
    return %c0_i32, %c0_i32_0 : i32, i32
  }
  func.func @transform_2(%arg0: i32) -> (i32, i32) {
    %c0_i32 = arith.constant 0 : i32
    %c0_i32_0 = arith.constant 0 : i32
    %c0_i32_1 = arith.constant 0 : i32
    return %c0_i32, %c0_i32_0 : i32, i32
  }
  func.func @transform_3(%arg0: i32) -> (i32, i32) {
    %c0_i32 = arith.constant 0 : i32
    %c0_i32_0 = arith.constant 0 : i32
    %c0_i32_1 = arith.constant 0 : i32
    return %c0_i32, %c0_i32_0 : i32, i32
  }
  func.func @transform_4(%arg0: i32) -> (i32, i32) {
    %c0_i32 = arith.constant 0 : i32
    %c0_i32_0 = arith.constant 0 : i32
    %c0_i32_1 = arith.constant 0 : i32
    return %c0_i32, %c0_i32_0 : i32, i32
  }
  func.func @transform_5(%arg0: i32) -> (i32, i32) {
    %c0_i32 = arith.constant 0 : i32
    %c0_i32_0 = arith.constant 0 : i32
    %c0_i32_1 = arith.constant 0 : i32
    return %c0_i32, %c0_i32_0 : i32, i32
  }
  func.func @transform_6(%arg0: i32) -> (i32, i32) {
    %c0_i32 = arith.constant 0 : i32
    %c0_i32_0 = arith.constant 0 : i32
    %c0_i32_1 = arith.constant 0 : i32
    return %c0_i32, %c0_i32_0 : i32, i32
  }
  func.func @transform_7(%arg0: i32) -> (i32, i32) {
    %c0_i32 = arith.constant 0 : i32
    %c0_i32_0 = arith.constant 0 : i32
    %c0_i32_1 = arith.constant 0 : i32
    return %c0_i32, %c0_i32_0 : i32, i32
  }
  func.func @transform_8(%arg0: i32) -> (i32, i32) {
    %c0_i32 = arith.constant 0 : i32
    %c0_i32_0 = arith.constant 0 : i32
    %c0_i32_1 = arith.constant 0 : i32
    return %c0_i32, %c0_i32_0 : i32, i32
  }
  func.func @transform_9(%arg0: i32) -> (i32, i32) {
    %c0_i32 = arith.constant 0 : i32
    %c0_i32_0 = arith.constant 0 : i32
    %c0_i32_1 = arith.constant 0 : i32
    return %c0_i32, %c0_i32_0 : i32, i32
  }
  func.func @transform_10(%arg0: i32) -> (i32, i32) {
    %c0_i32 = arith.constant 0 : i32
    %c0_i32_0 = arith.constant 0 : i32
    %c0_i32_1 = arith.constant 0 : i32
    return %c0_i32, %c0_i32_0 : i32, i32
  }
  func.func @transform_11(%arg0: i32) -> (i32, i32) {
    %c0_i32 = arith.constant 0 : i32
    %c0_i32_0 = arith.constant 0 : i32
    %c0_i32_1 = arith.constant 0 : i32
    return %c0_i32, %c0_i32_0 : i32, i32
  }
  func.func @transform_12(%arg0: i32) -> (i32, i32) {
    %c0_i32 = arith.constant 0 : i32
    %c0_i32_0 = arith.constant 0 : i32
    %c0_i32_1 = arith.constant 0 : i32
    return %c0_i32, %c0_i32_0 : i32, i32
  }
  func.func @transform_13(%arg0: i32) -> (i32, i32) {
    %c0_i32 = arith.constant 0 : i32
    %c0_i32_0 = arith.constant 0 : i32
    %c0_i32_1 = arith.constant 0 : i32
    return %c0_i32, %c0_i32_0 : i32, i32
  }
  func.func @transform_14(%arg0: i32) -> (i32, i32) {
    %c0_i32 = arith.constant 0 : i32
    %c0_i32_0 = arith.constant 0 : i32
    %c0_i32_1 = arith.constant 0 : i32
    return %c0_i32, %c0_i32_0 : i32, i32
  }
  func.func @transform_15(%arg0: i32) -> (i32, i32) {
    %c0_i32 = arith.constant 0 : i32
    %c0_i32_0 = arith.constant 0 : i32
    %c0_i32_1 = arith.constant 0 : i32
    return %c0_i32, %c0_i32_0 : i32, i32
  }
  func.func @transform_16(%arg0: i32) -> (i32, i32) {
    %c0_i32 = arith.constant 0 : i32
    %c0_i32_0 = arith.constant 0 : i32
    %c0_i32_1 = arith.constant 0 : i32
    return %c0_i32, %c0_i32_0 : i32, i32
  }
  func.func @transform_17(%arg0: i32) -> (i32, i32) {
    %c0_i32 = arith.constant 0 : i32
    %c0_i32_0 = arith.constant 0 : i32
    %c0_i32_1 = arith.constant 0 : i32
    return %c0_i32, %c0_i32_0 : i32, i32
  }
  func.func @transform_18(%arg0: i32) -> (i32, i32) {
    %c0_i32 = arith.constant 0 : i32
    %c0_i32_0 = arith.constant 0 : i32
    %c0_i32_1 = arith.constant 0 : i32
    return %c0_i32, %c0_i32_0 : i32, i32
  }
  func.func @transform_19(%arg0: i32) -> (i32, i32) {
    %c0_i32 = arith.constant 0 : i32
    %c0_i32_0 = arith.constant 0 : i32
    %c0_i32_1 = arith.constant 0 : i32
    return %c0_i32, %c0_i32_0 : i32, i32
  }
  func.func @transform_20(%arg0: i32) -> (i32, i32) {
    %c0_i32 = arith.constant 0 : i32
    %c0_i32_0 = arith.constant 0 : i32
    %c0_i32_1 = arith.constant 0 : i32
    return %c0_i32, %c0_i32_0 : i32, i32
  }
  func.func @transform_21(%arg0: i32) -> (i32, i32) {
    %c0_i32 = arith.constant 0 : i32
    %c0_i32_0 = arith.constant 0 : i32
    %c0_i32_1 = arith.constant 0 : i32
    return %c0_i32, %c0_i32_0 : i32, i32
  }
  func.func @transform_22(%arg0: i32) -> (i32, i32) {
    %c0_i32 = arith.constant 0 : i32
    %c0_i32_0 = arith.constant 0 : i32
    %c0_i32_1 = arith.constant 0 : i32
    return %c0_i32, %c0_i32_0 : i32, i32
  }
  func.func @transform_23(%arg0: i32) -> (i32, i32) {
    %c0_i32 = arith.constant 0 : i32
    %c0_i32_0 = arith.constant 0 : i32
    %c0_i32_1 = arith.constant 0 : i32
    return %c0_i32, %c0_i32_0 : i32, i32
  }
  func.func @transform_24(%arg0: i32) -> (i32, i32) {
    %c0_i32 = arith.constant 0 : i32
    %c0_i32_0 = arith.constant 0 : i32
    %c0_i32_1 = arith.constant 0 : i32
    return %c0_i32, %c0_i32_0 : i32, i32
  }
  func.func @transform_25(%arg0: i32) -> (i32, i32) {
    %c0_i32 = arith.constant 0 : i32
    %c0_i32_0 = arith.constant 0 : i32
    %c0_i32_1 = arith.constant 0 : i32
    return %c0_i32, %c0_i32_0 : i32, i32
  }
  func.func @transform_26(%arg0: i32) -> (i32, i32) {
    %c0_i32 = arith.constant 0 : i32
    %c0_i32_0 = arith.constant 0 : i32
    %c0_i32_1 = arith.constant 0 : i32
    return %c0_i32, %c0_i32_0 : i32, i32
  }
  func.func @transform_27(%arg0: i32) -> (i32, i32) {
    %c0_i32 = arith.constant 0 : i32
    %c0_i32_0 = arith.constant 0 : i32
    %c0_i32_1 = arith.constant 0 : i32
    return %c0_i32, %c0_i32_0 : i32, i32
  }
  func.func @transform_28(%arg0: i32) -> (i32, i32) {
    %c0_i32 = arith.constant 0 : i32
    %c0_i32_0 = arith.constant 0 : i32
    %c0_i32_1 = arith.constant 0 : i32
    return %c0_i32, %c0_i32_0 : i32, i32
  }
  func.func @transform_29(%arg0: i32) -> (i32, i32) {
    %c0_i32 = arith.constant 0 : i32
    %c0_i32_0 = arith.constant 0 : i32
    %c0_i32_1 = arith.constant 0 : i32
    return %c0_i32, %c0_i32_0 : i32, i32
  }
  func.func @transform_30(%arg0: i32) -> (i32, i32) {
    %c0_i32 = arith.constant 0 : i32
    %c0_i32_0 = arith.constant 0 : i32
    %c0_i32_1 = arith.constant 0 : i32
    return %c0_i32, %c0_i32_0 : i32, i32
  }
  func.func @transform_31(%arg0: i32) -> (i32, i32) {
    %c0_i32 = arith.constant 0 : i32
    %c0_i32_0 = arith.constant 0 : i32
    %c0_i32_1 = arith.constant 0 : i32
    return %c0_i32, %c0_i32_0 : i32, i32
  }
  func.func @transform_32(%arg0: i32) -> (i32, i32) {
    %c0_i32 = arith.constant 0 : i32
    %c0_i32_0 = arith.constant 0 : i32
    %c0_i32_1 = arith.constant 0 : i32
    return %c0_i32, %c0_i32_0 : i32, i32
  }
  func.func @transform_33(%arg0: i32) -> (i32, i32) {
    %c0_i32 = arith.constant 0 : i32
    %c0_i32_0 = arith.constant 0 : i32
    %c0_i32_1 = arith.constant 0 : i32
    return %c0_i32, %c0_i32_0 : i32, i32
  }
  func.func @transform_34(%arg0: i32) -> (i32, i32) {
    %c0_i32 = arith.constant 0 : i32
    %c0_i32_0 = arith.constant 0 : i32
    %c0_i32_1 = arith.constant 0 : i32
    return %c0_i32, %c0_i32_0 : i32, i32
  }
  func.func @transform_35(%arg0: i32) -> (i32, i32) {
    %c0_i32 = arith.constant 0 : i32
    %c0_i32_0 = arith.constant 0 : i32
    %c0_i32_1 = arith.constant 0 : i32
    return %c0_i32, %c0_i32_0 : i32, i32
  }
  func.func @transform_36(%arg0: i32) -> (i32, i32) {
    %c0_i32 = arith.constant 0 : i32
    %c0_i32_0 = arith.constant 0 : i32
    %c0_i32_1 = arith.constant 0 : i32
    return %c0_i32, %c0_i32_0 : i32, i32
  }
  func.func @transform_37(%arg0: i32) -> (i32, i32) {
    %c0_i32 = arith.constant 0 : i32
    %c0_i32_0 = arith.constant 0 : i32
    %c0_i32_1 = arith.constant 0 : i32
    return %c0_i32, %c0_i32_0 : i32, i32
  }
}

</mosaic_0001>

<bundles_post_ra>
// kernel: wavelet_block_forward.1
= control target key start
LH: loop header
LB: loop body
LE: loop exit
PB: predicated region body
PF: predicated region fallthrough
CT: control target
= control target key end

     0   :  { %s4071_s6 = smov 1   ;;  %s4072_s10 = smov 2   ;;  %s4856_s0 = inlined_call_operand.smem [shape: u32[38], index: -1, kind: input, shape index: {}] }
   0x1   :  { %s4138_s5 = sld [smem:[%s4856_s0]]   ;;  %s4073_s14 = smov 3  }
   0x2   :  { %s4143_s9 = sld [smem:[%s4856_s0 + %s4071_s6]]   ;;  %s4074_s18 = smov 4  }
   0x3   :  { %s4148_s13 = sld [smem:[%s4856_s0 + %s4072_s10]]   ;;  %s4075_s22 = smov 5  }
   0x4   :  { %s4153_s17 = sld [smem:[%s4856_s0 + %s4073_s14]]   ;;  %s4076_s26 = smov 6  }
   0x5   :  { %s4158_s21 = sld [smem:[%s4856_s0 + %s4074_s18]]   ;;  %s4077_s30 = smov 7  }
   0x6   :  { %s4163_s25 = sld [smem:[%s4856_s0 + %s4075_s22]]   ;;  %s4078_s4 = smov 8  }
   0x7   :  { %4866 = sst [smem:[#allocation36_spill]] %s4138_s5  ;;  %s4079_s10 = smov 9  }
   0x8   :  { %s4168_s29 = sld [smem:[%s4856_s0 + %s4076_s26]]   ;;  %s4080_s15 = smov 10  }
   0x9   :  { %s4173_s3 = sld [smem:[%s4856_s0 + %s4077_s30]]   ;;  %s4081_s20 = smov 11  }
   0xa   :  { %4867 = sst [smem:[#allocation37_spill]] %s4153_s17  ;;  %s4082_s26 = smov 12  }
   0xb   :  { %s4178_s8 = sld [smem:[%s4856_s0 + %s4078_s4]]   ;;  %s4083_s1 = smov 13  }
   0xc   :  { %s4183_s14 = sld [smem:[%s4856_s0 + %s4079_s10]]   ;;  %s4084_s7 = smov 14  }
   0xd   :  { %s4188_s19 = sld [smem:[%s4856_s0 + %s4080_s15]]   ;;  %s4085_s15 = smov 15  }
   0xe   :  { %4868 = sst [smem:[#allocation38_spill]] %s4168_s29  ;;  %s4086_s22 = smov 16  }
   0xf   :  { %s4193_s24 = sld [smem:[%s4856_s0 + %s4081_s20]]   ;;  %s4087_s28 = smov 17  }
  0x10   :  { %s4198_s30 = sld [smem:[%s4856_s0 + %s4082_s26]]  }
  0x11   :  { %4869 = sst [smem:[#allocation39_spill]] %s4178_s8 }
  0x12   :  { %s4203_s6 = sld [smem:[%s4856_s0 + %s4083_s1]]  }
  0x13   :  { %s4208_s12 = sld [smem:[%s4856_s0 + %s4084_s7]]   ;;  %s4088_s7 = smov 18  }
  0x14   :  { %s4213_s20 = sld [smem:[%s4856_s0 + %s4085_s15]]   ;;  %s4089_s15 = smov 19  }
  0x15   :  { %4870 = sst [smem:[#allocation40_spill]] %s4193_s24 }
  0x16   :  { %4871 = sst [smem:[#allocation41_spill]] %s4198_s30 }
  0x17   :  { %s4218_s27 = sld [smem:[%s4856_s0 + %s4086_s22]]   ;;  %s4090_s22 = smov 20  }
  0x18   :  { %4872 = sst [smem:[#allocation42_spill]] %s4203_s6 }
  0x19   :  { %4873 = sst [smem:[#allocation43_spill]] %s4208_s12 }
  0x1a   :  { %4874 = sst [smem:[#allocation44_spill]] %s4213_s20 }
  0x1b   :  { %s4223_s4 = sld [smem:[%s4856_s0 + %s4087_s28]]   ;;  %s4091_s28 = smov 21  }
  0x1c   :  { %s4228_s12 = sld [smem:[%s4856_s0 + %s4088_s7]]   ;;  %s4092_s7 = smov 22  }
  0x1d   :  { %4875 = sst [smem:[#allocation45_spill]] %s4218_s27 }
  0x1e   :  { %s4233_s20 = sld [smem:[%s4856_s0 + %s4089_s15]]   ;;  %s4093_s15 = smov 23  }
  0x1f   :  { %s4238_s6 = sld [smem:[%s4856_s0 + %s4090_s22]]   ;;  %s4094_s22 = smov 24  }
  0x21   :  { %4876 = sst [smem:[#allocation46_spill]] %s4223_s4 }
  0x22   :  { %4877 = sst [smem:[#allocation47_spill]] %s4228_s12 }
  0x23   :  { %s4243_s4 = sld [smem:[%s4856_s0 + %s4091_s28]]   ;;  %s4095_s28 = smov 25  }
  0x24   :  { %4878 = sst [smem:[#allocation48_spill]] %s4233_s20 }
  0x25   :  { %4879 = sst [smem:[#allocation49_spill]] %s4238_s6 }
  0x26   :  { %s4248_s12 = sld [smem:[%s4856_s0 + %s4092_s7]]   ;;  %s4096_s7 = smov 26  }
  0x27   :  { %s4253_s20 = sld [smem:[%s4856_s0 + %s4093_s15]]   ;;  %s4097_s15 = smov 27  }
  0x28   :  { %s4258_s6 = sld [smem:[%s4856_s0 + %s4094_s22]]   ;;  %s4098_s22 = smov 28  }
  0x29   :  { %4880 = sst [smem:[#allocation50_spill]] %s4243_s4 }
  0x2a   :  { %s4263_s4 = sld [smem:[%s4856_s0 + %s4095_s28]]   ;;  %s4099_s28 = smov 29  }
  0x2b   :  { %s4268_s27 = sld [smem:[%s4856_s0 + %s4096_s7]]   ;;  %s4100_s7 = smov 30  }
  0x2c   :  { %s4283_s30 = sld [smem:[%s4856_s0 + %s4099_s28]]   ;;  %s4103_s28 = smov 33  }
  0x2d   :  { %4881 = sst [smem:[#allocation51_spill]] %s4253_s20 }
  0x2e   :  { %4882 = sst [smem:[#allocation52_spill]] %s4258_s6 }
  0x2f   :  { %s4273_s20 = sld [smem:[%s4856_s0 + %s4097_s15]]   ;;  %s4101_s15 = smov 31  }
  0x30   :  { %s4278_s6 = sld [smem:[%s4856_s0 + %s4098_s22]]   ;;  %s4102_s22 = smov 32  }
  0x31   :  { %s4288_s8 = sld [smem:[%s4856_s0 + %s4100_s7]]   ;;  %s4104_s7 = smov 34  }
  0x32   :  { %s4298_s24 = sld [smem:[%s4856_s0 + %s4102_s22]]   ;;  %s4106_s22 = smov 36  }
  0x33   :  { %s4303_s17 = sld [smem:[%s4856_s0 + %s4103_s28]]   ;;  %s4107_s28 = smov 37  }
  0x34   :  { %s4318_s5 = sld [smem:[%s4856_s0 + %s4106_s22]]  }
  0x35   :  { %4883 = sst [smem:[#allocation53_spill]] %s4273_s20 }
  0x36   :  { %s4293_s20 = sld [smem:[%s4856_s0 + %s4101_s15]]   ;;  %s4105_s15 = smov 35  }
  0x37   :  { %4884 = sst [smem:[#allocation54_spill]] %s4288_s8 }
  0x38   :  { %s4308_s8 = sld [smem:[%s4856_s0 + %s4104_s7]]  }
  0x39   :  { %4885 = sst [smem:[#allocation55_spill]] %s4303_s17 }
  0x3a   :  { %s4313_s29 = sld [smem:[%s4856_s0 + %s4105_s15]]  }
  0x3b   :  { %s4323_s17 = sld [smem:[%s4856_s0 + %s4107_s28]]  }
  0x3c   :  { %80 = vsyncpa [#allocation3], 0 }
  0x3d   :  { %81 = vsyncpa [#allocation5], 0 }
  0x3e   :  { %82 = vsyncpa [#allocation8], 0 }
  0x3f   :  { %83 = vsyncpa [#allocation11], 0 }
  0x40   :  { %84 = vsyncpa [#allocation14], 0 }
  0x41   :  { %85 = vsyncpa [#allocation17], 0 }
  0x42   :  { %86 = vsyncpa [#allocation20], 0 }
  0x43   :  { %87 = vsyncpa [#allocation23], 0 }
  0x44   :  { %88 = vsyncpa [#allocation26], 0  ;;  %s108_s7 = sshll.u32 %s4148_s13, 4  ;;  %s4108_s10 = smov [#allocation4]   ;;  %s109_s7 = int_to_ptr.hbm [resolvable:$true] %s108_s7 }
  0x45   :  { %s110_s11 = sshll.u32 %s4108_s10, 4  ;;  %s136_s0 = sshll.u32 %s4163_s25, 4  ;;  %s111_s11 = int_to_ptr.vmem [resolvable:$true] %s110_s11  ;;  %s137_s0 = int_to_ptr.hbm [resolvable:$true] %s136_s0 }
  0x46   :  { %s3669_s15 = sshra.s32 %s109_s7, 4  ;;  %s3673_s18 = scalar_lea.hbm %s4148_s13, 512  ;;  %s3670_s15 = int_to_ptr.hbm [resolvable:$true] %s3669_s15 }
  0x47   :  { %s3671_s16 = scalar_lea.hbm %s3670_s15, 512  ;;  %p3674_p1 = scmp.lt.s32.totalorder %s3670_s15, %s4148_s13 }
  0x48   :  { %p3672_p0 = scmp.ne.s32.totalorder %s3670_s15, %s3671_s16  ;;  %p3675_p2 = scmp.lt.s32.totalorder %s3673_s18, %s3671_s16 }
  0x4a   :  { %p3676_p3 = por %p3675_p2, %p3674_p1 }
  0x4c   :  { %p3677_p4 = pnand %p3676_p3, %p3672_p0 }
  0x4e   :  { %3680 = shalt.err (!%p3677_p4)
}
  0x4f   :  { %s4109_s22 = smov 256   ;;  %s4110_s23 = smov 16  }
  0x50   :  { %116 = dma.hbm_to_vmem [thread:$0]  %s109_s7, 8192, %s111_s11, [#allocation5], %s4109_s22, %s4109_s22, %s4110_s23  }
  0x51   :  { %s4111_s26 = smov [#allocation7]   ;;  %s167_s1 = sshll.u32 %s4183_s14, 4  ;;  %s168_s1 = int_to_ptr.hbm [resolvable:$true] %s167_s1 }
  0x52   :  { %s138_s28 = sshll.u32 %s4111_s26, 4  ;;  %s3693_s13 = sshra.s32 %s137_s0, 4  ;;  %s139_s28 = int_to_ptr.vmem [resolvable:$true] %s138_s28  ;;  %s3694_s13 = int_to_ptr.hbm [resolvable:$true] %s3693_s13 }
  0x53   :  { %s3695_s2 = scalar_lea.hbm %s3694_s13, 512  ;;  %s3697_s10 = scalar_lea.hbm %s4163_s25, 512 }
  0x54   :  { %p3696_p5 = scmp.ne.s32.totalorder %s3694_s13, %s3695_s2  ;;  %p3698_p6 = scmp.lt.s32.totalorder %s3694_s13, %s4163_s25 }
  0x55   :  { %p3699_p7 = scmp.lt.s32.totalorder %s3697_s10, %s3695_s2 }
  0x57   :  { %p3700_p8 = por %p3699_p7, %p3698_p6 }
  0x59   :  { %p3701_p9 = pnand %p3700_p8, %p3696_p5 }
  0x5b   :  { %3704 = shalt.err (!%p3701_p9)
}
  0x5c   :  { %144 = dma.hbm_to_vmem [thread:$0]  %s137_s0, 8192, %s139_s28, [#allocation8], %s4109_s22, %s4109_s22, %s4110_s23  }
  0x5d   :  { %s212_s7 = sshll.u32 %s4248_s12, 4  ;;  %s4112_s11 = smov [#allocation10]   ;;  %s4339_s7 = int_to_ptr.hbm [resolvable:$true] %s212_s7 }
  0x5e   :  { %s169_s15 = sshll.u32 %s4112_s11, 4  ;;  %s3717_s16 = sshra.s32 %s168_s1, 4  ;;  %s170_s15 = int_to_ptr.vmem [resolvable:$true] %s169_s15  ;;  %s3718_s16 = int_to_ptr.hbm [resolvable:$true] %s3717_s16 }
  0x5f   :  { %s3719_s25 = scalar_lea.hbm %s3718_s16, 1  ;;  %s3721_s18 = scalar_lea.hbm %s4183_s14, 1 }
  0x60   :  { %p3720_p10 = scmp.ne.s32.totalorder %s3718_s16, %s3719_s25  ;;  %p3722_p11 = scmp.lt.s32.totalorder %s3718_s16, %s4183_s14 }
  0x61   :  { %p3723_p12 = scmp.lt.s32.totalorder %s3721_s18, %s3719_s25 }
  0x63   :  { %p3724_p13 = por %p3723_p12, %p3722_p11 }
  0x65   :  { %p3725_p0 = pnand %p3724_p13, %p3720_p10 }
  0x67   :  { %3728 = shalt.err (!%p3725_p0)
}
  0x68   :  { %172 = dma.hbm_to_vmem [thread:$0]  %s168_s1, 16, %s170_s15, [#allocation11]  }
  0x69   :  { %s4113_s0 = smov [#allocation13]   ;;  %s3741_s28 = sshra.s32 %s4339_s7, 4  ;;  %s3742_s28 = int_to_ptr.hbm [resolvable:$true] %s3741_s28 }
  0x6a   :  { %s214_s26 = sshll.u32 %s4113_s0, 4  ;;  %s3743_s13 = scalar_lea.hbm %s3742_s28, 64  ;;  %s215_s26 = int_to_ptr.vmem [resolvable:$true] %s214_s26 }
  0x6b   :  { %p3744_p1 = scmp.ne.s32.totalorder %s3742_s28, %s3743_s13  ;;  %s3745_s2 = scalar_lea.hbm %s4248_s12, 64 }
  0x6c   :  { %p3746_p2 = scmp.lt.s32.totalorder %s3742_s28, %s4248_s12  ;;  %p3747_p3 = scmp.lt.s32.totalorder %s3745_s2, %s3743_s13 }
  0x6e   :  { %p3748_p4 = por %p3747_p3, %p3746_p2 }
  0x70   :  { %p3749_p5 = pnand %p3748_p4, %p3744_p1 }
  0x72   :  { %3752 = shalt.err (!%p3749_p5)
}
  0x73   :  { %s4114_s14 = smov 128   ;;  %s4115_s1 = smov 8  }
  0x74   :  { %220 = dma.hbm_to_vmem [thread:$0]  %s4339_s7, 1024, %s215_s26, [#allocation14], %s4114_s14, %s4114_s14, %s4115_s1  }
  0x75   :  { %s242_s10 = sshll.u32 %s4268_s27, 4  ;;  %s4116_s11 = smov [#allocation16]   ;;  %s243_s10 = int_to_ptr.hbm [resolvable:$true] %s242_s10 }
  0x76   :  { %s244_s15 = sshll.u32 %s4116_s11, 4  ;;  %s270_s12 = sshll.u32 %s4283_s30, 4  ;;  %s245_s15 = int_to_ptr.vmem [resolvable:$true] %s244_s15  ;;  %s271_s12 = int_to_ptr.hbm [resolvable:$true] %s270_s12 }
  0x77   :  { %s3765_s16 = sshra.s32 %s243_s10, 4  ;;  %s3769_s18 = scalar_lea.hbm %s4268_s27, 32  ;;  %s3766_s16 = int_to_ptr.hbm [resolvable:$true] %s3765_s16 }
  0x78   :  { %s3767_s25 = scalar_lea.hbm %s3766_s16, 32  ;;  %p3770_p7 = scmp.lt.s32.totalorder %s3766_s16, %s4268_s27 }
  0x79   :  { %p3768_p6 = scmp.ne.s32.totalorder %s3766_s16, %s3767_s25  ;;  %p3771_p8 = scmp.lt.s32.totalorder %s3769_s18, %s3767_s25 }
  0x7b   :  { %p3772_p9 = por %p3771_p8, %p3770_p7 }
  0x7d   :  { %p3773_p10 = pnand %p3772_p9, %p3768_p6 }
  0x7f   :  { %3776 = shalt.err (!%p3773_p10)
}
  0x80   :  { %250 = dma.hbm_to_vmem [thread:$0]  %s243_s10, 512, %s245_s15, [#allocation17], %s4114_s14, %s4114_s14, %s4115_s1  }
  0x81   :  { %s4117_s7 = smov [#allocation19]   ;;  %s298_s26 = sshll.u32 %s4298_s24, 4  ;;  %s4358_s26 = int_to_ptr.hbm [resolvable:$true] %s298_s26 }
  0x82   :  { %s272_s0 = sshll.u32 %s4117_s7, 4  ;;  %s3789_s28 = sshra.s32 %s271_s12, 4  ;;  %s273_s0 = int_to_ptr.vmem [resolvable:$true] %s272_s0  ;;  %s3790_s28 = int_to_ptr.hbm [resolvable:$true] %s3789_s28 }
  0x83   :  { %s3791_s27 = scalar_lea.hbm %s3790_s28, 64  ;;  %s3793_s13 = scalar_lea.hbm %s4283_s30, 64 }
  0x84   :  { %p3792_p11 = scmp.ne.s32.totalorder %s3790_s28, %s3791_s27  ;;  %p3794_p12 = scmp.lt.s32.totalorder %s3790_s28, %s4283_s30 }
  0x85   :  { %p3795_p13 = scmp.lt.s32.totalorder %s3793_s13, %s3791_s27 }
  0x87   :  { %p3796_p0 = por %p3795_p13, %p3794_p12 }
  0x89   :  { %p3797_p1 = pnand %p3796_p0, %p3792_p11 }
  0x8b   :  { %3800 = shalt.err (!%p3797_p1)
}
  0x8c   :  { %278 = dma.hbm_to_vmem [thread:$0]  %s271_s12, 1024, %s273_s0, [#allocation20], %s4114_s14, %s4114_s14, %s4115_s1  }
  0x8d   :  { %s95_s2 = sshll.u32 %s4143_s9, 4  ;;  %s4118_s10 = smov [#allocation22]   ;;  %s4366_s2 = int_to_ptr.hbm [resolvable:$true] %s95_s2 }
  0x8e   :  { %s300_s11 = sshll.u32 %s4118_s10, 4  ;;  %s3813_s15 = sshra.s32 %s4358_s26, 4  ;;  %s301_s11 = int_to_ptr.vmem [resolvable:$true] %s300_s11  ;;  %s3814_s15 = int_to_ptr.hbm [resolvable:$true] %s3813_s15 }
  0x8f   :  { %s3815_s30 = scalar_lea.hbm %s3814_s15, 256  ;;  %s3817_s16 = scalar_lea.hbm %s4298_s24, 256 }
  0x90   :  { %p3816_p2 = scmp.ne.s32.totalorder %s3814_s15, %s3815_s30  ;;  %p3818_p3 = scmp.lt.s32.totalorder %s3814_s15, %s4298_s24 }
  0x91   :  { %p3819_p4 = scmp.lt.s32.totalorder %s3817_s16, %s3815_s30 }
  0x93   :  { %p3820_p5 = por %p3819_p4, %p3818_p3 }
  0x95   :  { %p3821_p6 = pnand %p3820_p5, %p3816_p2 }
  0x97   :  { %3824 = shalt.err (!%p3821_p6)
}
  0x98   :  { %306 = dma.hbm_to_vmem [thread:$0]  %s4358_s26, 4096, %s301_s11, [#allocation23], %s4109_s22, %s4109_s22, %s4110_s23  }
  0x99   :  { %s4119_s12 = smov [#allocation2]   ;;  %s123_s18 = sshll.u32 %s4158_s21, 4  ;;  %s4376_s18 = int_to_ptr.hbm [resolvable:$true] %s123_s18 }
  0x9a   :  { %s97_s25 = sshll.u32 %s4119_s12, 4  ;;  %s3837_s24 = sshra.s32 %s4366_s2, 4  ;;  %s98_s25 = int_to_ptr.vmem [resolvable:$true] %s97_s25  ;;  %s3838_s24 = int_to_ptr.hbm [resolvable:$true] %s3837_s24 }
  0x9b   :  { %s3839_s7 = scalar_lea.hbm %s3838_s24, 1024  ;;  %s3841_s0 = scalar_lea.hbm %s4143_s9, 1024 }
  0x9c   :  { %p3840_p7 = scmp.ne.s32.totalorder %s3838_s24, %s3839_s7  ;;  %p3842_p8 = scmp.lt.s32.totalorder %s3838_s24, %s4143_s9 }
  0x9d   :  { %p3843_p9 = scmp.lt.s32.totalorder %s3841_s0, %s3839_s7 }
  0x9f   :  { %p3844_p10 = por %p3843_p9, %p3842_p8 }
  0xa1   :  { %p3845_p11 = pnand %p3844_p10, %p3840_p7 }
  0xa3   :  { %3848 = shalt.err (!%p3845_p11)
}
  0xa4   :  { %103 = dma.hbm_to_vmem [thread:$0]  %s4366_s2, 16384, %s98_s25, [#allocation3], %s4109_s22, %s4109_s22, %s4110_s23  }
  0xa5   :  { %s151_s26 = sshll.u32 %s4173_s3, 4  ;;  %s4120_s28 = smov [#allocation6]   ;;  %s4386_s26 = int_to_ptr.hbm [resolvable:$true] %s151_s26 }
  0xa6   :  { %s125_s27 = sshll.u32 %s4120_s28, 4  ;;  %s3861_s9 = sshra.s32 %s4376_s18, 4  ;;  %s126_s27 = int_to_ptr.vmem [resolvable:$true] %s125_s27  ;;  %s3862_s9 = int_to_ptr.hbm [resolvable:$true] %s3861_s9 }
  0xa7   :  { %s3863_s13 = scalar_lea.hbm %s3862_s9, 1024  ;;  %s3865_s10 = scalar_lea.hbm %s4158_s21, 1024 }
  0xa8   :  { %p3864_p12 = scmp.ne.s32.totalorder %s3862_s9, %s3863_s13  ;;  %p3866_p13 = scmp.lt.s32.totalorder %s3862_s9, %s4158_s21 }
  0xa9   :  { %p3867_p0 = scmp.lt.s32.totalorder %s3865_s10, %s3863_s13 }
  0xab   :  { %p3868_p1 = por %p3867_p0, %p3866_p13 }
  0xad   :  { %p3869_p2 = pnand %p3868_p1, %p3864_p12 }
  0xaf   :  { %3872 = shalt.err (!%p3869_p2)
}
  0xb0   :  { %131 = dma.hbm_to_vmem [thread:$0]  %s4376_s18, 16384, %s126_s27, [#allocation5], %s4109_s22, %s4109_s22, %s4110_s23  }
  0xb1   :  { %s4121_s2 = smov [#allocation9]   ;;  %s177_s15 = sshll.u32 %s4188_s19, 4  ;;  %s4396_s15 = int_to_ptr.hbm [resolvable:$true] %s177_s15 }
  0xb2   :  { %s153_s11 = sshll.u32 %s4121_s2, 4  ;;  %s3885_s21 = sshra.s32 %s4386_s26, 4  ;;  %s154_s11 = int_to_ptr.vmem [resolvable:$true] %s153_s11  ;;  %s3886_s21 = int_to_ptr.hbm [resolvable:$true] %s3885_s21 }
  0xb3   :  { %s3887_s30 = scalar_lea.hbm %s3886_s21, 512  ;;  %s3889_s16 = scalar_lea.hbm %s4173_s3, 512 }
  0xb4   :  { %p3888_p3 = scmp.ne.s32.totalorder %s3886_s21, %s3887_s30  ;;  %p3890_p4 = scmp.lt.s32.totalorder %s3886_s21, %s4173_s3 }
  0xb5   :  { %p3891_p5 = scmp.lt.s32.totalorder %s3889_s16, %s3887_s30 }
  0xb7   :  { %p3892_p6 = por %p3891_p5, %p3890_p4 }
  0xb9   :  { %p3893_p7 = pnand %p3892_p6, %p3888_p3 }
  0xbb   :  { %3896 = shalt.err (!%p3893_p7)
}
  0xbc   :  { %159 = dma.hbm_to_vmem [thread:$0]  %s4386_s26, 8192, %s154_s11, [#allocation8], %s4109_s22, %s4109_s22, %s4110_s23  }
  0xbd   :  { %s229_s12 = sshll.u32 %s4263_s4, 4  ;;  %s4122_s25 = smov [#allocation12]   ;;  %s4406_s12 = int_to_ptr.hbm [resolvable:$true] %s229_s12 }
  0xbe   :  { %s179_s18 = sshll.u32 %s4122_s25, 4  ;;  %s3909_s3 = sshra.s32 %s4396_s15, 4  ;;  %s180_s18 = int_to_ptr.vmem [resolvable:$true] %s179_s18  ;;  %s3910_s3 = int_to_ptr.hbm [resolvable:$true] %s3909_s3 }
  0xbf   :  { %s3911_s24 = scalar_lea.hbm %s3910_s3, 512  ;;  %s3913_s7 = scalar_lea.hbm %s4188_s19, 512 }
  0xc0   :  { %p3912_p8 = scmp.ne.s32.totalorder %s3910_s3, %s3911_s24  ;;  %p3914_p9 = scmp.lt.s32.totalorder %s3910_s3, %s4188_s19 }
  0xc1   :  { %p3915_p10 = scmp.lt.s32.totalorder %s3913_s7, %s3911_s24 }
  0xc3   :  { %p3916_p11 = por %p3915_p10, %p3914_p9 }
  0xc5   :  { %p3917_p12 = pnand %p3916_p11, %p3912_p8 }
  0xc7   :  { %3920 = shalt.err (!%p3917_p12)
}
  0xc8   :  { %185 = dma.hbm_to_vmem [thread:$0]  %s4396_s15, 8192, %s180_s18, [#allocation11], %s4109_s22, %s4109_s22, %s4110_s23  }
  0xc9   :  { %s4123_s0 = smov [#allocation15]   ;;  %s257_s28 = sshll.u32 %s4278_s6, 4  ;;  %s4416_s28 = int_to_ptr.hbm [resolvable:$true] %s257_s28 }
  0xca   :  { %s231_s26 = sshll.u32 %s4123_s0, 4  ;;  %s3933_s19 = sshra.s32 %s4406_s12, 4  ;;  %s232_s26 = int_to_ptr.vmem [resolvable:$true] %s231_s26  ;;  %s3934_s19 = int_to_ptr.hbm [resolvable:$true] %s3933_s19 }
  0xcb   :  { %s3935_s27 = scalar_lea.hbm %s3934_s19, 32  ;;  %s3937_s9 = scalar_lea.hbm %s4263_s4, 32 }
  0xcc   :  { %p3936_p13 = scmp.ne.s32.totalorder %s3934_s19, %s3935_s27  ;;  %p3938_p0 = scmp.lt.s32.totalorder %s3934_s19, %s4263_s4 }
  0xcd   :  { %p3939_p1 = scmp.lt.s32.totalorder %s3937_s9, %s3935_s27 }
  0xcf   :  { %p3940_p2 = por %p3939_p1, %p3938_p0 }
  0xd1   :  { %p3941_p3 = pnand %p3940_p2, %p3936_p13 }
  0xd3   :  { %3944 = shalt.err (!%p3941_p3)
}
  0xd4   :  { %237 = dma.hbm_to_vmem [thread:$0]  %s4406_s12, 512, %s232_s26, [#allocation14], %s4114_s14, %s4114_s14, %s4115_s1  }
  0xd5   :  { %s285_s13 = sshll.u32 %s4293_s20, 4  ;;  %s4124_s10 = smov [#allocation18]   ;;  %s4426_s13 = int_to_ptr.hbm [resolvable:$true] %s285_s13 }
  0xd6   :  { %s259_s2 = sshll.u32 %s4124_s10, 4  ;;  %s3957_s4 = sshra.s32 %s4416_s28, 4  ;;  %s260_s2 = int_to_ptr.vmem [resolvable:$true] %s259_s2  ;;  %s3958_s4 = int_to_ptr.hbm [resolvable:$true] %s3957_s4 }
  0xd7   :  { %s3959_s11 = scalar_lea.hbm %s3958_s4, 64  ;;  %s3961_s15 = scalar_lea.hbm %s4278_s6, 64 }
  0xd8   :  { %p3960_p4 = scmp.ne.s32.totalorder %s3958_s4, %s3959_s11  ;;  %p3962_p5 = scmp.lt.s32.totalorder %s3958_s4, %s4278_s6 }
  0xd9   :  { %p3963_p6 = scmp.lt.s32.totalorder %s3961_s15, %s3959_s11 }
  0xdb   :  { %p3964_p7 = por %p3963_p6, %p3962_p5 }
  0xdd   :  { %p3965_p8 = pnand %p3964_p7, %p3960_p4 }
  0xdf   :  { %3968 = shalt.err (!%p3965_p8)
}
  0xe0   :  { %265 = dma.hbm_to_vmem [thread:$0]  %s4416_s28, 1024, %s260_s2, [#allocation17], %s4114_s14, %s4114_s14, %s4115_s1  }
  0xe1   :  { %s4125_s21 = smov [#allocation21]   ;;  %s313_s16 = sshll.u32 %s4308_s8, 4  ;;  %s4436_s16 = int_to_ptr.hbm [resolvable:$true] %s313_s16 }
  0xe2   :  { %s287_s30 = sshll.u32 %s4125_s21, 4  ;;  %s3981_s6 = sshra.s32 %s4426_s13, 4  ;;  %s288_s30 = int_to_ptr.vmem [resolvable:$true] %s287_s30  ;;  %s3982_s6 = int_to_ptr.hbm [resolvable:$true] %s3981_s6 }
  0xe3   :  { %s3983_s12 = scalar_lea.hbm %s3982_s6, 256  ;;  %s3985_s25 = scalar_lea.hbm %s4293_s20, 256 }
  0xe4   :  { %p3984_p9 = scmp.ne.s32.totalorder %s3982_s6, %s3983_s12  ;;  %p3986_p10 = scmp.lt.s32.totalorder %s3982_s6, %s4293_s20 }
  0xe5   :  { %p3987_p11 = scmp.lt.s32.totalorder %s3985_s25, %s3983_s12 }
  0xe7   :  { %p3988_p12 = por %p3987_p11, %p3986_p10 }
  0xe9   :  { %p3989_p13 = pnand %p3988_p12, %p3984_p9 }
  0xeb   :  { %3992 = shalt.err (!%p3989_p13)
}
  0xec   :  { %293 = dma.hbm_to_vmem [thread:$0]  %s4426_s13, 4096, %s288_s30, [#allocation20], %s4109_s22, %s4109_s22, %s4110_s23  }
  0xed   :  { %s4126_s14 = smov [#allocation24]   ;;  %s326_s18 = sshll.u32 %s4313_s29, 4  ;;  %s327_s18 = int_to_ptr.hbm [resolvable:$true] %s326_s18 }
  0xee   :  { %s315_s1 = sshll.u32 %s4126_s14, 4  ;;  %s4005_s3 = sshra.s32 %s4436_s16, 4  ;;  %s316_s1 = int_to_ptr.vmem [resolvable:$true] %s315_s1  ;;  %s4006_s3 = int_to_ptr.hbm [resolvable:$true] %s4005_s3 }
  0xef   :  { %s4007_s20 = scalar_lea.hbm %s4006_s3, 1024  ;;  %s4009_s24 = scalar_lea.hbm %s4308_s8, 1024 }
  0xf0   :  { %p4008_p0 = scmp.ne.s32.totalorder %s4006_s3, %s4007_s20  ;;  %p4010_p1 = scmp.lt.s32.totalorder %s4006_s3, %s4308_s8 }
  0xf1   :  { %p4011_p2 = scmp.lt.s32.totalorder %s4009_s24, %s4007_s20 }
  0xf3   :  { %p4012_p3 = por %p4011_p2, %p4010_p1 }
  0xf5   :  { %p4013_p4 = pnand %p4012_p3, %p4008_p0 }
  0xf7   :  { %4016 = shalt.err (!%p4013_p4)
}
  0xf8   :  { %s4127_s7 = smov 512   ;;  %s4128_s0 = smov 32  }
  0xf9   :  { %321 = dma.hbm_to_vmem [thread:$0]  %s4436_s16, 16384, %s316_s1, [#allocation23], %s4127_s7, %s4127_s7, %s4128_s0  }
  0xfa   :  { %s4129_s22 = smov [#allocation25]   ;;  %s4029_s26 = sshra.s32 %s327_s18, 4  ;;  %s4030_s26 = int_to_ptr.hbm [resolvable:$true] %s4029_s26 }
  0xfb   :  { %s328_s23 = sshll.u32 %s4129_s22, 4  ;;  %s4031_s28 = scalar_lea.hbm %s4030_s26, 1024  ;;  %s329_s23 = int_to_ptr.vmem [resolvable:$true] %s328_s23 }
  0xfc   :  { %p4032_p5 = scmp.ne.s32.totalorder %s4030_s26, %s4031_s28  ;;  %s4033_s19 = scalar_lea.hbm %s4313_s29, 1024 }
  0xfd   :  { %p4034_p6 = scmp.lt.s32.totalorder %s4030_s26, %s4313_s29  ;;  %p4035_p7 = scmp.lt.s32.totalorder %s4033_s19, %s4031_s28 }
  0xff   :  { %p4036_p8 = por %p4035_p7, %p4034_p6 }
 0x101   :  { %p4037_p9 = pnand %p4036_p8, %p4032_p5 }
 0x103   :  { %4040 = shalt.err (!%p4037_p9)
}
 0x104   :  { %334 = dma.hbm_to_vmem [thread:$0]  %s327_s18, 16384, %s329_s23, [#allocation26], %s4127_s7, %s4127_s7, %s4128_s0  }
 0x105   :  { %4053 = dma.done.wait [#allocation3], 16384  }
 0x106   :  { %4054 = vsyncadd [#allocation3], 4294950912 }
 0x107   :  { %4055 = dma.done.wait [#allocation5], 24576  }
 0x108   :  { %4056 = vsyncadd [#allocation5], 4294942720 }
 0x109   :  { %4057 = dma.done.wait [#allocation8], 16384  }
 0x10a   :  { %4058 = vsyncadd [#allocation8], 4294950912 }
 0x10b   :  { %4059 = dma.done.wait [#allocation11], 8208  }
 0x10c   :  { %4060 = vsyncadd [#allocation11], 4294959088 }
 0x10d   :  { %4061 = dma.done.wait [#allocation14], 1536  }
 0x10e   :  { %4062 = vsyncadd [#allocation14], 4294965760 }
 0x10f   :  { %4063 = dma.done.wait [#allocation17], 1536  }
 0x110   :  { %4064 = vsyncadd [#allocation17], 4294965760 }
 0x111   :  { %4065 = dma.done.wait [#allocation20], 5120  }
 0x112   :  { %4066 = vsyncadd [#allocation20], 4294962176 }
 0x113   :  { %4067 = dma.done.wait [#allocation23], 20480  }
 0x114   :  { %4068 = vsyncadd [#allocation23], 4294946816 }
 0x115   :  { %4069 = dma.done.wait [#allocation26], 16384  }
 0x116   :  { %4070 = vsyncadd [#allocation26], 4294950912  ;;  %v496_v0 = vld [vmem:[#allocation6 + $0x2f0] sm:$0xff]  ;;  %v494_v1 = vld [vmem:[#allocation6 + $0x2e0] sm:$0xff]  ;;  %s4886_s29 = sld [smem:[#allocation36_spill]]  ;;  %vm850_vm0 = vcmask 1041408  }
 0x117   :  { %v528_v2 = vld [vmem:[#allocation6 + $0x3f0] sm:$0xff]  ;;  %580 = vmatpush.msra.mxu2 %v496_v0  ;;  %v526_v6 = vld [vmem:[#allocation6 + $0x3e0] sm:$0xff]  ;;  %v497_v62 = vld [vmem:[#allocation6 + $0x2f8] sm:$0xff]  ;;  %s4887_s8 = sld [smem:[#allocation38_spill]]  ;;  %vm1996_vm13 = vcmask 517120  }
 0x118   :  { %600 = vmatpush.msra.mxu3 %v528_v2  ;;  %v432_v3 = vld [vmem:[#allocation6 + $0xf0] sm:$0xff]  ;;  %v430_v7 = vld [vmem:[#allocation6 + $0xe0] sm:$0xff]  ;;  %v529_v63 = vld [vmem:[#allocation6 + $0x3f8] sm:$0xff]  ;;  %s4888_s27 = sld [smem:[#allocation37_spill]] }
 0x119   :  { %v464_v4 = vld [vmem:[#allocation6 + $0x1f0] sm:$0xff]  ;;  %540 = vmatpush.msra.mxu0 %v432_v3  ;;  %v462_v8 = vld [vmem:[#allocation6 + $0x1e0] sm:$0xff]  ;;  %581 = vmatpush.msra.mxu2 %v494_v1  ;;  %v495_v2 = vld [vmem:[#allocation6 + $0x2e8] sm:$0xff]  ;;  %s4889_s18 = sld [smem:[#allocation40_spill]] }
 0x11a   :  { %v492_v5 = vld [vmem:[#allocation6 + $0x2d0] sm:$0xff]  ;;  %560 = vmatpush.msra.mxu1 %v464_v4  ;;  %601 = vmatpush.msra.mxu3 %v526_v6  ;;  %v490_v11 = vld [vmem:[#allocation6 + $0x2c0] sm:$0xff]  ;;  %v433_v3 = vld [vmem:[#allocation6 + $0xf8] sm:$0xff]  ;;  %s4890_s3 = sld [smem:[#allocation39_spill]] }
 0x11b   :  { %v524_v9 = vld [vmem:[#allocation6 + $0x3d0] sm:$0xff]  ;;  %541 = vmatpush.msra.mxu0 %v430_v7  ;;  %v522_v13 = vld [vmem:[#allocation6 + $0x3c0] sm:$0xff]  ;;  %582 = vmatpush.msra.mxu2 %v492_v5  ;;  %v465_v4 = vld [vmem:[#allocation6 + $0x1f8] sm:$0xff]  ;;  %s4891_s24 = sld [smem:[#allocation41_spill]] }
 0x11c   :  { %v428_v10 = vld [vmem:[#allocation6 + $0xd0] sm:$0xff]  ;;  %561 = vmatpush.msra.mxu1 %v462_v8  ;;  %602 = vmatpush.msra.mxu3 %v524_v9  ;;  %v426_v14 = vld [vmem:[#allocation6 + $0xc0] sm:$0xff]  ;;  %v527_v5 = vld [vmem:[#allocation6 + $0x3e8] sm:$0xff] }
 0x11d   :  { %v460_v12 = vld [vmem:[#allocation6 + $0x1d0] sm:$0xff]  ;;  %v458_v15 = vld [vmem:[#allocation6 + $0x1c0] sm:$0xff]  ;;  %542 = vmatpush.msra.mxu0 %v428_v10  ;;  %583 = vmatpush.msra.mxu2 %v490_v11  ;;  %v493_v6 = vld [vmem:[#allocation6 + $0x2d8] sm:$0xff] }
 0x11e   :  { %562 = vmatpush.msra.mxu1 %v460_v12  ;;  %v488_v16 = vld [vmem:[#allocation6 + $0x2b0] sm:$0xff]  ;;  %603 = vmatpush.msra.mxu3 %v522_v13  ;;  %v486_v20 = vld [vmem:[#allocation6 + $0x2a0] sm:$0xff]  ;;  %v431_v7 = vld [vmem:[#allocation6 + $0xe8] sm:$0xff] }
 0x11f   :  { %v520_v17 = vld [vmem:[#allocation6 + $0x3b0] sm:$0xff]  ;;  %543 = vmatpush.msra.mxu0 %v426_v14  ;;  %v518_v21 = vld [vmem:[#allocation6 + $0x3a0] sm:$0xff]  ;;  %584 = vmatpush.msra.mxu2 %v488_v16  ;;  %v463_v8 = vld [vmem:[#allocation6 + $0x1e8] sm:$0xff] }
 0x120   :  { %v424_v18 = vld [vmem:[#allocation6 + $0xb0] sm:$0xff]  ;;  %563 = vmatpush.msra.mxu1 %v458_v15  ;;  %604 = vmatpush.msra.mxu3 %v520_v17  ;;  %v422_v22 = vld [vmem:[#allocation6 + $0xa0] sm:$0xff]  ;;  %v525_v9 = vld [vmem:[#allocation6 + $0x3d8] sm:$0xff] }
 0x121   :  { %v456_v19 = vld [vmem:[#allocation6 + $0x1b0] sm:$0xff]  ;;  %v454_v23 = vld [vmem:[#allocation6 + $0x1a0] sm:$0xff]  ;;  %544 = vmatpush.msra.mxu0 %v424_v18  ;;  %585 = vmatpush.msra.mxu2 %v486_v20  ;;  %v491_v10 = vld [vmem:[#allocation6 + $0x2c8] sm:$0xff] }
 0x122   :  { %564 = vmatpush.msra.mxu1 %v456_v19  ;;  %v484_v24 = vld [vmem:[#allocation6 + $0x290] sm:$0xff]  ;;  %605 = vmatpush.msra.mxu3 %v518_v21  ;;  %v482_v28 = vld [vmem:[#allocation6 + $0x280] sm:$0xff]  ;;  %v429_v11 = vld [vmem:[#allocation6 + $0xd8] sm:$0xff] }
 0x123   :  { %v516_v25 = vld [vmem:[#allocation6 + $0x390] sm:$0xff]  ;;  %545 = vmatpush.msra.mxu0 %v422_v22  ;;  %v514_v29 = vld [vmem:[#allocation6 + $0x380] sm:$0xff]  ;;  %586 = vmatpush.msra.mxu2 %v484_v24  ;;  %v401_v12 = vld [vmem:[%s4886_s29] sm:$0xff] }
 0x124   :  { %v420_v26 = vld [vmem:[#allocation6 + $0x90] sm:$0xff]  ;;  %565 = vmatpush.msra.mxu1 %v454_v23  ;;  %606 = vmatpush.msra.mxu3 %v516_v25  ;;  %v418_v30 = vld [vmem:[#allocation6 + $0x80] sm:$0xff]  ;;  %v461_v13 = vld [vmem:[#allocation6 + $0x1d8] sm:$0xff]  ;;  %531 = vst [vmem:[#allocation1] ss:$4 sm:$0xff] %v401_v12 }
 0x125   :  { %v452_v27 = vld [vmem:[#allocation6 + $0x190] sm:$0xff]  ;;  %v450_v31 = vld [vmem:[#allocation6 + $0x180] sm:$0xff]  ;;  %546 = vmatpush.msra.mxu0 %v420_v26  ;;  %587 = vmatpush.msra.mxu2 %v482_v28  ;;  %v523_v14 = vld [vmem:[#allocation6 + $0x3c8] sm:$0xff] }
 0x126   :  { %566 = vmatpush.msra.mxu1 %v452_v27  ;;  %v480_v32 = vld [vmem:[#allocation6 + $0x270] sm:$0xff]  ;;  %607 = vmatpush.msra.mxu3 %v514_v29  ;;  %v478_v36 = vld [vmem:[#allocation6 + $0x260] sm:$0xff]  ;;  %v489_v15 = vld [vmem:[#allocation6 + $0x2b8] sm:$0xff] }
 0x127   :  { %v512_v33 = vld [vmem:[#allocation6 + $0x370] sm:$0xff]  ;;  %547 = vmatpush.msra.mxu0 %v418_v30  ;;  %v510_v37 = vld [vmem:[#allocation6 + $0x360] sm:$0xff]  ;;  %588 = vmatpush.msra.mxu2 %v480_v32  ;;  %v427_v16 = vld [vmem:[#allocation6 + $0xc8] sm:$0xff] }
 0x128   :  { %v416_v34 = vld [vmem:[#allocation6 + $0x70] sm:$0xff]  ;;  %567 = vmatpush.msra.mxu1 %v450_v31  ;;  %608 = vmatpush.msra.mxu3 %v512_v33  ;;  %v414_v38 = vld [vmem:[#allocation6 + $0x60] sm:$0xff]  ;;  %v459_v17 = vld [vmem:[#allocation6 + $0x1c8] sm:$0xff] }
 0x129   :  { %v448_v35 = vld [vmem:[#allocation6 + $0x170] sm:$0xff]  ;;  %v446_v39 = vld [vmem:[#allocation6 + $0x160] sm:$0xff]  ;;  %548 = vmatpush.msra.mxu0 %v416_v34  ;;  %589 = vmatpush.msra.mxu2 %v478_v36  ;;  %v521_v18 = vld [vmem:[#allocation6 + $0x3b8] sm:$0xff] }
 0x12a   :  { %568 = vmatpush.msra.mxu1 %v448_v35  ;;  %v476_v40 = vld [vmem:[#allocation6 + $0x250] sm:$0xff]  ;;  %609 = vmatpush.msra.mxu3 %v510_v37  ;;  %v474_v44 = vld [vmem:[#allocation6 + $0x240] sm:$0xff]  ;;  %v487_v19 = vld [vmem:[#allocation6 + $0x2a8] sm:$0xff] }
 0x12b   :  { %v508_v41 = vld [vmem:[#allocation6 + $0x350] sm:$0xff]  ;;  %549 = vmatpush.msra.mxu0 %v414_v38  ;;  %v506_v45 = vld [vmem:[#allocation6 + $0x340] sm:$0xff]  ;;  %590 = vmatpush.msra.mxu2 %v476_v40  ;;  %v425_v20 = vld [vmem:[#allocation6 + $0xb8] sm:$0xff] }
 0x12c   :  { %v412_v42 = vld [vmem:[#allocation6 + $0x50] sm:$0xff]  ;;  %569 = vmatpush.msra.mxu1 %v446_v39  ;;  %610 = vmatpush.msra.mxu3 %v508_v41  ;;  %v410_v46 = vld [vmem:[#allocation6 + $0x40] sm:$0xff]  ;;  %v457_v21 = vld [vmem:[#allocation6 + $0x1b8] sm:$0xff] }
 0x12d   :  { %v444_v43 = vld [vmem:[#allocation6 + $0x150] sm:$0xff]  ;;  %v442_v47 = vld [vmem:[#allocation6 + $0x140] sm:$0xff]  ;;  %550 = vmatpush.msra.mxu0 %v412_v42  ;;  %591 = vmatpush.msra.mxu2 %v474_v44  ;;  %v485_v22 = vld [vmem:[#allocation6 + $0x298] sm:$0xff] }
 0x12e   :  { %570 = vmatpush.msra.mxu1 %v444_v43  ;;  %v472_v48 = vld [vmem:[#allocation6 + $0x230] sm:$0xff]  ;;  %611 = vmatpush.msra.mxu3 %v506_v45  ;;  %v470_v52 = vld [vmem:[#allocation6 + $0x220] sm:$0xff]  ;;  %v519_v23 = vld [vmem:[#allocation6 + $0x3a8] sm:$0xff] }
 0x12f   :  { %v504_v49 = vld [vmem:[#allocation6 + $0x330] sm:$0xff]  ;;  %551 = vmatpush.msra.mxu0 %v410_v46  ;;  %v502_v53 = vld [vmem:[#allocation6 + $0x320] sm:$0xff]  ;;  %592 = vmatpush.msra.mxu2 %v472_v48  ;;  %v423_v24 = vld [vmem:[#allocation6 + $0xa8] sm:$0xff] }
 0x130   :  { %v408_v50 = vld [vmem:[#allocation6 + $0x30] sm:$0xff]  ;;  %571 = vmatpush.msra.mxu1 %v442_v47  ;;  %612 = vmatpush.msra.mxu3 %v504_v49  ;;  %v406_v54 = vld [vmem:[#allocation6 + $0x20] sm:$0xff]  ;;  %v455_v25 = vld [vmem:[#allocation6 + $0x1a8] sm:$0xff] }
 0x131   :  { %v440_v51 = vld [vmem:[#allocation6 + $0x130] sm:$0xff]  ;;  %v438_v55 = vld [vmem:[#allocation6 + $0x120] sm:$0xff]  ;;  %552 = vmatpush.msra.mxu0 %v408_v50  ;;  %593 = vmatpush.msra.mxu2 %v470_v52  ;;  %v483_v26 = vld [vmem:[#allocation6 + $0x288] sm:$0xff] }
 0x132   :  { %572 = vmatpush.msra.mxu1 %v440_v51  ;;  %v468_v56 = vld [vmem:[#allocation6 + $0x210] sm:$0xff]  ;;  %613 = vmatpush.msra.mxu3 %v502_v53  ;;  %v466_v60 = vld [vmem:[#allocation6 + $0x200] sm:$0xff]  ;;  %v517_v27 = vld [vmem:[#allocation6 + $0x398] sm:$0xff] }
 0x133   :  { %v500_v57 = vld [vmem:[#allocation6 + $0x310] sm:$0xff]  ;;  %553 = vmatpush.msra.mxu0 %v406_v54  ;;  %v498_v61 = vld [vmem:[#allocation6 + $0x300] sm:$0xff]  ;;  %594 = vmatpush.msra.mxu2 %v468_v56  ;;  %v421_v28 = vld [vmem:[#allocation6 + $0x98] sm:$0xff] }
 0x134   :  { %v404_v58 = vld [vmem:[#allocation6 + $0x10] sm:$0xff]  ;;  %573 = vmatpush.msra.mxu1 %v438_v55  ;;  %614 = vmatpush.msra.mxu3 %v500_v57  ;;  %v402_v0 = vld [vmem:[#allocation6] sm:$0xff]  ;;  %v453_v29 = vld [vmem:[#allocation6 + $0x198] sm:$0xff] }
 0x135   :  { %v436_v59 = vld [vmem:[#allocation6 + $0x110] sm:$0xff]  ;;  %554 = vmatpush.msra.mxu0 %v404_v58  ;;  %v434_v1 = vld [vmem:[#allocation6 + $0x100] sm:$0xff]  ;;  %595 = vmatpush.msra.mxu2 %v466_v60  ;;  %v515_v30 = vld [vmem:[#allocation6 + $0x388] sm:$0xff] }
 0x136   :  { %574 = vmatpush.msra.mxu1 %v436_v59  ;;  %615 = vmatpush.msra.mxu3 %v498_v61  ;;  %v4453_v31 = vld.sshfl [vmem:[#allocation1 + $0x10] sm:$0xff pattern:$0x73625140]  ;;  %v4455_v32 = vld.sshfl [vmem:[#allocation1 + $0x18] sm:$0xff pattern:$0x73625140] }
 0x137   :  { %660 = vmatpush.msrb.mxu2 %v497_v62  ;;  %555 = vmatpush.msra.mxu0 %v402_v0  ;;  %v4457_v33 = vld.sshfl [vmem:[#allocation1] sm:$0xff pattern:$0x73625140]  ;;  %v4459_v34 = vld.sshfl [vmem:[#allocation1 + $0x8] sm:$0xff pattern:$0x73625140] }
 0x138   :  { %680 = vmatpush.msrb.mxu3 %v529_v63  ;;  %575 = vmatpush.msra.mxu1 %v434_v1  ;;  %v481_v35 = vld [vmem:[#allocation6 + $0x278] sm:$0xff]  ;;  %v419_v36 = vld [vmem:[#allocation6 + $0x88] sm:$0xff]  ;;  %1028 = vst [vmem:[#allocation1] ss:$4 sm:$0xff] %v401_v12  ;;  %v728_v12 = vld [vmem:[#allocation7 + $0xe0] sm:$0xff] }
 0x139   :  { %661 = vmatpush.msrb.mxu2 %v495_v2  ;;  %620 = vmatpush.msrb.mxu0 %v433_v3  ;;  %v451_v37 = vld [vmem:[#allocation6 + $0x188] sm:$0xff]  ;;  %v513_v38 = vld [vmem:[#allocation6 + $0x378] sm:$0xff] }
 0x13a   :  { %640 = vmatpush.msrb.mxu1 %v465_v4  ;;  %681 = vmatpush.msrb.mxu3 %v527_v5  ;;  %v479_v39 = vld [vmem:[#allocation6 + $0x268] sm:$0xff]  ;;  %v417_v40 = vld [vmem:[#allocation6 + $0x78] sm:$0xff] }
 0x13b   :  { %662 = vmatpush.msrb.mxu2 %v493_v6  ;;  %621 = vmatpush.msrb.mxu0 %v431_v7  ;;  %v449_v41 = vld [vmem:[#allocation6 + $0x178] sm:$0xff]  ;;  %v511_v42 = vld [vmem:[#allocation6 + $0x368] sm:$0xff] }
 0x13c   :  { %641 = vmatpush.msrb.mxu1 %v463_v8  ;;  %682 = vmatpush.msrb.mxu3 %v525_v9  ;;  %v477_v43 = vld [vmem:[#allocation6 + $0x258] sm:$0xff]  ;;  %v415_v44 = vld [vmem:[#allocation6 + $0x68] sm:$0xff]  ;;  %v730_v8 = vld [vmem:[#allocation7 + $0xf0] sm:$0xff] }
 0x13d   :  { %663 = vmatpush.msrb.mxu2 %v491_v10  ;;  %622 = vmatpush.msrb.mxu0 %v429_v11  ;;  %v447_v45 = vld [vmem:[#allocation6 + $0x168] sm:$0xff]  ;;  %v509_v46 = vld [vmem:[#allocation6 + $0x358] sm:$0xff]  ;;  %v762_v9 = vld [vmem:[#allocation7 + $0x1f0] sm:$0xff] }
 0x13e   :  { %642 = vmatpush.msrb.mxu1 %v461_v13  ;;  %683 = vmatpush.msrb.mxu3 %v523_v14  ;;  %v475_v47 = vld [vmem:[#allocation6 + $0x248] sm:$0xff]  ;;  %v413_v48 = vld [vmem:[#allocation6 + $0x58] sm:$0xff]  ;;  %v760_v13 = vld [vmem:[#allocation7 + $0x1e0] sm:$0xff] }
 0x13f   :  { %664 = vmatpush.msrb.mxu2 %v489_v15  ;;  %623 = vmatpush.msrb.mxu0 %v427_v16  ;;  %v445_v49 = vld [vmem:[#allocation6 + $0x158] sm:$0xff]  ;;  %v507_v51 = vld [vmem:[#allocation6 + $0x348] sm:$0xff]  ;;  %v726_v16 = vld [vmem:[#allocation7 + $0xd0] sm:$0xff] }
 0x140   :  { %643 = vmatpush.msrb.mxu1 %v459_v17  ;;  %684 = vmatpush.msrb.mxu3 %v521_v18  ;;  %v473_v50 = vld [vmem:[#allocation6 + $0x238] sm:$0xff]  ;;  %v411_v52 = vld [vmem:[#allocation6 + $0x48] sm:$0xff]  ;;  %v758_v17 = vld [vmem:[#allocation7 + $0x1d0] sm:$0xff] }
 0x141   :  { %665 = vmatpush.msrb.mxu2 %v487_v19  ;;  %624 = vmatpush.msrb.mxu0 %v425_v20  ;;  %v443_v53 = vld [vmem:[#allocation6 + $0x148] sm:$0xff]  ;;  %v505_v55 = vld [vmem:[#allocation6 + $0x338] sm:$0xff]  ;;  %v724_v20 = vld [vmem:[#allocation7 + $0xc0] sm:$0xff] }
 0x142   :  { %644 = vmatpush.msrb.mxu1 %v457_v21  ;;  %685 = vmatpush.msrb.mxu3 %v519_v23  ;;  %v471_v54 = vld [vmem:[#allocation6 + $0x228] sm:$0xff]  ;;  %v409_v56 = vld [vmem:[#allocation6 + $0x38] sm:$0xff]  ;;  %v756_v21 = vld [vmem:[#allocation7 + $0x1c0] sm:$0xff] }
 0x143   :  { %666 = vmatpush.msrb.mxu2 %v485_v22  ;;  %625 = vmatpush.msrb.mxu0 %v423_v24  ;;  %v441_v57 = vld [vmem:[#allocation6 + $0x138] sm:$0xff]  ;;  %v503_v59 = vld [vmem:[#allocation6 + $0x328] sm:$0xff]  ;;  %v722_v24 = vld [vmem:[#allocation7 + $0xb0] sm:$0xff] }
 0x144   :  { %645 = vmatpush.msrb.mxu1 %v455_v25  ;;  %686 = vmatpush.msrb.mxu3 %v517_v27  ;;  %v469_v58 = vld [vmem:[#allocation6 + $0x218] sm:$0xff]  ;;  %v407_v60 = vld [vmem:[#allocation6 + $0x28] sm:$0xff]  ;;  %v754_v25 = vld [vmem:[#allocation7 + $0x1b0] sm:$0xff] }
 0x145   :  { %667 = vmatpush.msrb.mxu2 %v483_v26  ;;  %626 = vmatpush.msrb.mxu0 %v421_v28  ;;  %v439_v61 = vld [vmem:[#allocation6 + $0x128] sm:$0xff]  ;;  %v501_v63 = vld [vmem:[#allocation6 + $0x318] sm:$0xff]  ;;  %v720_v28 = vld [vmem:[#allocation7 + $0xa0] sm:$0xff] }
 0x146   :  { %646 = vmatpush.msrb.mxu1 %v453_v29  ;;  %687 = vmatpush.msrb.mxu3 %v515_v30  ;;  %v467_v62 = vld [vmem:[#allocation6 + $0x208] sm:$0xff]  ;;  %v405_v0 = vld [vmem:[#allocation6 + $0x18] sm:$0xff]  ;;  %v752_v29 = vld [vmem:[#allocation7 + $0x1a0] sm:$0xff] }
 0x147   :  { %668 = vmatpush.msrb.mxu2 %v481_v35  ;;  %627 = vmatpush.msrb.mxu0 %v419_v36  ;;  %v437_v1 = vld [vmem:[#allocation6 + $0x118] sm:$0xff]  ;;  %v499_v2 = vld [vmem:[#allocation6 + $0x308] sm:$0xff]  ;;  %v716_v36 = vld [vmem:[#allocation7 + $0x80] sm:$0xff] }
 0x148   :  { %647 = vmatpush.msrb.mxu1 %v451_v37  ;;  %688 = vmatpush.msrb.mxu3 %v513_v38  ;;  %v731_v3 = vld [vmem:[#allocation7 + $0xf8] sm:$0xff]  ;;  %v403_v4 = vld [vmem:[#allocation6 + $0x8] sm:$0xff]  ;;  %v748_v37 = vld [vmem:[#allocation7 + $0x180] sm:$0xff] }
 0x149   :  { %669 = vmatpush.msrb.mxu2 %v479_v39  ;;  %628 = vmatpush.msrb.mxu0 %v417_v40  ;;  %v435_v5 = vld [vmem:[#allocation6 + $0x108] sm:$0xff]  ;;  %v763_v7 = vld [vmem:[#allocation7 + $0x1f8] sm:$0xff]  ;;  %v714_v40 = vld [vmem:[#allocation7 + $0x70] sm:$0xff] }
 0x14a   :  { %648 = vmatpush.msrb.mxu1 %v449_v41  ;;  %689 = vmatpush.msrb.mxu3 %v511_v42  ;;  %v729_v6 = vld [vmem:[#allocation7 + $0xe8] sm:$0xff]  ;;  %v727_v10 = vld [vmem:[#allocation7 + $0xd8] sm:$0xff]  ;;  %v746_v41 = vld [vmem:[#allocation7 + $0x170] sm:$0xff] }
 0x14b   :  { %670 = vmatpush.msrb.mxu2 %v477_v43  ;;  %629 = vmatpush.msrb.mxu0 %v415_v44  ;;  %v761_v11 = vld [vmem:[#allocation7 + $0x1e8] sm:$0xff]  ;;  %v759_v15 = vld [vmem:[#allocation7 + $0x1d8] sm:$0xff]  ;;  %v712_v44 = vld [vmem:[#allocation7 + $0x60] sm:$0xff] }
 0x14c   :  { %649 = vmatpush.msrb.mxu1 %v447_v45  ;;  %690 = vmatpush.msrb.mxu3 %v509_v46  ;;  %v725_v14 = vld [vmem:[#allocation7 + $0xc8] sm:$0xff]  ;;  %v723_v18 = vld [vmem:[#allocation7 + $0xb8] sm:$0xff]  ;;  %v744_v45 = vld [vmem:[#allocation7 + $0x160] sm:$0xff] }
 0x14d   :  { %671 = vmatpush.msrb.mxu2 %v475_v47  ;;  %630 = vmatpush.msrb.mxu0 %v413_v48  ;;  %v757_v19 = vld [vmem:[#allocation7 + $0x1c8] sm:$0xff]  ;;  %v755_v23 = vld [vmem:[#allocation7 + $0x1b8] sm:$0xff]  ;;  %v710_v48 = vld [vmem:[#allocation7 + $0x50] sm:$0xff] }
 0x14e   :  { %596 = vmatmul.f32.vlgmr.msra.gmra.mxu2 %v4453_v31  ;;  %650 = vmatpush.msrb.mxu1 %v445_v49  ;;  %v721_v22 = vld [vmem:[#allocation7 + $0xa8] sm:$0xff]  ;;  %v719_v26 = vld [vmem:[#allocation7 + $0x98] sm:$0xff]  ;;  %v742_v49 = vld [vmem:[#allocation7 + $0x150] sm:$0xff] }
 0x14f   :  { %672 = vmatpush.msrb.mxu2 %v473_v50  ;;  %691 = vmatpush.msrb.mxu3 %v507_v51  ;;  %v753_v27 = vld [vmem:[#allocation7 + $0x1a8] sm:$0xff]  ;;  %v747_v39 = vld [vmem:[#allocation7 + $0x178] sm:$0xff] }
 0x150   :  { %616 = vmatmul.f32.vlgmr.msra.gmra.mxu3 %v4455_v32  ;;  %631 = vmatpush.msrb.mxu0 %v411_v52  ;;  %v717_v30 = vld [vmem:[#allocation7 + $0x88] sm:$0xff]  ;;  %v711_v42 = vld [vmem:[#allocation7 + $0x58] sm:$0xff]  ;;  %v708_v52 = vld [vmem:[#allocation7 + $0x40] sm:$0xff] }
 0x151   :  { %651 = vmatpush.msrb.mxu1 %v443_v53  ;;  %673 = vmatpush.msrb.mxu2 %v471_v54  ;;  %v749_v35 = vld [vmem:[#allocation7 + $0x188] sm:$0xff]  ;;  %v743_v47 = vld [vmem:[#allocation7 + $0x158] sm:$0xff]  ;;  %v740_v53 = vld [vmem:[#allocation7 + $0x140] sm:$0xff] }
 0x152   :  { %692 = vmatpush.msrb.mxu3 %v505_v55  ;;  %556 = vmatmul.f32.vlgmr.msra.gmra.mxu0 %v4457_v33  ;;  %v713_v38 = vld [vmem:[#allocation7 + $0x68] sm:$0xff]  ;;  %v707_v50 = vld [vmem:[#allocation7 + $0x38] sm:$0xff] }
 0x153   :  { %576 = vmatmul.f32.vlgmr.msra.gmra.mxu1 %v4459_v34  ;;  %632 = vmatpush.msrb.mxu0 %v409_v56  ;;  %v745_v43 = vld [vmem:[#allocation7 + $0x168] sm:$0xff]  ;;  %v739_v55 = vld [vmem:[#allocation7 + $0x138] sm:$0xff]  ;;  %v706_v56 = vld [vmem:[#allocation7 + $0x30] sm:$0xff] }
 0x154   :  { %652 = vmatpush.msrb.mxu1 %v441_v57  ;;  %674 = vmatpush.msrb.mxu2 %v469_v58  ;;  %v709_v46 = vld [vmem:[#allocation7 + $0x48] sm:$0xff]  ;;  %v738_v57 = vld [vmem:[#allocation7 + $0x130] sm:$0xff]  ;;  %v703_v58 = vld [vmem:[#allocation7 + $0x18] sm:$0xff] }
 0x155   :  { %693 = vmatpush.msrb.mxu3 %v503_v59  ;;  %633 = vmatpush.msrb.mxu0 %v407_v60  ;;  %v741_v51 = vld [vmem:[#allocation7 + $0x148] sm:$0xff]  ;;  %v704_v60 = vld [vmem:[#allocation7 + $0x20] sm:$0xff] }
 0x156   :  { %653 = vmatpush.msrb.mxu1 %v439_v61  ;;  %675 = vmatpush.msrb.mxu2 %v467_v62  ;;  %v705_v54 = vld [vmem:[#allocation7 + $0x28] sm:$0xff]  ;;  %v736_v61 = vld [vmem:[#allocation7 + $0x120] sm:$0xff] }
 0x157   :  { %694 = vmatpush.msrb.mxu3 %v501_v63  ;;  %676 = vmatmul.f32.vlgmr.msrb.gmra.mxu2 %v4453_v31  ;;  %v751_v31 = vld [vmem:[#allocation7 + $0x198] sm:$0xff]  ;;  %v737_v59 = vld [vmem:[#allocation7 + $0x128] sm:$0xff] }
 0x158   :  { %634 = vmatpush.msrb.mxu0 %v405_v0  ;;  %654 = vmatpush.msrb.mxu1 %v437_v1  ;;  %v701_v62 = vld [vmem:[#allocation7 + $0x8] sm:$0xff]  ;;  %v735_v63 = vld [vmem:[#allocation7 + $0x118] sm:$0xff]  ;;  %v994_v0 = vld [vmem:[#allocation2 + $0x2f0] sm:$0xff] }
 0x159   :  { %695 = vmatpush.msrb.mxu3 %v499_v2  ;;  %810 = vmatpush.msra.mxu2 %v731_v3  ;;  %v702_v1 = vld [vmem:[#allocation7 + $0x10] sm:$0xff]  ;;  %v733_v3 = vld [vmem:[#allocation7 + $0x108] sm:$0xff] }
 0x15a   :  { %696 = vmatmul.f32.vlgmr.msrb.gmra.mxu3 %v4455_v32  ;;  %635 = vmatpush.msrb.mxu0 %v403_v4  ;;  %v718_v32 = vld [vmem:[#allocation7 + $0x90] sm:$0xff]  ;;  %v992_v4 = vld [vmem:[#allocation2 + $0x2e0] sm:$0xff] }
 0x15b   :  { %655 = vmatpush.msrb.mxu1 %v435_v5  ;;  %636 = vmatmul.f32.vlgmr.msrb.gmra.mxu0 %v4457_v33  ;;  %v750_v33 = vld [vmem:[#allocation7 + $0x190] sm:$0xff] }
 0x15c   :  { %656 = vmatmul.f32.vlgmr.msrb.gmra.mxu1 %v4459_v34  ;;  %811 = vmatpush.msra.mxu2 %v729_v6  ;;  %v715_v34 = vld [vmem:[#allocation7 + $0x78] sm:$0xff]  ;;  %v734_v2 = vld [vmem:[#allocation7 + $0x110] sm:$0xff]  ;;  %v700_v6 = vld [vmem:[#allocation7] sm:$0xff] }
 0x15d   :  { %830 = vmatpush.msra.mxu3 %v763_v7  ;;  %770 = vmatpush.msra.mxu0 %v730_v8  ;;  %v1026_v5 = vld [vmem:[#allocation2 + $0x3f0] sm:$0xff]  ;;  %v732_v7 = vld [vmem:[#allocation7 + $0x100] sm:$0xff] }
 0x15e   :  { %790 = vmatpush.msra.mxu1 %v762_v9  ;;  %812 = vmatpush.msra.mxu2 %v727_v10  ;;  %v930_v8 = vld [vmem:[#allocation2 + $0xf0] sm:$0xff] }
 0x15f   :  { %831 = vmatpush.msra.mxu3 %v761_v11  ;;  %771 = vmatpush.msra.mxu0 %v728_v12  ;;  %v962_v9 = vld [vmem:[#allocation2 + $0x1f0] sm:$0xff]  ;;  %v1024_v11 = vld [vmem:[#allocation2 + $0x3e0] sm:$0xff] }
 0x160   :  { %791 = vmatpush.msra.mxu1 %v760_v13  ;;  %813 = vmatpush.msra.mxu2 %v725_v14  ;;  %v990_v10 = vld [vmem:[#allocation2 + $0x2d0] sm:$0xff]  ;;  %v928_v12 = vld [vmem:[#allocation2 + $0xe0] sm:$0xff] }
 0x161   :  { %832 = vmatpush.msra.mxu3 %v759_v15  ;;  %772 = vmatpush.msra.mxu0 %v726_v16  ;;  %v960_v13 = vld [vmem:[#allocation2 + $0x1e0] sm:$0xff]  ;;  %v1022_v15 = vld [vmem:[#allocation2 + $0x3d0] sm:$0xff] }
 0x162   :  { %792 = vmatpush.msra.mxu1 %v758_v17  ;;  %814 = vmatpush.msra.mxu2 %v723_v18  ;;  %v988_v14 = vld [vmem:[#allocation2 + $0x2c0] sm:$0xff]  ;;  %v926_v16 = vld [vmem:[#allocation2 + $0xd0] sm:$0xff] }
 0x163   :  { %833 = vmatpush.msra.mxu3 %v757_v19  ;;  %773 = vmatpush.msra.mxu0 %v724_v20  ;;  %v958_v17 = vld [vmem:[#allocation2 + $0x1d0] sm:$0xff]  ;;  %v1020_v19 = vld [vmem:[#allocation2 + $0x3c0] sm:$0xff] }
 0x164   :  { %793 = vmatpush.msra.mxu1 %v756_v21  ;;  %815 = vmatpush.msra.mxu2 %v721_v22  ;;  %v986_v18 = vld [vmem:[#allocation2 + $0x2b0] sm:$0xff]  ;;  %v924_v20 = vld [vmem:[#allocation2 + $0xc0] sm:$0xff] }
 0x165   :  { %834 = vmatpush.msra.mxu3 %v755_v23  ;;  %774 = vmatpush.msra.mxu0 %v722_v24  ;;  %v956_v21 = vld [vmem:[#allocation2 + $0x1c0] sm:$0xff]  ;;  %v1018_v23 = vld [vmem:[#allocation2 + $0x3b0] sm:$0xff] }
 0x166   :  { %794 = vmatpush.msra.mxu1 %v754_v25  ;;  %816 = vmatpush.msra.mxu2 %v719_v26  ;;  %v984_v22 = vld [vmem:[#allocation2 + $0x2a0] sm:$0xff]  ;;  %v922_v24 = vld [vmem:[#allocation2 + $0xb0] sm:$0xff] }
 0x167   :  { %835 = vmatpush.msra.mxu3 %v753_v27  ;;  %775 = vmatpush.msra.mxu0 %v720_v28  ;;  %v954_v25 = vld [vmem:[#allocation2 + $0x1b0] sm:$0xff]  ;;  %v1016_v27 = vld [vmem:[#allocation2 + $0x3a0] sm:$0xff] }
 0x168   :  { %795 = vmatpush.msra.mxu1 %v752_v29  ;;  %817 = vmatpush.msra.mxu2 %v717_v30  ;;  %v982_v26 = vld [vmem:[#allocation2 + $0x290] sm:$0xff]  ;;  %v920_v28 = vld [vmem:[#allocation2 + $0xa0] sm:$0xff] }
 0x169   :  { %836 = vmatpush.msra.mxu3 %v751_v31  ;;  %776 = vmatpush.msra.mxu0 %v718_v32  ;;  %v952_v29 = vld [vmem:[#allocation2 + $0x1a0] sm:$0xff]  ;;  %v1014_v31 = vld [vmem:[#allocation2 + $0x390] sm:$0xff] }
 0x16a   :  { %796 = vmatpush.msra.mxu1 %v750_v33  ;;  %818 = vmatpush.msra.mxu2 %v715_v34  ;;  %v980_v30 = vld [vmem:[#allocation2 + $0x280] sm:$0xff]  ;;  %v918_v32 = vld [vmem:[#allocation2 + $0x90] sm:$0xff] }
 0x16b   :  { %837 = vmatpush.msra.mxu3 %v749_v35  ;;  %777 = vmatpush.msra.mxu0 %v716_v36  ;;  %v950_v33 = vld [vmem:[#allocation2 + $0x190] sm:$0xff]  ;;  %v1012_v35 = vld [vmem:[#allocation2 + $0x380] sm:$0xff] }
 0x16c   :  { %797 = vmatpush.msra.mxu1 %v748_v37  ;;  %819 = vmatpush.msra.mxu2 %v713_v38  ;;  %v978_v34 = vld [vmem:[#allocation2 + $0x270] sm:$0xff]  ;;  %v916_v36 = vld [vmem:[#allocation2 + $0x80] sm:$0xff] }
 0x16d   :  { %838 = vmatpush.msra.mxu3 %v747_v39  ;;  %778 = vmatpush.msra.mxu0 %v714_v40  ;;  %v948_v37 = vld [vmem:[#allocation2 + $0x180] sm:$0xff]  ;;  %v1010_v39 = vld [vmem:[#allocation2 + $0x370] sm:$0xff] }
 0x16e   :  { %798 = vmatpush.msra.mxu1 %v746_v41  ;;  %820 = vmatpush.msra.mxu2 %v711_v42  ;;  %v976_v38 = vld [vmem:[#allocation2 + $0x260] sm:$0xff]  ;;  %v914_v40 = vld [vmem:[#allocation2 + $0x70] sm:$0xff] }
 0x16f   :  { %839 = vmatpush.msra.mxu3 %v745_v43  ;;  %779 = vmatpush.msra.mxu0 %v712_v44  ;;  %v946_v41 = vld [vmem:[#allocation2 + $0x170] sm:$0xff]  ;;  %v1008_v43 = vld [vmem:[#allocation2 + $0x360] sm:$0xff] }
 0x170   :  { %799 = vmatpush.msra.mxu1 %v744_v45  ;;  %821 = vmatpush.msra.mxu2 %v709_v46  ;;  %v974_v42 = vld [vmem:[#allocation2 + $0x250] sm:$0xff]  ;;  %v912_v44 = vld [vmem:[#allocation2 + $0x60] sm:$0xff] }
 0x171   :  { %840 = vmatpush.msra.mxu3 %v743_v47  ;;  %780 = vmatpush.msra.mxu0 %v710_v48  ;;  %v944_v45 = vld [vmem:[#allocation2 + $0x160] sm:$0xff]  ;;  %v1006_v47 = vld [vmem:[#allocation2 + $0x350] sm:$0xff] }
 0x172   :  { %800 = vmatpush.msra.mxu1 %v742_v49  ;;  %822 = vmatpush.msra.mxu2 %v707_v50  ;;  %v972_v46 = vld [vmem:[#allocation2 + $0x240] sm:$0xff]  ;;  %v910_v48 = vld [vmem:[#allocation2 + $0x50] sm:$0xff] }
 0x173   :  { %841 = vmatpush.msra.mxu3 %v741_v51  ;;  %781 = vmatpush.msra.mxu0 %v708_v52  ;;  %v942_v49 = vld [vmem:[#allocation2 + $0x150] sm:$0xff]  ;;  %v1004_v51 = vld [vmem:[#allocation2 + $0x340] sm:$0xff] }
 0x174   :  { %801 = vmatpush.msra.mxu1 %v740_v53  ;;  %823 = vmatpush.msra.mxu2 %v705_v54  ;;  %v970_v50 = vld [vmem:[#allocation2 + $0x230] sm:$0xff]  ;;  %v908_v52 = vld [vmem:[#allocation2 + $0x40] sm:$0xff] }
 0x175   :  { %842 = vmatpush.msra.mxu3 %v739_v55  ;;  %782 = vmatpush.msra.mxu0 %v706_v56  ;;  %v940_v53 = vld [vmem:[#allocation2 + $0x140] sm:$0xff]  ;;  %v1002_v55 = vld [vmem:[#allocation2 + $0x330] sm:$0xff] }
 0x176   :  { %802 = vmatpush.msra.mxu1 %v738_v57  ;;  %824 = vmatpush.msra.mxu2 %v703_v58  ;;  %v968_v54 = vld [vmem:[#allocation2 + $0x220] sm:$0xff]  ;;  %v906_v56 = vld [vmem:[#allocation2 + $0x30] sm:$0xff] }
 0x177   :  { %843 = vmatpush.msra.mxu3 %v737_v59  ;;  %783 = vmatpush.msra.mxu0 %v704_v60  ;;  %v938_v57 = vld [vmem:[#allocation2 + $0x130] sm:$0xff]  ;;  %v1000_v59 = vld [vmem:[#allocation2 + $0x320] sm:$0xff] }
 0x178   :  { %803 = vmatpush.msra.mxu1 %v736_v61  ;;  %825 = vmatpush.msra.mxu2 %v701_v62  ;;  %v966_v58 = vld [vmem:[#allocation2 + $0x210] sm:$0xff]  ;;  %v904_v60 = vld [vmem:[#allocation2 + $0x20] sm:$0xff] }
 0x179   :  { %844 = vmatpush.msra.mxu3 %v735_v63  ;;  %784 = vmatpush.msra.mxu0 %v702_v1  ;;  %v936_v61 = vld [vmem:[#allocation2 + $0x120] sm:$0xff]  ;;  %v998_v63 = vld [vmem:[#allocation2 + $0x310] sm:$0xff] }
 0x17a   :  { %1077 = vmatpush.msrb.mxu2 %v994_v0  ;;  %804 = vmatpush.msra.mxu1 %v734_v2  ;;  %v964_v62 = vld [vmem:[#allocation2 + $0x200] sm:$0xff]  ;;  %v902_v0 = vld [vmem:[#allocation2 + $0x10] sm:$0xff] }
 0x17b   :  { %845 = vmatpush.msra.mxu3 %v733_v3  ;;  %785 = vmatpush.msra.mxu0 %v700_v6  ;;  %v934_v1 = vld [vmem:[#allocation2 + $0x110] sm:$0xff]  ;;  %v996_v2 = vld [vmem:[#allocation2 + $0x300] sm:$0xff] }
 0x17c   :  { %1078 = vmatpush.msrb.mxu2 %v992_v4  ;;  %805 = vmatpush.msra.mxu1 %v732_v7  ;;  %v900_v3 = vld [vmem:[#allocation2] sm:$0xff] }
 0x17d   :  { %1097 = vmatpush.msrb.mxu3 %v1026_v5  ;;  %1037 = vmatpush.msrb.mxu0 %v930_v8  ;;  %v932_v4 = vld [vmem:[#allocation2 + $0x100] sm:$0xff] }
 0x17e   :  { %1057 = vmatpush.msrb.mxu1 %v962_v9  ;;  %1079 = vmatpush.msrb.mxu2 %v990_v10 }
 0x17f   :  { %1098 = vmatpush.msrb.mxu3 %v1024_v11  ;;  %1038 = vmatpush.msrb.mxu0 %v928_v12  ;;  %v995_v12 = vld [vmem:[#allocation2 + $0x2f8] sm:$0xff] }
 0x180   :  { %1058 = vmatpush.msrb.mxu1 %v960_v13  ;;  %1080 = vmatpush.msrb.mxu2 %v988_v14  ;;  %v931_v13 = vld [vmem:[#allocation2 + $0xf8] sm:$0xff]  ;;  %v993_v14 = vld [vmem:[#allocation2 + $0x2e8] sm:$0xff] }
 0x181   :  { %1099 = vmatpush.msrb.mxu3 %v1022_v15  ;;  %1039 = vmatpush.msrb.mxu0 %v926_v16  ;;  %v929_v15 = vld [vmem:[#allocation2 + $0xe8] sm:$0xff] }
 0x182   :  { %1059 = vmatpush.msrb.mxu1 %v958_v17  ;;  %1081 = vmatpush.msrb.mxu2 %v986_v18  ;;  %v991_v18 = vld [vmem:[#allocation2 + $0x2d8] sm:$0xff] }
 0x183   :  { %1100 = vmatpush.msrb.mxu3 %v1020_v19  ;;  %1040 = vmatpush.msrb.mxu0 %v924_v20  ;;  %v927_v19 = vld [vmem:[#allocation2 + $0xd8] sm:$0xff] }
 0x184   :  { %1060 = vmatpush.msrb.mxu1 %v956_v21  ;;  %1082 = vmatpush.msrb.mxu2 %v984_v22  ;;  %v989_v22 = vld [vmem:[#allocation2 + $0x2c8] sm:$0xff] }
 0x185   :  { %1101 = vmatpush.msrb.mxu3 %v1018_v23  ;;  %1041 = vmatpush.msrb.mxu0 %v922_v24  ;;  %v925_v23 = vld [vmem:[#allocation2 + $0xc8] sm:$0xff] }
 0x186   :  { %1061 = vmatpush.msrb.mxu1 %v954_v25  ;;  %1083 = vmatpush.msrb.mxu2 %v982_v26  ;;  %v4469_v25 = vld.sshfl [vmem:[#allocation1 + $0x10] sm:$0xff pattern:$0x73625140]  ;;  %v4471_v26 = vld.sshfl [vmem:[#allocation1] sm:$0xff pattern:$0x73625140] }
 0x187   :  { %1102 = vmatpush.msrb.mxu3 %v1016_v27  ;;  %1042 = vmatpush.msrb.mxu0 %v920_v28 }
 0x188   :  { %1062 = vmatpush.msrb.mxu1 %v952_v29  ;;  %1084 = vmatpush.msrb.mxu2 %v980_v30  ;;  %v1027_v29 = vld [vmem:[#allocation2 + $0x3f8] sm:$0xff] }
 0x189   :  { %1103 = vmatpush.msrb.mxu3 %v1014_v31  ;;  %1043 = vmatpush.msrb.mxu0 %v918_v32  ;;  %v963_v30 = vld [vmem:[#allocation2 + $0x1f8] sm:$0xff] }
 0x18a   :  { %1063 = vmatpush.msrb.mxu1 %v950_v33  ;;  %1085 = vmatpush.msrb.mxu2 %v978_v34  ;;  %v987_v31 = vld [vmem:[#allocation2 + $0x2b8] sm:$0xff]  ;;  %v1025_v33 = vld [vmem:[#allocation2 + $0x3e8] sm:$0xff] }
 0x18b   :  { %1104 = vmatpush.msrb.mxu3 %v1012_v35  ;;  %1044 = vmatpush.msrb.mxu0 %v916_v36  ;;  %v923_v32 = vld [vmem:[#allocation2 + $0xb8] sm:$0xff]  ;;  %v961_v34 = vld [vmem:[#allocation2 + $0x1e8] sm:$0xff] }
 0x18c   :  { %1064 = vmatpush.msrb.mxu1 %v948_v37  ;;  %1086 = vmatpush.msrb.mxu2 %v976_v38  ;;  %v985_v35 = vld [vmem:[#allocation2 + $0x2a8] sm:$0xff]  ;;  %v1023_v37 = vld [vmem:[#allocation2 + $0x3d8] sm:$0xff] }
 0x18d   :  { %1105 = vmatpush.msrb.mxu3 %v1010_v39  ;;  %1045 = vmatpush.msrb.mxu0 %v914_v40  ;;  %v921_v36 = vld [vmem:[#allocation2 + $0xa8] sm:$0xff]  ;;  %v959_v38 = vld [vmem:[#allocation2 + $0x1d8] sm:$0xff] }
 0x18e   :  { %1065 = vmatpush.msrb.mxu1 %v946_v41  ;;  %1087 = vmatpush.msrb.mxu2 %v974_v42  ;;  %v983_v39 = vld [vmem:[#allocation2 + $0x298] sm:$0xff]  ;;  %v1021_v41 = vld [vmem:[#allocation2 + $0x3c8] sm:$0xff] }
 0x18f   :  { %1106 = vmatpush.msrb.mxu3 %v1008_v43  ;;  %1046 = vmatpush.msrb.mxu0 %v912_v44  ;;  %v919_v40 = vld [vmem:[#allocation2 + $0x98] sm:$0xff]  ;;  %v957_v42 = vld [vmem:[#allocation2 + $0x1c8] sm:$0xff] }
 0x190   :  { %1066 = vmatpush.msrb.mxu1 %v944_v45  ;;  %1088 = vmatpush.msrb.mxu2 %v972_v46  ;;  %v981_v43 = vld [vmem:[#allocation2 + $0x288] sm:$0xff]  ;;  %v1019_v45 = vld [vmem:[#allocation2 + $0x3b8] sm:$0xff] }
 0x191   :  { %1107 = vmatpush.msrb.mxu3 %v1006_v47  ;;  %1047 = vmatpush.msrb.mxu0 %v910_v48  ;;  %v917_v44 = vld [vmem:[#allocation2 + $0x88] sm:$0xff]  ;;  %v955_v46 = vld [vmem:[#allocation2 + $0x1b8] sm:$0xff] }
 0x192   :  { %1067 = vmatpush.msrb.mxu1 %v942_v49  ;;  %1089 = vmatpush.msrb.mxu2 %v970_v50  ;;  %v979_v47 = vld [vmem:[#allocation2 + $0x278] sm:$0xff]  ;;  %v1017_v49 = vld [vmem:[#allocation2 + $0x3a8] sm:$0xff] }
 0x193   :  { %1108 = vmatpush.msrb.mxu3 %v1004_v51  ;;  %1048 = vmatpush.msrb.mxu0 %v908_v52  ;;  %v915_v48 = vld [vmem:[#allocation2 + $0x78] sm:$0xff]  ;;  %v953_v50 = vld [vmem:[#allocation2 + $0x1a8] sm:$0xff] }
 0x194   :  { %1068 = vmatpush.msrb.mxu1 %v940_v53  ;;  %1090 = vmatpush.msrb.mxu2 %v968_v54  ;;  %v977_v51 = vld [vmem:[#allocation2 + $0x268] sm:$0xff]  ;;  %v1015_v53 = vld [vmem:[#allocation2 + $0x398] sm:$0xff] }
 0x195   :  { %1109 = vmatpush.msrb.mxu3 %v1002_v55  ;;  %1049 = vmatpush.msrb.mxu0 %v906_v56  ;;  %v913_v52 = vld [vmem:[#allocation2 + $0x68] sm:$0xff]  ;;  %v951_v54 = vld [vmem:[#allocation2 + $0x198] sm:$0xff] }
 0x196   :  { %1069 = vmatpush.msrb.mxu1 %v938_v57  ;;  %1091 = vmatpush.msrb.mxu2 %v966_v58  ;;  %v975_v55 = vld [vmem:[#allocation2 + $0x258] sm:$0xff]  ;;  %v1013_v57 = vld [vmem:[#allocation2 + $0x388] sm:$0xff] }
 0x197   :  { %1110 = vmatpush.msrb.mxu3 %v1000_v59  ;;  %1050 = vmatpush.msrb.mxu0 %v904_v60  ;;  %v911_v56 = vld [vmem:[#allocation2 + $0x58] sm:$0xff]  ;;  %v949_v58 = vld [vmem:[#allocation2 + $0x188] sm:$0xff]  ;;  %v1032_v60 = vld.sshfl [vmem:[#allocation1 + $0x18] sm:$0xff pattern:$0x73625140] }
 0x198   :  { %1070 = vmatpush.msrb.mxu1 %v936_v61  ;;  %1092 = vmatpush.msrb.mxu2 %v964_v62  ;;  %v973_v59 = vld [vmem:[#allocation2 + $0x248] sm:$0xff]  ;;  %v1011_v61 = vld [vmem:[#allocation2 + $0x378] sm:$0xff] }
 0x199   :  { %1111 = vmatpush.msrb.mxu3 %v998_v63  ;;  %1051 = vmatpush.msrb.mxu0 %v902_v0  ;;  %v947_v62 = vld [vmem:[#allocation2 + $0x178] sm:$0xff]  ;;  %v909_v0 = vld [vmem:[#allocation2 + $0x48] sm:$0xff] }
 0x19a   :  { %1071 = vmatpush.msrb.mxu1 %v934_v1  ;;  %v971_v63 = vld [vmem:[#allocation2 + $0x238] sm:$0xff]  ;;  %v1009_v1 = vld [vmem:[#allocation2 + $0x368] sm:$0xff] }
 0x19b   :  { %1112 = vmatpush.msrb.mxu3 %v996_v2  ;;  %1052 = vmatpush.msrb.mxu0 %v900_v3  ;;  %v945_v2 = vld [vmem:[#allocation2 + $0x168] sm:$0xff] }
 0x19c   :  { %1072 = vmatpush.msrb.mxu1 %v932_v4  ;;  %v969_v3 = vld [vmem:[#allocation2 + $0x228] sm:$0xff]  ;;  %v1030_v4 = vld.sshfl [vmem:[#allocation1 + $0x8] sm:$0xff pattern:$0x73625140] }
 0x1cf   :  { %v557_v5 = vpop.f32.mrf.mxu0 }
 0x1d0   :  { %v577_v6 = vpop.f32.mrf.mxu1 }
 0x1d1   :  { %v578_v7 = vadd.f32 %v577_v6, %v557_v5  ;;  %v597_v8 = vpop.f32.mrf.mxu2  ;;  %v1007_v5 = vld [vmem:[#allocation2 + $0x358] sm:$0xff] }
 0x1d2   :  { %v943_v6 = vld [vmem:[#allocation2 + $0x158] sm:$0xff] }
 0x1d3   :  { %v598_v9 = vadd.f32 %v597_v8, %v578_v7  ;;  %v617_v10 = vpop.f32.mrf.mxu3  ;;  %v907_v7 = vld [vmem:[#allocation2 + $0x38] sm:$0xff] }
 0x1d4   :  { %v967_v8 = vld [vmem:[#allocation2 + $0x218] sm:$0xff] }
 0x1d5   :  { %v618_v11 = vadd.f32 %v617_v10, %v598_v9  ;;  %v1005_v9 = vld [vmem:[#allocation2 + $0x348] sm:$0xff] }
 0x1d6   :  { %v941_v10 = vld [vmem:[#allocation2 + $0x148] sm:$0xff] }
 0x1d7   :  { %786 = vmatmul.f32.vlgmr.msra.gmra.mxu0 %v618_v11  ;;  %826 = vmatmul.f32.vlgmr.msra.gmra.mxu2 %v618_v11  ;;  %v905_v11 = vld [vmem:[#allocation2 + $0x28] sm:$0xff] }
 0x1d8   :  { %v637_v16 = vpop.f32.mrf.mxu0  ;;  %1157 = vmatpush.msra.mxu2 %v995_v12  ;;  %1117 = vmatpush.msra.mxu0 %v931_v13  ;;  %v965_v12 = vld [vmem:[#allocation2 + $0x208] sm:$0xff]  ;;  %v1003_v13 = vld [vmem:[#allocation2 + $0x338] sm:$0xff] }
 0x1d9   :  { %v657_v17 = vpop.f32.mrf.mxu1 }
 0x1da   :  { %v658_v20 = vadd.f32 %v657_v17, %v637_v16  ;;  %v677_v21 = vpop.f32.mrf.mxu2  ;;  %1158 = vmatpush.msra.mxu2 %v993_v14  ;;  %1118 = vmatpush.msra.mxu0 %v929_v15  ;;  %v939_v14 = vld [vmem:[#allocation2 + $0x138] sm:$0xff]  ;;  %v1001_v16 = vld [vmem:[#allocation2 + $0x328] sm:$0xff] }
 0x1db   :  { %v903_v15 = vld [vmem:[#allocation2 + $0x18] sm:$0xff]  ;;  %v937_v17 = vld [vmem:[#allocation2 + $0x128] sm:$0xff] }
 0x1dc   :  { %v678_v24 = vadd.f32 %v677_v21, %v658_v20  ;;  %1159 = vmatpush.msra.mxu2 %v991_v18  ;;  %1119 = vmatpush.msra.mxu0 %v927_v19  ;;  %v901_v18 = vld [vmem:[#allocation2 + $0x8] sm:$0xff]  ;;  %v999_v19 = vld [vmem:[#allocation2 + $0x318] sm:$0xff] }
 0x1dd   :  { %v697_v27 = vpop.f32.mrf.mxu3  ;;  %v935_v20 = vld [vmem:[#allocation2 + $0x118] sm:$0xff]  ;;  %v997_v21 = vld [vmem:[#allocation2 + $0x308] sm:$0xff] }
 0x1de   :  { %v698_v28 = vadd.f32 %v697_v27, %v678_v24  ;;  %1160 = vmatpush.msra.mxu2 %v989_v22  ;;  %1120 = vmatpush.msra.mxu0 %v925_v23  ;;  %v933_v22 = vld [vmem:[#allocation2 + $0x108] sm:$0xff]  ;;  %v1227_v23 = vld [vmem:[#allocation4 + $0xf0] sm:$0xff]  ;;  %v1228_v24 = vld [vmem:[#allocation4 + $0xf8] sm:$0xff] }
 0x1df   :  { %1093 = vmatmul.f32.vlgmr.msrb.gmra.mxu2 %v4469_v25  ;;  %1053 = vmatmul.f32.vlgmr.msrb.gmra.mxu0 %v4471_v26  ;;  %v1225_v27 = vld [vmem:[#allocation4 + $0xe0] sm:$0xff] }
 0x1e0   :  { %806 = vmatmul.f32.vlgmr.msra.gmra.mxu1 %v698_v28  ;;  %846 = vmatmul.f32.vlgmr.msra.gmra.mxu3 %v698_v28  ;;  %v1223_v28 = vld [vmem:[#allocation4 + $0xd0] sm:$0xff] }
 0x1e1   :  { %1177 = vmatpush.msra.mxu3 %v1027_v29  ;;  %1137 = vmatpush.msra.mxu1 %v963_v30  ;;  %v1224_v29 = vld [vmem:[#allocation4 + $0xd8] sm:$0xff]  ;;  %v1221_v30 = vld [vmem:[#allocation4 + $0xc0] sm:$0xff] }
 0x1e2   :  { %1161 = vmatpush.msra.mxu2 %v987_v31  ;;  %1121 = vmatpush.msra.mxu0 %v923_v32  ;;  %v1222_v31 = vld [vmem:[#allocation4 + $0xc8] sm:$0xff]  ;;  %v1219_v32 = vld [vmem:[#allocation4 + $0xb0] sm:$0xff] }
 0x1e3   :  { %1178 = vmatpush.msra.mxu3 %v1025_v33  ;;  %1138 = vmatpush.msra.mxu1 %v961_v34  ;;  %v1220_v33 = vld [vmem:[#allocation4 + $0xb8] sm:$0xff] }
 0x1e4   :  { %1162 = vmatpush.msra.mxu2 %v985_v35  ;;  %1122 = vmatpush.msra.mxu0 %v921_v36  ;;  %v1260_v34 = vld [vmem:[#allocation4 + $0x1f8] sm:$0xff]  ;;  %v1217_v35 = vld [vmem:[#allocation4 + $0xa0] sm:$0xff] }
 0x1e5   :  { %1179 = vmatpush.msra.mxu3 %v1023_v37  ;;  %1139 = vmatpush.msra.mxu1 %v959_v38  ;;  %v1257_v36 = vld [vmem:[#allocation4 + $0x1e0] sm:$0xff]  ;;  %v1218_v37 = vld [vmem:[#allocation4 + $0xa8] sm:$0xff] }
 0x1e6   :  { %1163 = vmatpush.msra.mxu2 %v983_v39  ;;  %1123 = vmatpush.msra.mxu0 %v919_v40  ;;  %v1258_v38 = vld [vmem:[#allocation4 + $0x1e8] sm:$0xff]  ;;  %v1215_v39 = vld [vmem:[#allocation4 + $0x90] sm:$0xff] }
 0x1e7   :  { %1180 = vmatpush.msra.mxu3 %v1021_v41  ;;  %1140 = vmatpush.msra.mxu1 %v957_v42  ;;  %v1255_v40 = vld [vmem:[#allocation4 + $0x1d0] sm:$0xff]  ;;  %v1216_v41 = vld [vmem:[#allocation4 + $0x98] sm:$0xff] }
 0x1e8   :  { %1164 = vmatpush.msra.mxu2 %v981_v43  ;;  %1124 = vmatpush.msra.mxu0 %v917_v44  ;;  %v1256_v42 = vld [vmem:[#allocation4 + $0x1d8] sm:$0xff]  ;;  %v1213_v43 = vld [vmem:[#allocation4 + $0x80] sm:$0xff] }
 0x1e9   :  { %1181 = vmatpush.msra.mxu3 %v1019_v45  ;;  %1141 = vmatpush.msra.mxu1 %v955_v46  ;;  %v1253_v44 = vld [vmem:[#allocation4 + $0x1c0] sm:$0xff]  ;;  %v1214_v45 = vld [vmem:[#allocation4 + $0x88] sm:$0xff] }
 0x1ea   :  { %1165 = vmatpush.msra.mxu2 %v979_v47  ;;  %1125 = vmatpush.msra.mxu0 %v915_v48  ;;  %v1254_v46 = vld [vmem:[#allocation4 + $0x1c8] sm:$0xff]  ;;  %v1211_v47 = vld [vmem:[#allocation4 + $0x70] sm:$0xff] }
 0x1eb   :  { %1182 = vmatpush.msra.mxu3 %v1017_v49  ;;  %1142 = vmatpush.msra.mxu1 %v953_v50  ;;  %v1251_v48 = vld [vmem:[#allocation4 + $0x1b0] sm:$0xff]  ;;  %v1212_v49 = vld [vmem:[#allocation4 + $0x78] sm:$0xff] }
 0x1ec   :  { %1166 = vmatpush.msra.mxu2 %v977_v51  ;;  %1126 = vmatpush.msra.mxu0 %v913_v52  ;;  %v1252_v50 = vld [vmem:[#allocation4 + $0x1b8] sm:$0xff]  ;;  %v1249_v51 = vld [vmem:[#allocation4 + $0x1a0] sm:$0xff] }
 0x1ed   :  { %1183 = vmatpush.msra.mxu3 %v1015_v53  ;;  %1143 = vmatpush.msra.mxu1 %v951_v54  ;;  %v1209_v52 = vld [vmem:[#allocation4 + $0x60] sm:$0xff]  ;;  %v1210_v53 = vld [vmem:[#allocation4 + $0x68] sm:$0xff] }
 0x1ee   :  { %1167 = vmatpush.msra.mxu2 %v975_v55  ;;  %1127 = vmatpush.msra.mxu0 %v911_v56  ;;  %v1250_v54 = vld [vmem:[#allocation4 + $0x1a8] sm:$0xff]  ;;  %v1207_v55 = vld [vmem:[#allocation4 + $0x50] sm:$0xff] }
 0x1ef   :  { %1184 = vmatpush.msra.mxu3 %v1013_v57  ;;  %1144 = vmatpush.msra.mxu1 %v949_v58  ;;  %v1247_v56 = vld [vmem:[#allocation4 + $0x190] sm:$0xff]  ;;  %v1208_v57 = vld [vmem:[#allocation4 + $0x58] sm:$0xff] }
 0x1f0   :  { %1168 = vmatpush.msra.mxu2 %v973_v59  ;;  %1113 = vmatmul.f32.vlgmr.msrb.gmra.mxu3 %v1032_v60  ;;  %v1248_v58 = vld [vmem:[#allocation4 + $0x198] sm:$0xff]  ;;  %v1205_v59 = vld [vmem:[#allocation4 + $0x40] sm:$0xff] }
 0x1f1   :  { %1185 = vmatpush.msra.mxu3 %v1011_v61  ;;  %1145 = vmatpush.msra.mxu1 %v947_v62  ;;  %v1206_v61 = vld [vmem:[#allocation4 + $0x48] sm:$0xff] }
 0x1f2   :  { %1169 = vmatpush.msra.mxu2 %v971_v63  ;;  %1128 = vmatpush.msra.mxu0 %v909_v0  ;;  %v1246_v62 = vld [vmem:[#allocation4 + $0x188] sm:$0xff]  ;;  %v1203_v63 = vld [vmem:[#allocation4 + $0x30] sm:$0xff] }
 0x1f3   :  { %1186 = vmatpush.msra.mxu3 %v1009_v1  ;;  %1146 = vmatpush.msra.mxu1 %v945_v2  ;;  %v1243_v0 = vld [vmem:[#allocation4 + $0x170] sm:$0xff]  ;;  %v1204_v1 = vld [vmem:[#allocation4 + $0x38] sm:$0xff] }
 0x1f4   :  { %1170 = vmatpush.msra.mxu2 %v969_v3  ;;  %1073 = vmatmul.f32.vlgmr.msrb.gmra.mxu1 %v1030_v4  ;;  %v1244_v2 = vld [vmem:[#allocation4 + $0x178] sm:$0xff]  ;;  %v1241_v3 = vld [vmem:[#allocation4 + $0x160] sm:$0xff] }
 0x1f5   :  { %1187 = vmatpush.msra.mxu3 %v1007_v5  ;;  %1147 = vmatpush.msra.mxu1 %v943_v6  ;;  %v1202_v5 = vld [vmem:[#allocation4 + $0x28] sm:$0xff] }
 0x1f6   :  { %1129 = vmatpush.msra.mxu0 %v907_v7  ;;  %1171 = vmatpush.msra.mxu2 %v967_v8  ;;  %v1242_v6 = vld [vmem:[#allocation4 + $0x168] sm:$0xff]  ;;  %v1239_v7 = vld [vmem:[#allocation4 + $0x150] sm:$0xff] }
 0x1f7   :  { %1188 = vmatpush.msra.mxu3 %v1005_v9  ;;  %1148 = vmatpush.msra.mxu1 %v941_v10  ;;  %v1199_v8 = vld [vmem:[#allocation4 + $0x10] sm:$0xff]  ;;  %v1200_v9 = vld [vmem:[#allocation4 + $0x18] sm:$0xff] }
 0x1f8   :  { %1130 = vmatpush.msra.mxu0 %v905_v11  ;;  %1172 = vmatpush.msra.mxu2 %v965_v12  ;;  %v764_v10 = vld [vmem:[%s4887_s8] sm:$0x3]  ;;  %v1237_v12 = vld [vmem:[#allocation4 + $0x140] sm:$0xff]  ;;  %s4892_s8 = sld [smem:[#allocation45_spill]] }
 0x1f9   :  { %1189 = vmatpush.msra.mxu3 %v1003_v13  ;;  %1149 = vmatpush.msra.mxu1 %v939_v14  ;;  %v1240_v11 = vld [vmem:[#allocation4 + $0x158] sm:$0xff]  ;;  %v1197_v13 = vld [vmem:[#allocation4] sm:$0xff]  ;;  %v1198_v14 = vld [vmem:[#allocation4 + $0x8] sm:$0xff] }
 0x1fa   :  { %1173 = vmatmul.f32.vlgmr.msra.gmra.mxu2 %v4469_v25  ;;  %1131 = vmatpush.msra.mxu0 %v903_v15  ;;  %v1226_v25 = vld [vmem:[#allocation4 + $0xe8] sm:$0xff] }
 0x1fb   :  { %1190 = vmatpush.msra.mxu3 %v1001_v16  ;;  %1150 = vmatpush.msra.mxu1 %v937_v17  ;;  %v1238_v15 = vld [vmem:[#allocation4 + $0x148] sm:$0xff]  ;;  %v766_v16 = vperm.slane %v764_v10, 0 }
 0x1fc   :  { %1132 = vmatpush.msra.mxu0 %v901_v18  ;;  %1307 = vmatpush.msrb.mxu2 %v1228_v24  ;;  %v767_v18 = vperm.slane %v764_v10, 1  ;;  %v1233_v24 = vld [vmem:[#allocation4 + $0x120] sm:$0xff] }
 0x1fd   :  { %1191 = vmatpush.msra.mxu3 %v999_v19  ;;  %1151 = vmatpush.msra.mxu1 %v935_v20  ;;  %v1235_v19 = vld [vmem:[#allocation4 + $0x130] sm:$0xff]  ;;  %v1236_v20 = vld [vmem:[#allocation4 + $0x138] sm:$0xff] }
 0x1fe   :  { %1133 = vmatmul.f32.vlgmr.msra.gmra.mxu0 %v4471_v26  ;;  %1308 = vmatpush.msrb.mxu2 %v1226_v25  ;;  %v1259_v26 = vld [vmem:[#allocation4 + $0x1f0] sm:$0xff] }
 0x1ff   :  { %1192 = vmatpush.msra.mxu3 %v997_v21  ;;  %1152 = vmatpush.msra.mxu1 %v933_v22 }
 0x200   :  { %1193 = vmatmul.f32.vlgmr.msra.gmra.mxu3 %v1032_v60  ;;  %1153 = vmatmul.f32.vlgmr.msra.gmra.mxu1 %v1030_v4  ;;  %v1245_v60 = vld [vmem:[#allocation4 + $0x180] sm:$0xff] }
 0x201   :  { %1267 = vmatpush.msrb.mxu0 %v1227_v23  ;;  %1309 = vmatpush.msrb.mxu2 %v1224_v29  ;;  %v1201_v4 = vld [vmem:[#allocation4 + $0x20] sm:$0xff]  ;;  %v1231_v29 = vld [vmem:[#allocation4 + $0x110] sm:$0xff] }
 0x202   :  { %1287 = vmatpush.msrb.mxu1 %v1259_v26  ;;  %1327 = vmatpush.msrb.mxu3 %v1260_v34  ;;  %v1229_v26 = vld [vmem:[#allocation4 + $0x100] sm:$0xff] }
 0x203   :  { %1268 = vmatpush.msrb.mxu0 %v1225_v27  ;;  %1310 = vmatpush.msrb.mxu2 %v1222_v31  ;;  %v1234_v27 = vld [vmem:[#allocation4 + $0x128] sm:$0xff] }
 0x204   :  { %1288 = vmatpush.msrb.mxu1 %v1257_v36  ;;  %1328 = vmatpush.msrb.mxu3 %v1258_v38 }
 0x205   :  { %1269 = vmatpush.msrb.mxu0 %v1223_v28  ;;  %1311 = vmatpush.msrb.mxu2 %v1220_v33  ;;  %v1230_v33 = vld [vmem:[#allocation4 + $0x108] sm:$0xff] }
 0x206   :  { %1289 = vmatpush.msrb.mxu1 %v1255_v40  ;;  %1329 = vmatpush.msrb.mxu3 %v1256_v42 }
 0x207   :  { %1270 = vmatpush.msrb.mxu0 %v1221_v30  ;;  %1312 = vmatpush.msrb.mxu2 %v1218_v37  ;;  %v1232_v30 = vld [vmem:[#allocation4 + $0x118] sm:$0xff] }
 0x208   :  { %1290 = vmatpush.msrb.mxu1 %v1253_v44  ;;  %1330 = vmatpush.msrb.mxu3 %v1254_v46 }
 0x209   :  { %1271 = vmatpush.msrb.mxu0 %v1219_v32  ;;  %1313 = vmatpush.msrb.mxu2 %v1216_v41 }
 0x20a   :  { %1291 = vmatpush.msrb.mxu1 %v1251_v48  ;;  %1331 = vmatpush.msrb.mxu3 %v1252_v50 }
 0x20b   :  { %1272 = vmatpush.msrb.mxu0 %v1217_v35  ;;  %1314 = vmatpush.msrb.mxu2 %v1214_v45 }
 0x20c   :  { %1292 = vmatpush.msrb.mxu1 %v1249_v51  ;;  %1332 = vmatpush.msrb.mxu3 %v1250_v54 }
 0x20d   :  { %1273 = vmatpush.msrb.mxu0 %v1215_v39  ;;  %1315 = vmatpush.msrb.mxu2 %v1212_v49 }
 0x20e   :  { %1293 = vmatpush.msrb.mxu1 %v1247_v56  ;;  %1333 = vmatpush.msrb.mxu3 %v1248_v58 }
 0x20f   :  { %1274 = vmatpush.msrb.mxu0 %v1213_v43  ;;  %1316 = vmatpush.msrb.mxu2 %v1210_v53 }
 0x210   :  { %1294 = vmatpush.msrb.mxu1 %v1245_v60  ;;  %1334 = vmatpush.msrb.mxu3 %v1246_v62 }
 0x211   :  { %1275 = vmatpush.msrb.mxu0 %v1211_v47  ;;  %1317 = vmatpush.msrb.mxu2 %v1208_v57 }
 0x212   :  { %1295 = vmatpush.msrb.mxu1 %v1243_v0  ;;  %1335 = vmatpush.msrb.mxu3 %v1244_v2 }
 0x213   :  { %1276 = vmatpush.msrb.mxu0 %v1209_v52  ;;  %1318 = vmatpush.msrb.mxu2 %v1206_v61 }
 0x214   :  { %1296 = vmatpush.msrb.mxu1 %v1241_v3  ;;  %1336 = vmatpush.msrb.mxu3 %v1242_v6  ;;  %v1261_v6 = vld [vmem:[%s4888_s27] sm:$0x3]  ;;  %s4893_s27 = sld [smem:[#allocation42_spill]] }
 0x215   :  { %1277 = vmatpush.msrb.mxu0 %v1207_v55  ;;  %1319 = vmatpush.msrb.mxu2 %v1204_v1 }
 0x216   :  { %1297 = vmatpush.msrb.mxu1 %v1239_v7  ;;  %1337 = vmatpush.msrb.mxu3 %v1240_v11  ;;  %v1263_v7 = vperm.slane %v1261_v6, 0 }
 0x217   :  { %1278 = vmatpush.msrb.mxu0 %v1205_v59  ;;  %1320 = vmatpush.msrb.mxu2 %v1202_v5 }
 0x218   :  { %1298 = vmatpush.msrb.mxu1 %v1237_v12  ;;  %1338 = vmatpush.msrb.mxu3 %v1238_v15 }
 0x219   :  { %1279 = vmatpush.msrb.mxu0 %v1203_v63  ;;  %1321 = vmatpush.msrb.mxu2 %v1200_v9  ;;  %v1264_v9 = vperm.slane %v1261_v6, 1  ;;  %v1454_v6 = vld [vmem:[#allocation12 + $0x1d0] sm:$0xff] }
 0x21a   :  { %1299 = vmatpush.msrb.mxu1 %v1235_v19  ;;  %1339 = vmatpush.msrb.mxu3 %v1236_v20 }
 0x21b   :  { %1280 = vmatpush.msrb.mxu0 %v1201_v4  ;;  %1322 = vmatpush.msrb.mxu2 %v1198_v14 }
 0x21c   :  { %1300 = vmatpush.msrb.mxu1 %v1233_v24  ;;  %1340 = vmatpush.msrb.mxu3 %v1234_v27 }
 0x21d   :  { %1281 = vmatpush.msrb.mxu0 %v1199_v8 }
 0x21e   :  { %1301 = vmatpush.msrb.mxu1 %v1231_v29  ;;  %1341 = vmatpush.msrb.mxu3 %v1232_v30 }
 0x21f   :  { %1282 = vmatpush.msrb.mxu0 %v1197_v13 }
 0x220   :  { %1302 = vmatpush.msrb.mxu1 %v1229_v26  ;;  %1342 = vmatpush.msrb.mxu3 %v1230_v33 }
 0x254   :  { %v787_v17 = vpop.f32.mrf.mxu0 }
 0x255   :  { %v788_v23 = vadd.f32 %v787_v17, %v766_v16 }
 0x25a   :  { %v827_v21 = vpop.f32.mrf.mxu2 }
 0x25b   :  { %v828_v25 = vadd.f32 %v827_v21, %v767_v18 }
 0x25c   :  { %v1054_v42 = vpop.f32.mrf.mxu0 }
 0x25d   :  { %v807_v22 = vpop.f32.mrf.mxu1 }
 0x25e   :  { %v4478_v28 = vadd.f32 %v807_v22, %v788_v23 }
 0x260   :  { %v851_v34 = vsel %vm850_vm0, %v4478_v28, 0.0  ;;  %v863_v38 = vmul.f32 %v4478_v28, %v4478_v28 }
 0x262   :  { %v865_v40 = vsel %vm850_vm0, %v863_v38, 0.0  ;;  %v1094_v44 = vpop.f32.mrf.mxu2 }
 0x263   :  { %v847_v31 = vpop.f32.mrf.mxu3 }
 0x264   :  { %v4480_v32 = vadd.f32 %v847_v31, %v828_v25 }
 0x266   :  { %v852_v35 = vsel %vm850_vm0, %v4480_v32, 0.0  ;;  %v864_v37 = vmul.f32 %v4480_v32, %v4480_v32 }
 0x267   :  { %v853_v36 = vadd.f32 %v852_v35, %v851_v34 }
 0x268   :  { %v866_v39 = vsel %vm850_vm0, %v864_v37, 0.0 }
 0x269   :  { %854 = vadd.xlane.f32.xlu0 %v853_v36  ;;  %v867_v41 = vadd.f32 %v866_v39, %v865_v40 }
 0x271   :  { %868 = vadd.xlane.f32.xlu0 %v867_v41  ;;  %v1074_v43 = vpop.f32.mrf.mxu1 }
 0x272   :  { %v1075_v45 = vadd.f32 %v1074_v43, %v1054_v42 }
 0x273   :  { %v1114_v46 = vpop.f32.mrf.mxu3 }
 0x274   :  { %v1095_v47 = vadd.f32 %v1094_v44, %v1075_v45 }
 0x276   :  { %v1115_v48 = vadd.f32 %v1114_v46, %v1095_v47 }
 0x278   :  { %1283 = vmatmul.f32.vlgmr.msrb.gmra.mxu0 %v1115_v48  ;;  %1323 = vmatmul.f32.vlgmr.msrb.gmra.mxu2 %v1115_v48 }
 0x27b   :  { %v1134_v49 = vpop.f32.mrf.mxu0 }
 0x27d   :  { %v1154_v50 = vpop.f32.mrf.mxu1  ;;  %v1174_v51 = vpop.f32.mrf.mxu2 }
 0x27e   :  { %v1155_v52 = vadd.f32 %v1154_v50, %v1134_v49  ;;  %v1427_v49 = vld [vmem:[#allocation12 + $0xf8] sm:$0xff] }
 0x27f   :  { %v1459_v50 = vld [vmem:[#allocation12 + $0x1f8] sm:$0xff]  ;;  %1500 = vmatpush.msra.mxu2 %v1427_v49  ;;  %v1688_v49 = vld [vmem:[#allocation9 + $0xf0] sm:$0xff] }
 0x280   :  { %v1175_v53 = vadd.f32 %v1174_v51, %v1155_v52  ;;  %1520 = vmatpush.msra.mxu3 %v1459_v50  ;;  %v1425_v51 = vld [vmem:[#allocation12 + $0xe8] sm:$0xff] }
 0x281   :  { %v1457_v52 = vld [vmem:[#allocation12 + $0x1e8] sm:$0xff]  ;;  %1501 = vmatpush.msra.mxu2 %v1425_v51  ;;  %v1404_v51 = vld [vmem:[#allocation12 + $0x40] sm:$0xff] }
 0x282   :  { %1521 = vmatpush.msra.mxu3 %v1457_v52  ;;  %v1720_v50 = vld [vmem:[#allocation9 + $0x1f0] sm:$0xff]  ;;  %v1436_v52 = vld [vmem:[#allocation12 + $0x140] sm:$0xff] }
 0x283   :  { %v1194_v54 = vpop.f32.mrf.mxu3 }
 0x284   :  { %v1195_v55 = vadd.f32 %v1194_v54, %v1175_v53  ;;  %v1423_v53 = vld [vmem:[#allocation12 + $0xd8] sm:$0xff] }
 0x285   :  { %v1455_v54 = vld [vmem:[#allocation12 + $0x1d8] sm:$0xff]  ;;  %1502 = vmatpush.msra.mxu2 %v1423_v53 }
 0x286   :  { %1303 = vmatmul.f32.vlgmr.msrb.gmra.mxu1 %v1195_v55  ;;  %1343 = vmatmul.f32.vlgmr.msrb.gmra.mxu3 %v1195_v55  ;;  %v1421_v55 = vld [vmem:[#allocation12 + $0xc8] sm:$0xff] }
 0x287   :  { %1522 = vmatpush.msra.mxu3 %v1455_v54  ;;  %1503 = vmatpush.msra.mxu2 %v1421_v55  ;;  %v1686_v54 = vld [vmem:[#allocation9 + $0xe0] sm:$0xff] }
 0x288   :  { %v1718_v55 = vld [vmem:[#allocation9 + $0x1e0] sm:$0xff] }
 0x2dc   :  { %v855_v56 = vpop.xlane.xlu0 %854 }
 0x2dd   :  { %v856_v57 = vrot.slane %v855_v56, 4 }
 0x2df   :  { %v857_v58 = vadd.f32 %v856_v57, %v855_v56  ;;  %v1453_v56 = vld [vmem:[#allocation12 + $0x1c8] sm:$0xff]  ;;  %v1419_v57 = vld [vmem:[#allocation12 + $0xb8] sm:$0xff] }
 0x2e0   :  { %1523 = vmatpush.msra.mxu3 %v1453_v56  ;;  %1504 = vmatpush.msra.mxu2 %v1419_v57  ;;  %v1402_v56 = vld [vmem:[#allocation12 + $0x30] sm:$0xff] }
 0x2e1   :  { %v858_v59 = vrot.slane %v857_v58, 2  ;;  %v1434_v57 = vld [vmem:[#allocation12 + $0x130] sm:$0xff] }
 0x2e3   :  { %v859_v60 = vadd.f32 %v858_v59, %v857_v58  ;;  %v1451_v58 = vld [vmem:[#allocation12 + $0x1b8] sm:$0xff]  ;;  %v1417_v59 = vld [vmem:[#allocation12 + $0xa8] sm:$0xff] }
 0x2e4   :  { %v869_v61 = vpop.xlane.xlu0 %868  ;;  %1524 = vmatpush.msra.mxu3 %v1451_v58  ;;  %1505 = vmatpush.msra.mxu2 %v1417_v59  ;;  %v1684_v59 = vld [vmem:[#allocation9 + $0xd0] sm:$0xff] }
 0x2e5   :  { %v870_v62 = vrot.slane %v869_v61, 4  ;;  %v860_v63 = vrot.slane %v859_v60, 1 }
 0x2e7   :  { %v871_v0 = vadd.f32 %v870_v62, %v869_v61  ;;  %v861_v1 = vadd.f32 %v860_v63, %v859_v60  ;;  %v1449_v60 = vld [vmem:[#allocation12 + $0x1a8] sm:$0xff]  ;;  %v1426_v61 = vld [vmem:[#allocation12 + $0xf0] sm:$0xff]  ;;  %v1415_v63 = vld [vmem:[#allocation12 + $0x98] sm:$0xff] }
 0x2e8   :  { %v1458_v62 = vld [vmem:[#allocation12 + $0x1f0] sm:$0xff]  ;;  %1460 = vmatpush.msra.mxu0 %v1426_v61  ;;  %1525 = vmatpush.msra.mxu3 %v1449_v60  ;;  %v1400_v61 = vld [vmem:[#allocation12 + $0x20] sm:$0xff] }
 0x2e9   :  { %v872_v2 = vrot.slane %v871_v0, 2  ;;  %3506 = vpush %v861_v1  ;;  %1480 = vmatpush.msra.mxu1 %v1458_v62  ;;  %v1424_v1 = vld [vmem:[#allocation12 + $0xe0] sm:$0xff]  ;;  %1506 = vmatpush.msra.mxu2 %v1415_v63  ;;  %v1716_v60 = vld [vmem:[#allocation9 + $0x1d0] sm:$0xff] }
 0x2ea   :  { %1461 = vmatpush.msra.mxu0 %v1424_v1  ;;  %v1432_v62 = vld [vmem:[#allocation12 + $0x120] sm:$0xff]  ;;  %v1680_v1 = vld [vmem:[#allocation9 + $0xb0] sm:$0xff] }
 0x2eb   :  { %v873_v3 = vadd.f32 %v872_v2, %v871_v0  ;;  %v1447_v0 = vld [vmem:[#allocation12 + $0x198] sm:$0xff]  ;;  %v1413_v2 = vld [vmem:[#allocation12 + $0x88] sm:$0xff] }
 0x2ec   :  { %1526 = vmatpush.msra.mxu3 %v1447_v0  ;;  %1507 = vmatpush.msra.mxu2 %v1413_v2  ;;  %v1682_v63 = vld [vmem:[#allocation9 + $0xc0] sm:$0xff]  ;;  %v1712_v2 = vld [vmem:[#allocation9 + $0x1b0] sm:$0xff] }
 0x2ed   :  { %v874_v4 = vrot.slane %v873_v3, 1  ;;  %v1714_v0 = vld [vmem:[#allocation9 + $0x1c0] sm:$0xff] }
 0x2ef   :  { %v875_v5 = vadd.f32 %v874_v4, %v873_v3  ;;  %v1456_v3 = vld [vmem:[#allocation12 + $0x1e0] sm:$0xff]  ;;  %v1445_v4 = vld [vmem:[#allocation12 + $0x188] sm:$0xff] }
 0x2f0   :  { %1481 = vmatpush.msra.mxu1 %v1456_v3  ;;  %1527 = vmatpush.msra.mxu3 %v1445_v4  ;;  %v1678_v3 = vld [vmem:[#allocation9 + $0xa0] sm:$0xff] }
 0x2f1   :  { %3508 = vpush %v875_v5  ;;  %v1422_v5 = vld [vmem:[#allocation12 + $0xd0] sm:$0xff]  ;;  %v1710_v4 = vld [vmem:[#allocation9 + $0x1a0] sm:$0xff] }
 0x2f2   :  { %1462 = vmatpush.msra.mxu0 %v1422_v5  ;;  %1482 = vmatpush.msra.mxu1 %v1454_v6  ;;  %v1676_v5 = vld [vmem:[#allocation9 + $0x90] sm:$0xff] }
 0x2f3   :  { %v1708_v6 = vld [vmem:[#allocation9 + $0x190] sm:$0xff] }
 0x2f5   :  { %v1284_v8 = vpop.f32.mrf.mxu0 }
 0x2f6   :  { %v1285_v12 = vadd.f32 %v1284_v8, %v1263_v7  ;;  %v1420_v7 = vld [vmem:[#allocation12 + $0xc0] sm:$0xff] }
 0x2f7   :  { %v1452_v8 = vld [vmem:[#allocation12 + $0x1c0] sm:$0xff]  ;;  %1463 = vmatpush.msra.mxu0 %v1420_v7 }
 0x2f8   :  { %1483 = vmatpush.msra.mxu1 %v1452_v8  ;;  %v1674_v7 = vld [vmem:[#allocation9 + $0x80] sm:$0xff] }
 0x2f9   :  { %v1706_v8 = vld [vmem:[#allocation9 + $0x180] sm:$0xff] }
 0x2fb   :  { %v1324_v10 = vpop.f32.mrf.mxu2 }
 0x2fc   :  { %v1325_v13 = vadd.f32 %v1324_v10, %v1264_v9  ;;  %v1411_v9 = vld [vmem:[#allocation12 + $0x78] sm:$0xff] }
 0x2fd   :  { %v1443_v10 = vld [vmem:[#allocation12 + $0x178] sm:$0xff]  ;;  %1508 = vmatpush.msra.mxu2 %v1411_v9  ;;  %v1672_v9 = vld [vmem:[#allocation9 + $0x70] sm:$0xff] }
 0x2fe   :  { %1528 = vmatpush.msra.mxu3 %v1443_v10  ;;  %v1704_v10 = vld [vmem:[#allocation9 + $0x170] sm:$0xff] }
 0x303   :  { %v1304_v11 = vpop.f32.mrf.mxu1 }
 0x304   :  { %v4493_v14 = vadd.f32 %v1304_v11, %v1285_v12  ;;  %v1418_v12 = vld [vmem:[#allocation12 + $0xb0] sm:$0xff] }
 0x305   :  { %1464 = vmatpush.msra.mxu0 %v1418_v12  ;;  %v1702_v12 = vld [vmem:[#allocation9 + $0x160] sm:$0xff] }
 0x306   :  { %v1347_v17 = vsel %vm850_vm0, %v4493_v14, 0.0  ;;  %v1359_v21 = vmul.f32 %v4493_v14, %v4493_v14 }
 0x308   :  { %v1361_v23 = vsel %vm850_vm0, %v1359_v21, 0.0  ;;  %v1439_v21 = vld [vmem:[#allocation12 + $0x158] sm:$0xff] }
 0x309   :  { %v1344_v15 = vpop.f32.mrf.mxu3 }
 0x30a   :  { %v4495_v16 = vadd.f32 %v1344_v15, %v1325_v13  ;;  %v1450_v13 = vld [vmem:[#allocation12 + $0x1b0] sm:$0xff]  ;;  %v1409_v15 = vld [vmem:[#allocation12 + $0x68] sm:$0xff] }
 0x30b   :  { %1484 = vmatpush.msra.mxu1 %v1450_v13  ;;  %1509 = vmatpush.msra.mxu2 %v1409_v15  ;;  %v1398_v13 = vld [vmem:[#allocation12 + $0x10] sm:$0xff] }
 0x30c   :  { %v1348_v18 = vsel %vm850_vm0, %v4495_v16, 0.0  ;;  %v1360_v20 = vmul.f32 %v4495_v16, %v4495_v16  ;;  %v1430_v15 = vld [vmem:[#allocation12 + $0x110] sm:$0xff] }
 0x30d   :  { %v1349_v19 = vadd.f32 %v1348_v18, %v1347_v17  ;;  %v1441_v17 = vld [vmem:[#allocation12 + $0x168] sm:$0xff]  ;;  %v1416_v18 = vld [vmem:[#allocation12 + $0xa0] sm:$0xff] }
 0x30e   :  { %v1362_v22 = vsel %vm850_vm0, %v1360_v20, 0.0  ;;  %v1407_v20 = vld [vmem:[#allocation12 + $0x58] sm:$0xff]  ;;  %1529 = vmatpush.msra.mxu3 %v1441_v17  ;;  %1465 = vmatpush.msra.mxu0 %v1416_v18  ;;  %v1668_v17 = vld [vmem:[#allocation9 + $0x50] sm:$0xff] }
 0x30f   :  { %1350 = vadd.xlane.f32.xlu1 %v1349_v19  ;;  %v1363_v24 = vadd.f32 %v1362_v22, %v1361_v23  ;;  %v1448_v19 = vld [vmem:[#allocation12 + $0x1a0] sm:$0xff]  ;;  %v1414_v22 = vld [vmem:[#allocation12 + $0x90] sm:$0xff]  ;;  %1510 = vmatpush.msra.mxu2 %v1407_v20 }
 0x310   :  { %v1446_v23 = vld [vmem:[#allocation12 + $0x190] sm:$0xff]  ;;  %1485 = vmatpush.msra.mxu1 %v1448_v19  ;;  %1530 = vmatpush.msra.mxu3 %v1439_v21  ;;  %v1396_v19 = vld [vmem:[#allocation12] sm:$0xff] }
 0x311   :  { %1466 = vmatpush.msra.mxu0 %v1414_v22  ;;  %v1700_v18 = vld [vmem:[#allocation9 + $0x150] sm:$0xff]  ;;  %v1428_v20 = vld [vmem:[#allocation12 + $0x100] sm:$0xff] }
 0x312   :  { %1486 = vmatpush.msra.mxu1 %v1446_v23  ;;  %v1666_v21 = vld [vmem:[#allocation9 + $0x40] sm:$0xff]  ;;  %v1664_v23 = vld [vmem:[#allocation9 + $0x30] sm:$0xff] }
 0x313   :  { %v1698_v22 = vld [vmem:[#allocation9 + $0x140] sm:$0xff] }
 0x317   :  { %1364 = vadd.xlane.f32.xlu1 %v1363_v24  ;;  %v1405_v24 = vld [vmem:[#allocation12 + $0x48] sm:$0xff] }
 0x318   :  { %1511 = vmatpush.msra.mxu2 %v1405_v24  ;;  %v1696_v24 = vld [vmem:[#allocation9 + $0x130] sm:$0xff] }
 0x31a   :  { %s3507_s9 = spop %3506 }
 0x31b   :  { %s4507_s13 = smul.f32 0.001953125, %s3507_s9 }
 0x31d   :  { %s878_s10 = smul.f32 512.0, %s4507_s13 }
 0x31f   :  { %s879_s2 = smul.f32 %s878_s10, %s4507_s13 }
 0x322   :  { %s3509_s4 = spop %3508 }
 0x323   :  { %s880_s11 = ssub.f32 %s3509_s4, %s879_s2 }
 0x325   :  { %s881_s15 = smul.f32 0.0019569471, %s880_s11 }
 0x327   :  { %v882_v27 = vstv %s881_s15 }
 0x328   :  { %3645 = vrsqrt.f32 %v882_v27  ;;  %vm889_vm2 = vweird.f32 %v882_v27 }
 0x32e   :  { %v3646_v25 = vpop.eup %3645 }
 0x32f   :  { %v884_v29 = vmul.f32 %v3646_v25, %v882_v27  ;;  %vm890_vm1 = vweird.f32 %v3646_v25  ;;  %v1437_v27 = vld [vmem:[#allocation12 + $0x148] sm:$0xff] }
 0x330   :  { %vm891_vm3 = vmor %vm889_vm2, %vm890_vm1  ;;  %1531 = vmatpush.msra.mxu3 %v1437_v27  ;;  %v1662_v27 = vld [vmem:[#allocation9 + $0x20] sm:$0xff] }
 0x331   :  { %v885_v30 = vmul.f32 %v3646_v25, %v884_v29  ;;  %v1444_v29 = vld [vmem:[#allocation12 + $0x180] sm:$0xff] }
 0x332   :  { %1487 = vmatpush.msra.mxu1 %v1444_v29  ;;  %v1660_v29 = vld [vmem:[#allocation9 + $0x10] sm:$0xff] }
 0x333   :  { %v886_v31 = vmul.f32 0.5, %v885_v30 }
 0x335   :  { %v887_v26 = vsub.f32 1.5, %v886_v31  ;;  %v1403_v31 = vld [vmem:[#allocation12 + $0x38] sm:$0xff] }
 0x336   :  { %1512 = vmatpush.msra.mxu2 %v1403_v31  ;;  %v1658_v31 = vld [vmem:[#allocation9] sm:$0xff] }
 0x337   :  { %v888_v33 = vmul.f32 %v3646_v25, %v887_v26  ;;  %v1435_v26 = vld [vmem:[#allocation12 + $0x138] sm:$0xff] }
 0x338   :  { %1532 = vmatpush.msra.mxu3 %v1435_v26  ;;  %v1690_v26 = vld [vmem:[#allocation9 + $0x100] sm:$0xff] }
 0x339   :  { %v892_v34 = vsel %vm891_vm3, %v3646_v25, %v888_v33  ;;  %v1412_v25 = vld [vmem:[#allocation12 + $0x80] sm:$0xff] }
 0x33a   :  { %3510 = vpush %v892_v34  ;;  %v1410_v34 = vld [vmem:[#allocation12 + $0x70] sm:$0xff]  ;;  %1467 = vmatpush.msra.mxu0 %v1412_v25  ;;  %v1694_v25 = vld [vmem:[#allocation9 + $0x120] sm:$0xff] }
 0x33c   :  { %1468 = vmatpush.msra.mxu0 %v1410_v34  ;;  %v1554_v34 = vld [vmem:[%s4889_s18 + $0x70] sm:$0xff] }
 0x36b   :  { %s4511_s21 = spop %3510 }
 0x382   :  { %v1351_v35 = vpop.xlane.xlu1 %1350 }
 0x383   :  { %v1352_v36 = vrot.slane %v1351_v35, 4 }
 0x385   :  { %v1353_v37 = vadd.f32 %v1352_v36, %v1351_v35  ;;  %v1442_v35 = vld [vmem:[#allocation12 + $0x170] sm:$0xff]  ;;  %v1401_v36 = vld [vmem:[#allocation12 + $0x28] sm:$0xff] }
 0x386   :  { %1488 = vmatpush.msra.mxu1 %v1442_v35  ;;  %1513 = vmatpush.msra.mxu2 %v1401_v36  ;;  %v1571_v35 = vld [vmem:[%s4889_s18 + $0xf8] sm:$0xff]  ;;  %v1553_v36 = vld [vmem:[%s4889_s18 + $0x68] sm:$0xff] }
 0x387   :  { %v1354_v38 = vrot.slane %v1353_v37, 2 }
 0x389   :  { %v1355_v39 = vadd.f32 %v1354_v38, %v1353_v37  ;;  %v1433_v37 = vld [vmem:[#allocation12 + $0x128] sm:$0xff] }
 0x38a   :  { %v1365_v40 = vpop.xlane.xlu1 %1364  ;;  %1533 = vmatpush.msra.mxu3 %v1433_v37  ;;  %v1570_v37 = vld [vmem:[%s4889_s18 + $0xf0] sm:$0xff] }
 0x38b   :  { %v1366_v41 = vrot.slane %v1365_v40, 4  ;;  %v1356_v42 = vrot.slane %v1355_v39, 1 }
 0x38d   :  { %v1367_v43 = vadd.f32 %v1366_v41, %v1365_v40  ;;  %v1357_v44 = vadd.f32 %v1356_v42, %v1355_v39  ;;  %v1408_v39 = vld [vmem:[#allocation12 + $0x60] sm:$0xff]  ;;  %v1399_v41 = vld [vmem:[#allocation12 + $0x18] sm:$0xff] }
 0x38e   :  { %v1440_v40 = vld [vmem:[#allocation12 + $0x160] sm:$0xff]  ;;  %v1431_v42 = vld [vmem:[#allocation12 + $0x118] sm:$0xff]  ;;  %1469 = vmatpush.msra.mxu0 %v1408_v39  ;;  %1514 = vmatpush.msra.mxu2 %v1399_v41  ;;  %v1551_v41 = vld [vmem:[%s4889_s18 + $0x58] sm:$0xff] }
 0x38f   :  { %v1368_v45 = vrot.slane %v1367_v43, 2  ;;  %3512 = vpush %v1357_v44  ;;  %v1406_v44 = vld [vmem:[#allocation12 + $0x50] sm:$0xff]  ;;  %1489 = vmatpush.msra.mxu1 %v1440_v40  ;;  %1534 = vmatpush.msra.mxu3 %v1431_v42 }
 0x390   :  { %1470 = vmatpush.msra.mxu0 %v1406_v44  ;;  %v1552_v39 = vld [vmem:[%s4889_s18 + $0x60] sm:$0xff]  ;;  %v1567_v42 = vld [vmem:[%s4889_s18 + $0xd8] sm:$0xff]  ;;  %v1566_v44 = vld [vmem:[%s4889_s18 + $0xd0] sm:$0xff] }
 0x391   :  { %v1369_v46 = vadd.f32 %v1368_v45, %v1367_v43  ;;  %v1438_v45 = vld [vmem:[#allocation12 + $0x150] sm:$0xff] }
 0x392   :  { %1490 = vmatpush.msra.mxu1 %v1438_v45  ;;  %1471 = vmatpush.msra.mxu0 %v1404_v51  ;;  %v1568_v40 = vld [vmem:[%s4889_s18 + $0xe0] sm:$0xff]  ;;  %v1549_v45 = vld [vmem:[%s4889_s18 + $0x48] sm:$0xff] }
 0x393   :  { %v1370_v47 = vrot.slane %v1369_v46, 1 }
 0x394   :  { %1491 = vmatpush.msra.mxu1 %v1436_v52  ;;  %1472 = vmatpush.msra.mxu0 %v1402_v56  ;;  %v1546_v52 = vld [vmem:[%s4889_s18 + $0x30] sm:$0xff] }
 0x395   :  { %v1371_v48 = vadd.f32 %v1370_v47, %v1369_v46  ;;  %v1397_v46 = vld [vmem:[#allocation12 + $0x8] sm:$0xff] }
 0x396   :  { %v1429_v47 = vld [vmem:[#allocation12 + $0x108] sm:$0xff]  ;;  %1515 = vmatpush.msra.mxu2 %v1397_v46  ;;  %1492 = vmatpush.msra.mxu1 %v1434_v57  ;;  %v1565_v46 = vld [vmem:[%s4889_s18 + $0xc8] sm:$0xff] }
 0x397   :  { %3514 = vpush %v1371_v48  ;;  %1535 = vmatpush.msra.mxu3 %v1429_v47  ;;  %1473 = vmatpush.msra.mxu0 %v1400_v61  ;;  %v1548_v47 = vld [vmem:[%s4889_s18 + $0x40] sm:$0xff]  ;;  %v1561_v57 = vld [vmem:[%s4889_s18 + $0xa8] sm:$0xff] }
 0x398   :  { %1722 = vmatpush.msrb.mxu2 %v1688_v49  ;;  %1493 = vmatpush.msra.mxu1 %v1432_v62  ;;  %v1547_v49 = vld [vmem:[%s4889_s18 + $0x38] sm:$0xff]  ;;  %v1544_v61 = vld [vmem:[%s4889_s18 + $0x20] sm:$0xff] }
 0x399   :  { %1742 = vmatpush.msrb.mxu3 %v1720_v50  ;;  %1474 = vmatpush.msra.mxu0 %v1398_v13  ;;  %v1563_v50 = vld [vmem:[%s4889_s18 + $0xb8] sm:$0xff]  ;;  %v1560_v62 = vld [vmem:[%s4889_s18 + $0xa0] sm:$0xff] }
 0x39a   :  { %1723 = vmatpush.msrb.mxu2 %v1686_v54  ;;  %1494 = vmatpush.msra.mxu1 %v1430_v15  ;;  %v1545_v54 = vld [vmem:[%s4889_s18 + $0x28] sm:$0xff]  ;;  %v1813_v13 = vld [vmem:[%s4890_s3 + $0x58] sm:$0xff]  ;;  %v1685_v15 = vld [vmem:[#allocation9 + $0xd8] sm:$0xff] }
 0x39b   :  { %1743 = vmatpush.msrb.mxu3 %v1718_v55  ;;  %1475 = vmatpush.msra.mxu0 %v1396_v19  ;;  %v1683_v19 = vld [vmem:[#allocation9 + $0xc8] sm:$0xff] }
 0x39c   :  { %1724 = vmatpush.msrb.mxu2 %v1684_v59  ;;  %1495 = vmatpush.msra.mxu1 %v1428_v20  ;;  %v1715_v20 = vld [vmem:[#allocation9 + $0x1c8] sm:$0xff] }
 0x39d   :  { %1744 = vmatpush.msrb.mxu3 %v1716_v60 }
 0x39e   :  { %1725 = vmatpush.msrb.mxu2 %v1682_v63  ;;  %1596 = vmatpush.msrb.mxu1 %v1571_v35  ;;  %v1559_v63 = vld [vmem:[%s4889_s18 + $0x98] sm:$0xff]  ;;  %v1810_v35 = vld [vmem:[%s4890_s3 + $0x40] sm:$0xff] }
 0x39f   :  { %1745 = vmatpush.msrb.mxu3 %v1714_v0  ;;  %v1816_v0 = vld [vmem:[%s4890_s3 + $0x70] sm:$0xff] }
 0x3a0   :  { %1726 = vmatpush.msrb.mxu2 %v1680_v1  ;;  %1597 = vmatpush.msrb.mxu1 %v1570_v37  ;;  %v1542_v1 = vld [vmem:[%s4889_s18 + $0x10] sm:$0xff]  ;;  %v1705_v37 = vld [vmem:[#allocation9 + $0x178] sm:$0xff] }
 0x3a1   :  { %1746 = vmatpush.msrb.mxu3 %v1712_v2  ;;  %v1558_v2 = vld [vmem:[%s4889_s18 + $0x90] sm:$0xff] }
 0x3a2   :  { %1727 = vmatpush.msrb.mxu2 %v1678_v3  ;;  %v1815_v3 = vld [vmem:[%s4890_s3 + $0x68] sm:$0xff] }
 0x3a3   :  { %1747 = vmatpush.msrb.mxu3 %v1710_v4  ;;  %v1541_v4 = vld [vmem:[%s4889_s18 + $0x8] sm:$0xff] }
 0x3a4   :  { %1728 = vmatpush.msrb.mxu2 %v1676_v5  ;;  %v1557_v5 = vld [vmem:[%s4889_s18 + $0x88] sm:$0xff] }
 0x3a5   :  { %1748 = vmatpush.msrb.mxu3 %v1708_v6  ;;  %v1540_v6 = vld [vmem:[%s4889_s18] sm:$0xff] }
 0x3a6   :  { %1729 = vmatpush.msrb.mxu2 %v1674_v7  ;;  %v1556_v7 = vld [vmem:[%s4889_s18 + $0x80] sm:$0xff] }
 0x3a7   :  { %1749 = vmatpush.msrb.mxu3 %v1706_v8  ;;  %v1689_v8 = vld [vmem:[#allocation9 + $0xf8] sm:$0xff] }
 0x3a8   :  { %1730 = vmatpush.msrb.mxu2 %v1672_v9  ;;  %v1721_v9 = vld [vmem:[#allocation9 + $0x1f8] sm:$0xff] }
 0x3a9   :  { %1750 = vmatpush.msrb.mxu3 %v1704_v10  ;;  %v1814_v10 = vld [vmem:[%s4890_s3 + $0x60] sm:$0xff] }
 0x3ab   :  { %1751 = vmatpush.msrb.mxu3 %v1702_v12  ;;  %v1719_v12 = vld [vmem:[#allocation9 + $0x1e8] sm:$0xff] }
 0x3ad   :  { %1752 = vmatpush.msrb.mxu3 %v1700_v18  ;;  %v1812_v18 = vld [vmem:[%s4890_s3 + $0x50] sm:$0xff] }
 0x3af   :  { %1753 = vmatpush.msrb.mxu3 %v1698_v22  ;;  %v1681_v22 = vld [vmem:[#allocation9 + $0xb8] sm:$0xff] }
 0x3b1   :  { %1754 = vmatpush.msrb.mxu3 %v1696_v24  ;;  %v1679_v24 = vld [vmem:[#allocation9 + $0xa8] sm:$0xff] }
 0x3b3   :  { %1755 = vmatpush.msrb.mxu3 %v1694_v25  ;;  %v1677_v25 = vld [vmem:[#allocation9 + $0x98] sm:$0xff] }
 0x3c0   :  { %s3513_s30 = spop %3512 }
 0x3c1   :  { %s4513_s16 = smul.f32 0.001953125, %s3513_s30 }
 0x3c3   :  { %s1374_s6 = smul.f32 512.0, %s4513_s16  ;;  %v1390_v51 = vstv %s4513_s16 }
 0x3c4   :  { %v1391_v55 = vsub.f32 %v4493_v14, %v1390_v51  ;;  %v1392_v56 = vsub.f32 %v4495_v16, %v1390_v51  ;;  %v1817_v14 = vld [vmem:[%s4890_s3 + $0x78] sm:$0xff]  ;;  %v1695_v51 = vld [vmem:[#allocation9 + $0x128] sm:$0xff] }
 0x3c5   :  { %s1375_s12 = smul.f32 %s1374_s6, %s4513_s16  ;;  %v1543_v16 = vld [vmem:[%s4889_s18 + $0x18] sm:$0xff]  ;;  %s4894_s16 = sld [smem:[#allocation46_spill]] }
 0x3c6   :  { %s4895_s6 = sld [smem:[#allocation43_spill]] }
 0x3c8   :  { %s3515_s25 = spop %3514 }
 0x3c9   :  { %s1376_s14 = ssub.f32 %s3515_s25, %s1375_s12 }
 0x3ca   :  { %s4896_s25 = sld [smem:[#allocation47_spill]] }
 0x3cb   :  { %s1377_s1 = smul.f32 0.0019569471, %s1376_s14  ;;  %s4897_s14 = sld [smem:[#allocation44_spill]] }
 0x3cd   :  { %v4517_v11 = vstv %s1377_s1 }
 0x3ce   :  { %3647 = vrsqrt.f32 %v4517_v11  ;;  %vm1385_vm5 = vweird.f32 %v4517_v11 }
 0x3d4   :  { %v3648_v30 = vpop.eup %3647 }
 0x3d5   :  { %v1380_v33 = vmul.f32 %v3648_v30, %v4517_v11  ;;  %vm1386_vm4 = vweird.f32 %v3648_v30  ;;  %v1670_v11 = vld [vmem:[#allocation9 + $0x60] sm:$0xff] }
 0x3d6   :  { %vm1387_vm6 = vmor %vm1385_vm5, %vm1386_vm4  ;;  %1731 = vmatpush.msrb.mxu2 %v1670_v11  ;;  %v1687_v11 = vld [vmem:[#allocation9 + $0xe8] sm:$0xff]  ;;  %vm2165_vm5 = vcmask 523264  }
 0x3d7   :  { %v1381_v38 = vmul.f32 %v3648_v30, %v1380_v33  ;;  %v1555_v33 = vld [vmem:[%s4889_s18 + $0x78] sm:$0xff] }
 0x3d8   :  { %1732 = vmatpush.msrb.mxu2 %v1668_v17  ;;  %1576 = vmatpush.msrb.mxu0 %v1555_v33  ;;  %v1717_v17 = vld [vmem:[#allocation9 + $0x1d8] sm:$0xff] }
 0x3d9   :  { %v1382_v43 = vmul.f32 0.5, %v1381_v38  ;;  %v1569_v38 = vld [vmem:[%s4889_s18 + $0xe8] sm:$0xff]  ;;  %v1669_v33 = vld [vmem:[#allocation9 + $0x58] sm:$0xff] }
 0x3da   :  { %1733 = vmatpush.msrb.mxu2 %v1666_v21  ;;  %1577 = vmatpush.msrb.mxu0 %v1554_v34  ;;  %v1811_v21 = vld [vmem:[%s4890_s3 + $0x48] sm:$0xff]  ;;  %v1707_v34 = vld [vmem:[#allocation9 + $0x188] sm:$0xff] }
 0x3db   :  { %v1383_v48 = vsub.f32 1.5, %v1382_v43  ;;  %1598 = vmatpush.msrb.mxu1 %v1569_v38  ;;  %v1550_v43 = vld [vmem:[%s4889_s18 + $0x50] sm:$0xff]  ;;  %v1809_v38 = vld [vmem:[%s4890_s3 + $0x38] sm:$0xff] }
 0x3dc   :  { %1734 = vmatpush.msrb.mxu2 %v1664_v23  ;;  %1578 = vmatpush.msrb.mxu0 %v1553_v36  ;;  %v1713_v23 = vld [vmem:[#allocation9 + $0x1b8] sm:$0xff]  ;;  %v1667_v36 = vld [vmem:[#allocation9 + $0x48] sm:$0xff] }
 0x3dd   :  { %v1384_v53 = vmul.f32 %v3648_v30, %v1383_v48  ;;  %1599 = vmatpush.msrb.mxu1 %v1568_v40  ;;  %v1564_v48 = vld [vmem:[%s4889_s18 + $0xc0] sm:$0xff]  ;;  %v1703_v40 = vld [vmem:[#allocation9 + $0x168] sm:$0xff] }
 0x3de   :  { %1735 = vmatpush.msrb.mxu2 %v1662_v27  ;;  %1579 = vmatpush.msrb.mxu0 %v1552_v39  ;;  %v1711_v27 = vld [vmem:[#allocation9 + $0x1a8] sm:$0xff]  ;;  %v1665_v39 = vld [vmem:[#allocation9 + $0x38] sm:$0xff] }
 0x3df   :  { %v1388_v58 = vsel %vm1387_vm6, %v3648_v30, %v1384_v53  ;;  %v1692_v30 = vld [vmem:[#allocation9 + $0x110] sm:$0xff]  ;;  %1600 = vmatpush.msrb.mxu1 %v1567_v42  ;;  %v1562_v53 = vld [vmem:[%s4889_s18 + $0xb0] sm:$0xff]  ;;  %vm2229_vm6 = vcmask 254976  }
 0x3e0   :  { %3516 = vpush %v1388_v58  ;;  %1736 = vmatpush.msrb.mxu2 %v1660_v29  ;;  %1756 = vmatpush.msrb.mxu3 %v1692_v30  ;;  %v1709_v29 = vld [vmem:[#allocation9 + $0x198] sm:$0xff]  ;;  %v1675_v30 = vld [vmem:[#allocation9 + $0x88] sm:$0xff] }
 0x3e1   :  { %1580 = vmatpush.msrb.mxu0 %v1551_v41  ;;  %1601 = vmatpush.msrb.mxu1 %v1566_v44  ;;  %v1808_v41 = vld [vmem:[%s4890_s3 + $0x30] sm:$0xff]  ;;  %v1807_v44 = vld [vmem:[%s4890_s3 + $0x28] sm:$0xff] }
 0x3e2   :  { %1737 = vmatpush.msrb.mxu2 %v1658_v31  ;;  %1757 = vmatpush.msrb.mxu3 %v1690_v26  ;;  %v1673_v31 = vld [vmem:[#allocation9 + $0x78] sm:$0xff]  ;;  %v1671_v26 = vld [vmem:[#allocation9 + $0x68] sm:$0xff] }
 0x3e3   :  { %1581 = vmatpush.msrb.mxu0 %v1550_v43  ;;  %1602 = vmatpush.msrb.mxu1 %v1565_v46  ;;  %v1663_v42 = vld [vmem:[#allocation9 + $0x28] sm:$0xff]  ;;  %v1701_v43 = vld [vmem:[#allocation9 + $0x158] sm:$0xff] }
 0x3e4   :  { %v1699_v46 = vld [vmem:[#allocation9 + $0x148] sm:$0xff] }
 0x3e5   :  { %1582 = vmatpush.msrb.mxu0 %v1549_v45  ;;  %1603 = vmatpush.msrb.mxu1 %v1564_v48  ;;  %v1661_v45 = vld [vmem:[#allocation9 + $0x18] sm:$0xff]  ;;  %v1659_v48 = vld [vmem:[#allocation9 + $0x8] sm:$0xff] }
 0x3e7   :  { %1583 = vmatpush.msrb.mxu0 %v1548_v47  ;;  %1604 = vmatpush.msrb.mxu1 %v1563_v50  ;;  %v1806_v47 = vld [vmem:[%s4890_s3 + $0x20] sm:$0xff]  ;;  %v1805_v50 = vld [vmem:[%s4890_s3 + $0x18] sm:$0xff] }
 0x3e9   :  { %1584 = vmatpush.msrb.mxu0 %v1547_v49  ;;  %1605 = vmatpush.msrb.mxu1 %v1562_v53  ;;  %v1697_v49 = vld [vmem:[#allocation9 + $0x138] sm:$0xff] }
 0x3ea   :  { %v1693_v53 = vld [vmem:[#allocation9 + $0x118] sm:$0xff] }
 0x3eb   :  { %1585 = vmatpush.msrb.mxu0 %v1546_v52  ;;  %1606 = vmatpush.msrb.mxu1 %v1561_v57  ;;  %v1804_v52 = vld [vmem:[%s4890_s3 + $0x10] sm:$0xff]  ;;  %v1833_v57 = vld [vmem:[%s4890_s3 + $0xf8] sm:$0xff] }
 0x3ed   :  { %1586 = vmatpush.msrb.mxu0 %v1545_v54  ;;  %1607 = vmatpush.msrb.mxu1 %v1560_v62  ;;  %v1803_v54 = vld [vmem:[%s4890_s3 + $0x8] sm:$0xff]  ;;  %v1830_v62 = vld [vmem:[%s4890_s3 + $0xe0] sm:$0xff] }
 0x3ef   :  { %1587 = vmatpush.msrb.mxu0 %v1544_v61  ;;  %1608 = vmatpush.msrb.mxu1 %v1559_v63  ;;  %v1831_v61 = vld [vmem:[%s4890_s3 + $0xe8] sm:$0xff] }
 0x3f0   :  { %v1827_v63 = vld [vmem:[%s4890_s3 + $0xc8] sm:$0xff] }
 0x3f1   :  { %1588 = vmatpush.msrb.mxu0 %v1543_v16  ;;  %1609 = vmatpush.msrb.mxu1 %v1558_v2  ;;  %v1828_v16 = vld [vmem:[%s4890_s3 + $0xd0] sm:$0xff] }
 0x3f3   :  { %1589 = vmatpush.msrb.mxu0 %v1542_v1  ;;  %1610 = vmatpush.msrb.mxu1 %v1557_v5 }
 0x3f5   :  { %1590 = vmatpush.msrb.mxu0 %v1541_v4  ;;  %1611 = vmatpush.msrb.mxu1 %v1556_v7 }
 0x3f7   :  { %1591 = vmatpush.msrb.mxu0 %v1540_v6 }
 0x411   :  { %s3517_s20 = spop %3516 }
 0x412   :  { %v1393_v58 = vstv %s3517_s20 }
 0x413   :  { %v4548_v59 = vmul.f32 %v1393_v58, %v1391_v55  ;;  %v4550_v60 = vmul.f32 %v1393_v58, %v1392_v56  ;;  %v1691_v55 = vld [vmem:[#allocation9 + $0x108] sm:$0xff]  ;;  %v1802_v56 = vld [vmem:[%s4890_s3] sm:$0xff] }
 0x414   :  { %v1832_v58 = vld [vmem:[%s4890_s3 + $0xf0] sm:$0xff] }
 0x415   :  { %1476 = vmatmul.f32.vlgmr.msra.gmra.mxu0 %v4548_v59  ;;  %1496 = vmatmul.f32.vlgmr.msra.gmra.mxu1 %v4550_v60 }
 0x416   :  { %1516 = vmatmul.f32.vlgmr.msra.gmra.mxu2 %v4548_v59  ;;  %1536 = vmatmul.f32.vlgmr.msra.gmra.mxu3 %v4550_v60 }
 0x417   :  { %1838 = vmatpush.msra.mxu2 %v1817_v14  ;;  %1762 = vmatpush.msra.mxu0 %v1689_v8  ;;  %v1829_v14 = vld [vmem:[%s4890_s3 + $0xd8] sm:$0xff] }
 0x418   :  { %1782 = vmatpush.msra.mxu1 %v1721_v9  ;;  %1858 = vmatpush.msra.mxu3 %v1833_v57  ;;  %v1826_v9 = vld [vmem:[%s4890_s3 + $0xc0] sm:$0xff] }
 0x419   :  { %1839 = vmatpush.msra.mxu2 %v1816_v0  ;;  %1763 = vmatpush.msra.mxu0 %v1687_v11  ;;  %v1824_v11 = vld [vmem:[%s4890_s3 + $0xb0] sm:$0xff] }
 0x41a   :  { %1783 = vmatpush.msra.mxu1 %v1719_v12  ;;  %1859 = vmatpush.msra.mxu3 %v1832_v58  ;;  %v1823_v12 = vld [vmem:[%s4890_s3 + $0xa8] sm:$0xff] }
 0x41b   :  { %1840 = vmatpush.msra.mxu2 %v1815_v3  ;;  %1764 = vmatpush.msra.mxu0 %v1685_v15  ;;  %v1820_v15 = vld [vmem:[%s4890_s3 + $0x90] sm:$0xff] }
 0x41c   :  { %1784 = vmatpush.msra.mxu1 %v1717_v17  ;;  %1860 = vmatpush.msra.mxu3 %v1831_v61  ;;  %v1819_v17 = vld [vmem:[%s4890_s3 + $0x88] sm:$0xff] }
 0x41d   :  { %1841 = vmatpush.msra.mxu2 %v1814_v10  ;;  %1765 = vmatpush.msra.mxu0 %v1683_v19  ;;  %v1825_v10 = vld [vmem:[%s4890_s3 + $0xb8] sm:$0xff] }
 0x41e   :  { %1738 = vmatmul.f32.vlgmr.msrb.gmra.mxu2 %v4548_v59  ;;  %1758 = vmatmul.f32.vlgmr.msrb.gmra.mxu3 %v4550_v60 }
 0x41f   :  { %1842 = vmatpush.msra.mxu2 %v1813_v13  ;;  %1785 = vmatpush.msra.mxu1 %v1715_v20  ;;  %v1822_v13 = vld [vmem:[%s4890_s3 + $0xa0] sm:$0xff] }
 0x420   :  { %1766 = vmatpush.msra.mxu0 %v1681_v22  ;;  %1861 = vmatpush.msra.mxu3 %v1830_v62 }
 0x421   :  { %1843 = vmatpush.msra.mxu2 %v1812_v18  ;;  %1786 = vmatpush.msra.mxu1 %v1713_v23  ;;  %v3637_v18 = vld [vmem:[%s4891_s24] ss:$0 sm:$0xff] }
 0x422   :  { %1767 = vmatpush.msra.mxu0 %v1679_v24  ;;  %1862 = vmatpush.msra.mxu3 %v1829_v14 }
 0x423   :  { %1844 = vmatpush.msra.mxu2 %v1811_v21  ;;  %1787 = vmatpush.msra.mxu1 %v1711_v27 }
 0x424   :  { %1768 = vmatpush.msra.mxu0 %v1677_v25  ;;  %1863 = vmatpush.msra.mxu3 %v1828_v16 }
 0x425   :  { %1788 = vmatpush.msra.mxu1 %v1709_v29  ;;  %1845 = vmatpush.msra.mxu2 %v1810_v35 }
 0x426   :  { %1769 = vmatpush.msra.mxu0 %v1675_v30  ;;  %1864 = vmatpush.msra.mxu3 %v1827_v63 }
 0x427   :  { %1789 = vmatpush.msra.mxu1 %v1707_v34  ;;  %1846 = vmatpush.msra.mxu2 %v1809_v38 }
 0x428   :  { %1770 = vmatpush.msra.mxu0 %v1673_v31  ;;  %1865 = vmatpush.msra.mxu3 %v1826_v9 }
 0x429   :  { %1790 = vmatpush.msra.mxu1 %v1705_v37  ;;  %1847 = vmatpush.msra.mxu2 %v1808_v41 }
 0x42a   :  { %1771 = vmatpush.msra.mxu0 %v1671_v26  ;;  %1866 = vmatpush.msra.mxu3 %v1825_v10 }
 0x42b   :  { %1791 = vmatpush.msra.mxu1 %v1703_v40  ;;  %1848 = vmatpush.msra.mxu2 %v1807_v44  ;;  %v3638_v44 = vld [vmem:[#allocation10] ss:$0 sm:$0xff] }
 0x42c   :  { %1772 = vmatpush.msra.mxu0 %v1669_v33  ;;  %1867 = vmatpush.msra.mxu3 %v1824_v11 }
 0x42d   :  { %1792 = vmatpush.msra.mxu1 %v1701_v43  ;;  %1849 = vmatpush.msra.mxu2 %v1806_v47 }
 0x42e   :  { %1773 = vmatpush.msra.mxu0 %v1667_v36  ;;  %1868 = vmatpush.msra.mxu3 %v1823_v12 }
 0x42f   :  { %1793 = vmatpush.msra.mxu1 %v1699_v46  ;;  %1850 = vmatpush.msra.mxu2 %v1805_v50 }
 0x430   :  { %1774 = vmatpush.msra.mxu0 %v1665_v39  ;;  %1869 = vmatpush.msra.mxu3 %v1822_v13 }
 0x431   :  { %1794 = vmatpush.msra.mxu1 %v1697_v49  ;;  %1851 = vmatpush.msra.mxu2 %v1804_v52 }
 0x432   :  { %1775 = vmatpush.msra.mxu0 %v1663_v42 }
 0x433   :  { %1795 = vmatpush.msra.mxu1 %v1695_v51  ;;  %1852 = vmatpush.msra.mxu2 %v1803_v54 }
 0x434   :  { %1776 = vmatpush.msra.mxu0 %v1661_v45 }
 0x435   :  { %1796 = vmatpush.msra.mxu1 %v1693_v53  ;;  %1853 = vmatpush.msra.mxu2 %v1802_v56 }
 0x436   :  { %1777 = vmatpush.msra.mxu0 %v1659_v48 }
 0x437   :  { %1797 = vmatpush.msra.mxu1 %v1691_v55 }
 0x492   :  { %v1477_v0 = vpop.f32.mrf.mxu0  ;;  %v1497_v1 = vpop.f32.mrf.mxu1 }
 0x493   :  { %v1498_v2 = vadd.f32 %v1497_v1, %v1477_v0 }
 0x495   :  { %1592 = vmatmul.f32.vlgmr.msrb.gmra.mxu0 %v1498_v2 }
 0x499   :  { %v1517_v3 = vpop.f32.mrf.mxu2  ;;  %v1537_v4 = vpop.f32.mrf.mxu3 }
 0x49a   :  { %v1538_v5 = vadd.f32 %v1537_v4, %v1517_v3 }
 0x49c   :  { %1612 = vmatmul.f32.vlgmr.msrb.gmra.mxu1 %v1538_v5 }
 0x49d   :  { %1778 = vmatmul.f32.vlgmr.msra.gmra.mxu0 %v4548_v59  ;;  %v1821_v59 = vld [vmem:[%s4890_s3 + $0x98] sm:$0xff] }
 0x49e   :  { %1870 = vmatpush.msra.mxu3 %v1821_v59 }
 0x4a0   :  { %1871 = vmatpush.msra.mxu3 %v1820_v15  ;;  %v1935_v15 = vld [vmem:[%s4892_s8 + $0x78] sm:$0xff] }
 0x4a1   :  { %v1739_v6 = vpop.f32.mrf.mxu2  ;;  %v1759_v7 = vpop.f32.mrf.mxu3  ;;  %1936 = vmatpush.msrb.mxu0 %v1935_v15  ;;  %v1961_v15 = vld [vmem:[%s4894_s16 + $0x28] sm:$0xff] }
 0x4a2   :  { %v1760_v8 = vadd.f32 %v1759_v7, %v1739_v6  ;;  %1872 = vmatpush.msra.mxu3 %v1819_v17  ;;  %v2054_v17 = vld [vmem:[%s4893_s27 + $0x78] sm:$0xff] }
 0x4a3   :  { %2055 = vmatpush.msrb.mxu2 %v2054_v17  ;;  %v2080_v17 = vld [vmem:[%s4895_s6 + $0x28] sm:$0xff] }
 0x4a4   :  { %1798 = vmatmul.f32.vlgmr.msra.gmra.mxu1 %v4550_v60  ;;  %1854 = vmatmul.f32.vlgmr.msra.gmra.mxu2 %v1760_v8  ;;  %v1818_v60 = vld [vmem:[%s4890_s3 + $0x80] sm:$0xff] }
 0x4a5   :  { %1873 = vmatpush.msra.mxu3 %v1818_v60  ;;  %v1934_v60 = vld [vmem:[%s4892_s8 + $0x70] sm:$0xff] }
 0x4a6   :  { %1937 = vmatpush.msrb.mxu0 %v1934_v60  ;;  %v1960_v60 = vld [vmem:[%s4894_s16 + $0x20] sm:$0xff] }
 0x512   :  { %v1593_v19 = vpop.f32.mrf.mxu0 }
 0x513   :  { %v1594_v20 = vadd.f32 %v3637_v18, %v1593_v19  ;;  %v2053_v18 = vld [vmem:[%s4893_s27 + $0x70] sm:$0xff]  ;;  %v1933_v19 = vld [vmem:[%s4892_s8 + $0x68] sm:$0xff] }
 0x514   :  { %2056 = vmatpush.msrb.mxu2 %v2053_v18  ;;  %1938 = vmatpush.msrb.mxu0 %v1933_v19  ;;  %v2079_v18 = vld [vmem:[%s4895_s6 + $0x20] sm:$0xff]  ;;  %v1959_v19 = vld [vmem:[%s4894_s16 + $0x18] sm:$0xff] }
 0x519   :  { %v1613_v21 = vpop.f32.mrf.mxu1 }
 0x51a   :  { %v1614_v22 = vadd.f32 %v1613_v21, %v1594_v20  ;;  %v1779_v27 = vpop.f32.mrf.mxu0  ;;  %v2052_v20 = vld [vmem:[%s4893_s27 + $0x68] sm:$0xff]  ;;  %v1932_v21 = vld [vmem:[%s4892_s8 + $0x60] sm:$0xff] }
 0x51b   :  { %2057 = vmatpush.msrb.mxu2 %v2052_v20  ;;  %1939 = vmatpush.msrb.mxu0 %v1932_v21  ;;  %v1958_v20 = vld [vmem:[%s4894_s16 + $0x10] sm:$0xff] }
 0x51c   :  { %v1616_v23 = vsel %vm850_vm0, %v1614_v22, 0.0  ;;  %v1626_v24 = vmul.f32 %v1614_v22, %v1614_v22 }
 0x51d   :  { %1617 = vadd.xlane.f32.xlu2 %v1616_v23  ;;  %v1931_v23 = vld [vmem:[%s4892_s8 + $0x58] sm:$0xff] }
 0x51e   :  { %v1627_v30 = vsel %vm850_vm0, %v1626_v24, 0.0  ;;  %v2050_v24 = vld [vmem:[%s4893_s27 + $0x58] sm:$0xff]  ;;  %1940 = vmatpush.msrb.mxu0 %v1931_v23 }
 0x521   :  { %v1799_v25 = vpop.f32.mrf.mxu1 }
 0x522   :  { %v1800_v29 = vadd.f32 %v1799_v25, %v1779_v27  ;;  %v1930_v27 = vld [vmem:[%s4892_s8 + $0x50] sm:$0xff] }
 0x523   :  { %v2049_v25 = vld [vmem:[%s4893_s27 + $0x50] sm:$0xff]  ;;  %1941 = vmatpush.msrb.mxu0 %v1930_v27 }
 0x524   :  { %1874 = vmatmul.f32.vlgmr.msra.gmra.mxu3 %v1800_v29  ;;  %v1929_v29 = vld [vmem:[%s4892_s8 + $0x48] sm:$0xff] }
 0x525   :  { %1628 = vadd.xlane.f32.xlu2 %v1627_v30  ;;  %v2048_v30 = vld [vmem:[%s4893_s27 + $0x48] sm:$0xff]  ;;  %1942 = vmatpush.msrb.mxu0 %v1929_v29  ;;  %v2078_v29 = vld [vmem:[%s4895_s6 + $0x18] sm:$0xff] }
 0x527   :  { %v1855_v45 = vpop.f32.mrf.mxu2 }
 0x528   :  { %v1856_v47 = vadd.f32 %v3638_v44, %v1855_v45  ;;  %v1923_v44 = vld [vmem:[%s4892_s8 + $0x18] sm:$0xff] }
 0x529   :  { %v2042_v45 = vld [vmem:[%s4893_s27 + $0x18] sm:$0xff] }
 0x590   :  { %v1618_v31 = vpop.xlane.xlu2 %1617 }
 0x591   :  { %v1619_v26 = vrot.slane %v1618_v31, 4 }
 0x593   :  { %v1620_v33 = vadd.f32 %v1619_v26, %v1618_v31  ;;  %v1928_v31 = vld [vmem:[%s4892_s8 + $0x40] sm:$0xff] }
 0x594   :  { %v2047_v26 = vld [vmem:[%s4893_s27 + $0x40] sm:$0xff]  ;;  %1943 = vmatpush.msrb.mxu0 %v1928_v31  ;;  %v2076_v31 = vld [vmem:[%s4895_s6 + $0x8] sm:$0xff] }
 0x595   :  { %v1621_v34 = vrot.slane %v1620_v33, 2 }
 0x597   :  { %v1622_v35 = vadd.f32 %v1621_v34, %v1620_v33  ;;  %v1927_v34 = vld [vmem:[%s4892_s8 + $0x38] sm:$0xff] }
 0x598   :  { %v1629_v36 = vpop.xlane.xlu2 %1628  ;;  %1944 = vmatpush.msrb.mxu0 %v1927_v34  ;;  %v3639_v34 = vld [vmem:[%s4896_s25] ss:$0 sm:$0xff] }
 0x599   :  { %v1630_v37 = vrot.slane %v1629_v36, 4  ;;  %v1623_v38 = vrot.slane %v1622_v35, 1 }
 0x59b   :  { %v1631_v39 = vadd.f32 %v1630_v37, %v1629_v36  ;;  %v1624_v40 = vadd.f32 %v1623_v38, %v1622_v35  ;;  %v2046_v35 = vld [vmem:[%s4893_s27 + $0x38] sm:$0xff]  ;;  %v1926_v36 = vld [vmem:[%s4892_s8 + $0x30] sm:$0xff]  ;;  %v1925_v38 = vld [vmem:[%s4892_s8 + $0x28] sm:$0xff] }
 0x59c   :  { %v2045_v37 = vld [vmem:[%s4893_s27 + $0x30] sm:$0xff]  ;;  %1945 = vmatpush.msrb.mxu0 %v1926_v36 }
 0x59d   :  { %v1632_v41 = vrot.slane %v1631_v39, 2  ;;  %3518 = vpush %v1624_v40 }
 0x59e   :  { %1946 = vmatpush.msrb.mxu0 %v1925_v38 }
 0x59f   :  { %v1633_v42 = vadd.f32 %v1632_v41, %v1631_v39  ;;  %v2044_v39 = vld [vmem:[%s4893_s27 + $0x28] sm:$0xff]  ;;  %v1924_v41 = vld [vmem:[%s4892_s8 + $0x20] sm:$0xff] }
 0x5a0   :  { %1947 = vmatpush.msrb.mxu0 %v1924_v41 }
 0x5a1   :  { %v1634_v43 = vrot.slane %v1633_v42, 1 }
 0x5a2   :  { %1948 = vmatpush.msrb.mxu0 %v1923_v44 }
 0x5a3   :  { %v1635_v46 = vadd.f32 %v1634_v43, %v1633_v42  ;;  %v2043_v42 = vld [vmem:[%s4893_s27 + $0x20] sm:$0xff] }
 0x5a5   :  { %3520 = vpush %v1635_v46 }
 0x5a7   :  { %v1875_v48 = vpop.f32.mrf.mxu3 }
 0x5a8   :  { %v4605_v49 = vadd.f32 %v1875_v48, %v1856_v47  ;;  %v1922_v47 = vld [vmem:[%s4892_s8 + $0x10] sm:$0xff] }
 0x5a9   :  { %v2041_v48 = vld [vmem:[%s4893_s27 + $0x10] sm:$0xff]  ;;  %1949 = vmatpush.msrb.mxu0 %v1922_v47 }
 0x5aa   :  { %v1878_v50 = vsel %vm850_vm0, %v4605_v49, 0.0  ;;  %v1888_v51 = vmul.f32 %v4605_v49, %v4605_v49 }
 0x5ab   :  { %1879 = vadd.xlane.f32.xlu0 %v1878_v50 }
 0x5ac   :  { %v1889_v52 = vsel %vm850_vm0, %v1888_v51, 0.0 }
 0x5ad   :  { %1890 = vadd.xlane.f32.xlu1 %v1889_v52 }
 0x5ce   :  { %s3519_s7 = spop %3518 }
 0x5cf   :  { %s1637_s0 = smul.f32 0.00390625, %s3519_s7 }
 0x5d1   :  { %s1638_s22 = smul.f32 256.0, %s1637_s0  ;;  %v1654_v14 = vstv %s1637_s0 }
 0x5d2   :  { %v1655_v0 = vsub.f32 %v1614_v22, %v1654_v14  ;;  %v2051_v22 = vld [vmem:[%s4893_s27 + $0x60] sm:$0xff]  ;;  %v1969_v14 = vld [vmem:[%s4894_s16 + $0x68] sm:$0xff] }
 0x5d3   :  { %s1639_s23 = smul.f32 %s1638_s22, %s1637_s0  ;;  %2058 = vmatpush.msrb.mxu2 %v2051_v22  ;;  %v1957_v22 = vld [vmem:[%s4894_s16 + $0x8] sm:$0xff]  ;;  %s4898_s22 = sld [smem:[#allocation48_spill]] }
 0x5d5   :  { %2059 = vmatpush.msrb.mxu2 %v2050_v24 }
 0x5d6   :  { %s3521_s26 = spop %3520 }
 0x5d7   :  { %s1640_s28 = ssub.f32 %s3521_s26, %s1639_s23  ;;  %2060 = vmatpush.msrb.mxu2 %v2049_v25  ;;  %v1956_v25 = vld [vmem:[%s4894_s16] sm:$0xff] }
 0x5d9   :  { %s1641_s19 = smul.f32 0.003921569, %s1640_s28  ;;  %2061 = vmatpush.msrb.mxu2 %v2048_v30  ;;  %v2077_v30 = vld [vmem:[%s4895_s6 + $0x10] sm:$0xff] }
 0x5db   :  { %v1642_v53 = vstv %s1641_s19  ;;  %2062 = vmatpush.msrb.mxu2 %v2047_v26  ;;  %v2075_v26 = vld [vmem:[%s4895_s6] sm:$0xff] }
 0x5dc   :  { %3649 = vrsqrt.f32 %v1642_v53  ;;  %vm1649_vm8 = vweird.f32 %v1642_v53 }
 0x5dd   :  { %2063 = vmatpush.msrb.mxu2 %v2046_v35 }
 0x5df   :  { %2064 = vmatpush.msrb.mxu2 %v2045_v37 }
 0x5e1   :  { %2065 = vmatpush.msrb.mxu2 %v2044_v39 }
 0x5e2   :  { %v3650_v54 = vpop.eup %3649 }
 0x5e3   :  { %v1644_v55 = vmul.f32 %v3650_v54, %v1642_v53  ;;  %vm1650_vm7 = vweird.f32 %v3650_v54  ;;  %2066 = vmatpush.msrb.mxu2 %v2043_v42 }
 0x5e4   :  { %vm1651_vm9 = vmor %vm1649_vm8, %vm1650_vm7 }
 0x5e5   :  { %v1645_v56 = vmul.f32 %v3650_v54, %v1644_v55  ;;  %2067 = vmatpush.msrb.mxu2 %v2042_v45  ;;  %v2040_v55 = vld [vmem:[%s4893_s27 + $0x8] sm:$0xff] }
 0x5e7   :  { %v1646_v57 = vmul.f32 0.5, %v1645_v56  ;;  %2068 = vmatpush.msrb.mxu2 %v2041_v48  ;;  %v1920_v56 = vld [vmem:[%s4892_s8] sm:$0xff] }
 0x5e9   :  { %v1647_v58 = vsub.f32 1.5, %v1646_v57  ;;  %2069 = vmatpush.msrb.mxu2 %v2040_v55  ;;  %v2039_v57 = vld [vmem:[%s4893_s27] sm:$0xff] }
 0x5eb   :  { %v1648_v61 = vmul.f32 %v3650_v54, %v1647_v58  ;;  %2070 = vmatpush.msrb.mxu2 %v2039_v57  ;;  %v1971_v58 = vld [vmem:[%s4894_s16 + $0x78] sm:$0xff] }
 0x5ec   :  { %1976 = vmatpush.msrb.mxu1 %v1971_v58 }
 0x5ed   :  { %v1652_v62 = vsel %vm1651_vm9, %v3650_v54, %v1648_v61  ;;  %v1921_v54 = vld [vmem:[%s4892_s8 + $0x8] sm:$0xff]  ;;  %v1970_v61 = vld [vmem:[%s4894_s16 + $0x70] sm:$0xff] }
 0x5ee   :  { %3522 = vpush %v1652_v62  ;;  %1950 = vmatpush.msrb.mxu0 %v1921_v54  ;;  %v2090_v62 = vld [vmem:[%s4895_s6 + $0x78] sm:$0xff]  ;;  %1977 = vmatpush.msrb.mxu1 %v1970_v61 }
 0x5ef   :  { %2095 = vmatpush.msrb.mxu3 %v2090_v62 }
 0x5f0   :  { %1951 = vmatpush.msrb.mxu0 %v1920_v56  ;;  %1978 = vmatpush.msrb.mxu1 %v1969_v14 }
 0x61e   :  { %v1880_v16 = vpop.xlane.xlu0 %1879 }
 0x61f   :  { %v1881_v63 = vrot.slane %v1880_v16, 4  ;;  %s3523_s29 = spop %3522 }
 0x620   :  { %v1656_v1 = vstv %s3523_s29  ;;  %v1891_v2 = vpop.xlane.xlu1 %1890 }
 0x621   :  { %v1882_v3 = vadd.f32 %v1881_v63, %v1880_v16  ;;  %v4612_v4 = vmul.f32 %v1656_v1, %v1655_v0  ;;  %v1892_v5 = vrot.slane %v1891_v2, 4  ;;  %v2089_v16 = vld [vmem:[%s4895_s6 + $0x70] sm:$0xff]  ;;  %v2088_v63 = vld [vmem:[%s4895_s6 + $0x68] sm:$0xff]  ;;  %v1968_v0 = vld [vmem:[%s4894_s16 + $0x60] sm:$0xff] }
 0x622   :  { %2096 = vmatpush.msrb.mxu3 %v2089_v16  ;;  %v2087_v1 = vld [vmem:[%s4895_s6 + $0x60] sm:$0xff]  ;;  %1979 = vmatpush.msrb.mxu1 %v1968_v0 }
 0x623   :  { %v1883_v6 = vrot.slane %v1882_v3, 2  ;;  %v1893_v7 = vadd.f32 %v1892_v5, %v1891_v2  ;;  %v1967_v2 = vld [vmem:[%s4894_s16 + $0x58] sm:$0xff]  ;;  %v1966_v5 = vld [vmem:[%s4894_s16 + $0x50] sm:$0xff] }
 0x624   :  { %2097 = vmatpush.msrb.mxu3 %v2088_v63  ;;  %1980 = vmatpush.msrb.mxu1 %v1967_v2 }
 0x625   :  { %v1894_v8 = vrot.slane %v1893_v7, 2  ;;  %v1884_v9 = vadd.f32 %v1883_v6, %v1882_v3  ;;  %v2086_v3 = vld [vmem:[%s4895_s6 + $0x58] sm:$0xff]  ;;  %v2085_v6 = vld [vmem:[%s4895_s6 + $0x50] sm:$0xff] }
 0x626   :  { %2098 = vmatpush.msrb.mxu3 %v2087_v1  ;;  %1981 = vmatpush.msrb.mxu1 %v1966_v5 }
 0x627   :  { %v1885_v10 = vrot.slane %v1884_v9, 1  ;;  %v1895_v11 = vadd.f32 %v1894_v8, %v1893_v7  ;;  %v1965_v7 = vld [vmem:[%s4894_s16 + $0x48] sm:$0xff] }
 0x628   :  { %2099 = vmatpush.msrb.mxu3 %v2086_v3  ;;  %v2084_v8 = vld [vmem:[%s4895_s6 + $0x48] sm:$0xff]  ;;  %1982 = vmatpush.msrb.mxu1 %v1965_v7 }
 0x629   :  { %v1886_v12 = vadd.f32 %v1885_v10, %v1884_v9  ;;  %v1896_v13 = vrot.slane %v1895_v11, 1  ;;  %v1964_v9 = vld [vmem:[%s4894_s16 + $0x40] sm:$0xff] }
 0x62a   :  { %2100 = vmatpush.msrb.mxu3 %v2085_v6  ;;  %v2083_v10 = vld [vmem:[%s4895_s6 + $0x40] sm:$0xff]  ;;  %1983 = vmatpush.msrb.mxu1 %v1964_v9 }
 0x62b   :  { %3524 = vpush %v1886_v12  ;;  %v1897_v59 = vadd.f32 %v1896_v13, %v1895_v11  ;;  %v1963_v11 = vld [vmem:[%s4894_s16 + $0x38] sm:$0xff]  ;;  %v1962_v13 = vld [vmem:[%s4894_s16 + $0x30] sm:$0xff] }
 0x62c   :  { %2101 = vmatpush.msrb.mxu3 %v2084_v8  ;;  %v2082_v12 = vld [vmem:[%s4895_s6 + $0x38] sm:$0xff]  ;;  %1984 = vmatpush.msrb.mxu1 %v1963_v11 }
 0x62d   :  { %3526 = vpush %v1897_v59  ;;  %v2081_v59 = vld [vmem:[%s4895_s6 + $0x30] sm:$0xff] }
 0x62e   :  { %2102 = vmatpush.msrb.mxu3 %v2083_v10  ;;  %1985 = vmatpush.msrb.mxu1 %v1962_v13 }
 0x630   :  { %2103 = vmatpush.msrb.mxu3 %v2082_v12  ;;  %1986 = vmatpush.msrb.mxu1 %v1961_v15 }
 0x632   :  { %2104 = vmatpush.msrb.mxu3 %v2081_v59  ;;  %1987 = vmatpush.msrb.mxu1 %v1960_v60 }
 0x634   :  { %2105 = vmatpush.msrb.mxu3 %v2080_v17  ;;  %1988 = vmatpush.msrb.mxu1 %v1959_v19 }
 0x636   :  { %2106 = vmatpush.msrb.mxu3 %v2079_v18  ;;  %1989 = vmatpush.msrb.mxu1 %v1958_v20 }
 0x638   :  { %1990 = vmatpush.msrb.mxu1 %v1957_v22  ;;  %2107 = vmatpush.msrb.mxu3 %v2078_v29  ;;  %v2279_v22 = vld [vmem:[%s4898_s22 + $0x38] sm:$0xff] }
 0x639   :  { %2288 = vmatpush.msra.mxu2 %v2279_v22  ;;  %v2162_v29 = vld [vmem:[#allocation13 + $0x28] sm:$0xff] }
 0x63a   :  { %1991 = vmatpush.msrb.mxu1 %v1956_v25  ;;  %2108 = vmatpush.msrb.mxu3 %v2077_v30  ;;  %v2277_v30 = vld [vmem:[%s4898_s22 + $0x28] sm:$0xff] }
 0x63c   :  { %2109 = vmatpush.msrb.mxu3 %v2076_v31 }
 0x63e   :  { %2110 = vmatpush.msrb.mxu3 %v2075_v26  ;;  %v2161_v26 = vld [vmem:[#allocation13 + $0x20] sm:$0xff] }
 0x65c   :  { %s3525_s9 = spop %3524 }
 0x65d   :  { %s4620_s10 = smul.f32 0.00390625, %s3525_s9 }
 0x65e   :  { %s3527_s11 = spop %3526 }
 0x65f   :  { %s1900_s2 = smul.f32 256.0, %s4620_s10  ;;  %v1916_v21 = vstv %s4620_s10 }
 0x660   :  { %v1917_v23 = vsub.f32 %v4605_v49, %v1916_v21  ;;  %v2164_v21 = vld [vmem:[#allocation13 + $0x38] sm:$0xff] }
 0x661   :  { %s1901_s4 = smul.f32 %s1900_s2, %s4620_s10  ;;  %2177 = vmatpush.msra.mxu0 %v2164_v21  ;;  %s4899_s10 = sld [smem:[#allocation51_spill]] }
 0x662   :  { %s4900_s2 = sld [smem:[#allocation49_spill]] }
 0x663   :  { %s1902_s15 = ssub.f32 %s3527_s11, %s1901_s4 }
 0x665   :  { %s1903_s30 = smul.f32 0.003921569, %s1902_s15 }
 0x667   :  { %v1904_v33 = vstv %s1903_s30 }
 0x668   :  { %3651 = vrsqrt.f32 %v1904_v33  ;;  %vm1911_vm11 = vweird.f32 %v1904_v33 }
 0x66e   :  { %v3652_v40 = vpop.eup %3651 }
 0x66f   :  { %v1906_v43 = vmul.f32 %v3652_v40, %v1904_v33  ;;  %vm1912_vm10 = vweird.f32 %v3652_v40 }
 0x670   :  { %vm1913_vm12 = vmor %vm1911_vm11, %vm1912_vm10  ;;  %vm2390_vm10 = vcmask 261120  }
 0x671   :  { %v1907_v46 = vmul.f32 %v3652_v40, %v1906_v43 }
 0x673   :  { %v1908_v50 = vmul.f32 0.5, %v1907_v46 }
 0x675   :  { %v1909_v51 = vsub.f32 1.5, %v1908_v50 }
 0x677   :  { %v1910_v52 = vmul.f32 %v3652_v40, %v1909_v51 }
 0x679   :  { %v1914_v53 = vsel %vm1913_vm12, %v3652_v40, %v1910_v52  ;;  %v3640_v40 = vld [vmem:[%s4897_s14] ss:$0 sm:$0xff] }
 0x67a   :  { %3528 = vpush %v1914_v53 }
 0x6ab   :  { %s3529_s12 = spop %3528 }
 0x6ac   :  { %v1918_v24 = vstv %s3529_s12 }
 0x6ad   :  { %v1919_v27 = vmul.f32 %v1918_v24, %v1917_v23  ;;  %v2163_v23 = vld [vmem:[#allocation13 + $0x30] sm:$0xff] }
 0x6ae   :  { %2178 = vmatpush.msra.mxu0 %v2163_v23  ;;  %v2651_v23 = vld [vmem:[#allocation22 + $0xf0] sm:$0xff] }
 0x6af   :  { %1952 = vmatmul.f32.vlgmr.msrb.gmra.mxu0 %v1919_v27  ;;  %2071 = vmatmul.f32.vlgmr.msrb.gmra.mxu2 %v1919_v27  ;;  %v2278_v27 = vld [vmem:[%s4898_s22 + $0x30] sm:$0xff] }
 0x6b0   :  { %2289 = vmatpush.msra.mxu2 %v2278_v27  ;;  %2179 = vmatpush.msra.mxu0 %v2162_v29  ;;  %v2652_v27 = vld [vmem:[#allocation22 + $0xf8] sm:$0xff]  ;;  %v2650_v29 = vld [vmem:[#allocation22 + $0xe8] sm:$0xff] }
 0x6b2   :  { %2290 = vmatpush.msra.mxu2 %v2277_v30  ;;  %2180 = vmatpush.msra.mxu0 %v2161_v26  ;;  %v2648_v30 = vld [vmem:[#allocation22 + $0xd8] sm:$0xff]  ;;  %v2645_v26 = vld [vmem:[#allocation22 + $0xc0] sm:$0xff] }
 0x72c   :  { %v1953_v33 = vpop.f32.mrf.mxu0 }
 0x72d   :  { %1992 = vmatmul.f32.vlgmr.msrb.gmra.mxu1 %v1953_v33  ;;  %v2276_v33 = vld [vmem:[%s4898_s22 + $0x20] sm:$0xff] }
 0x72e   :  { %2291 = vmatpush.msra.mxu2 %v2276_v33  ;;  %v2646_v33 = vld [vmem:[#allocation22 + $0xc8] sm:$0xff] }
 0x732   :  { %v2072_v49 = vpop.f32.mrf.mxu2 }
 0x733   :  { %2111 = vmatmul.f32.vlgmr.msrb.gmra.mxu3 %v2072_v49  ;;  %v2160_v49 = vld [vmem:[#allocation13 + $0x18] sm:$0xff] }
 0x734   :  { %2181 = vmatpush.msra.mxu0 %v2160_v49  ;;  %v2643_v49 = vld [vmem:[#allocation22 + $0xb0] sm:$0xff] }
 0x7aa   :  { %v1993_v35 = vpop.f32.mrf.mxu1 }
 0x7ab   :  { %v4685_v36 = vadd.f32 %v3639_v34, %v1993_v35  ;;  %v2275_v34 = vld [vmem:[%s4898_s22 + $0x18] sm:$0xff] }
 0x7ac   :  { %v2159_v35 = vld [vmem:[#allocation13 + $0x10] sm:$0xff]  ;;  %2292 = vmatpush.msra.mxu2 %v2275_v34  ;;  %v2644_v34 = vld [vmem:[#allocation22 + $0xb8] sm:$0xff] }
 0x7ad   :  { %v1997_v37 = vsel %vm1996_vm13, %v4685_v36, 0.0  ;;  %v2007_v38 = vmul.f32 %v4685_v36, %v4685_v36  ;;  %2182 = vmatpush.msra.mxu0 %v2159_v35  ;;  %v2641_v35 = vld [vmem:[#allocation22 + $0xa0] sm:$0xff] }
 0x7ae   :  { %1998 = vadd.xlane.f32.xlu2 %v1997_v37 }
 0x7af   :  { %v2008_v39 = vsel %vm1996_vm13, %v2007_v38, 0.0 }
 0x7b0   :  { %2009 = vadd.xlane.f32.xlu0 %v2008_v39 }
 0x7b6   :  { %v2112_v41 = vpop.f32.mrf.mxu3 }
 0x7b7   :  { %v4693_v42 = vadd.f32 %v3640_v40, %v2112_v41 }
 0x7b9   :  { %v2115_v43 = vsel %vm1996_vm13, %v4693_v42, 0.0  ;;  %v2125_v44 = vmul.f32 %v4693_v42, %v4693_v42 }
 0x7ba   :  { %2116 = vadd.xlane.f32.xlu1 %v2115_v43 }
 0x7bb   :  { %v2126_v45 = vsel %vm1996_vm13, %v2125_v44, 0.0 }
 0x7bc   :  { %2127 = vadd.xlane.f32.xlu2 %v2126_v45 }
 0x821   :  { %v1999_v46 = vpop.xlane.xlu2 %1998 }
 0x822   :  { %v2000_v47 = vrot.slane %v1999_v46, 4 }
 0x823   :  { %v2010_v48 = vpop.xlane.xlu0 %2009 }
 0x824   :  { %v2001_v50 = vadd.f32 %v2000_v47, %v1999_v46  ;;  %v2011_v51 = vrot.slane %v2010_v48, 4  ;;  %v2158_v46 = vld [vmem:[#allocation13 + $0x8] sm:$0xff]  ;;  %v2273_v47 = vld [vmem:[%s4898_s22 + $0x8] sm:$0xff] }
 0x825   :  { %2183 = vmatpush.msra.mxu0 %v2158_v46  ;;  %v2631_v46 = vld [vmem:[#allocation22 + $0x50] sm:$0xff] }
 0x826   :  { %v2002_v52 = vrot.slane %v2001_v50, 2  ;;  %v2012_v53 = vadd.f32 %v2011_v51, %v2010_v48  ;;  %v2157_v48 = vld [vmem:[#allocation13] sm:$0xff]  ;;  %v2204_v51 = vld [vmem:[%s4899_s10 + $0x78] sm:$0xff] }
 0x827   :  { %2184 = vmatpush.msra.mxu0 %v2157_v48  ;;  %2209 = vmatpush.msra.mxu1 %v2204_v51  ;;  %v2629_v48 = vld [vmem:[#allocation22 + $0x40] sm:$0xff]  ;;  %v2627_v51 = vld [vmem:[#allocation22 + $0x30] sm:$0xff] }
 0x828   :  { %v2013_v54 = vrot.slane %v2012_v53, 2  ;;  %v2003_v55 = vadd.f32 %v2002_v52, %v2001_v50  ;;  %v2272_v50 = vld [vmem:[%s4898_s22] sm:$0xff]  ;;  %v2203_v52 = vld [vmem:[%s4899_s10 + $0x70] sm:$0xff] }
 0x829   :  { %2210 = vmatpush.msra.mxu1 %v2203_v52  ;;  %v2625_v52 = vld [vmem:[#allocation22 + $0x20] sm:$0xff] }
 0x82a   :  { %v2004_v56 = vrot.slane %v2003_v55, 1  ;;  %v2014_v57 = vadd.f32 %v2013_v54, %v2012_v53  ;;  %v2315_v53 = vld [vmem:[%s4900_s2 + $0x78] sm:$0xff]  ;;  %v2202_v54 = vld [vmem:[%s4899_s10 + $0x68] sm:$0xff] }
 0x82b   :  { %2320 = vmatpush.msra.mxu3 %v2315_v53  ;;  %2211 = vmatpush.msra.mxu1 %v2202_v54  ;;  %v2623_v53 = vld [vmem:[#allocation22 + $0x10] sm:$0xff]  ;;  %v2621_v54 = vld [vmem:[#allocation22] sm:$0xff] }
 0x82c   :  { %v2005_v58 = vadd.f32 %v2004_v56, %v2003_v55  ;;  %v2015_v61 = vrot.slane %v2014_v57, 1  ;;  %v2314_v55 = vld [vmem:[%s4900_s2 + $0x70] sm:$0xff]  ;;  %v2313_v56 = vld [vmem:[%s4900_s2 + $0x68] sm:$0xff] }
 0x82d   :  { %v2117_v14 = vpop.xlane.xlu1 %2116  ;;  %2321 = vmatpush.msra.mxu3 %v2314_v55  ;;  %v2628_v55 = vld [vmem:[#allocation22 + $0x38] sm:$0xff] }
 0x82e   :  { %3530 = vpush %v2005_v58  ;;  %v2016_v62 = vadd.f32 %v2015_v61, %v2014_v57  ;;  %v2118_v63 = vrot.slane %v2117_v14, 4  ;;  %v2201_v57 = vld [vmem:[%s4899_s10 + $0x60] sm:$0xff]  ;;  %v2200_v61 = vld [vmem:[%s4899_s10 + $0x58] sm:$0xff] }
 0x82f   :  { %v2128_v16 = vpop.xlane.xlu2 %2127  ;;  %v2312_v58 = vld [vmem:[%s4900_s2 + $0x60] sm:$0xff]  ;;  %2322 = vmatpush.msra.mxu3 %v2313_v56  ;;  %2212 = vmatpush.msra.mxu1 %v2201_v57  ;;  %v2626_v56 = vld [vmem:[#allocation22 + $0x28] sm:$0xff] }
 0x830   :  { %3532 = vpush %v2016_v62  ;;  %v2129_v0 = vrot.slane %v2128_v16, 4  ;;  %v2119_v2 = vadd.f32 %v2118_v63, %v2117_v14  ;;  %v2311_v62 = vld [vmem:[%s4900_s2 + $0x58] sm:$0xff]  ;;  %v2199_v14 = vld [vmem:[%s4899_s10 + $0x50] sm:$0xff]  ;;  %v2198_v63 = vld [vmem:[%s4899_s10 + $0x48] sm:$0xff] }
 0x831   :  { %2323 = vmatpush.msra.mxu3 %v2312_v58  ;;  %2213 = vmatpush.msra.mxu1 %v2200_v61  ;;  %v2624_v57 = vld [vmem:[#allocation22 + $0x18] sm:$0xff]  ;;  %v2622_v58 = vld [vmem:[#allocation22 + $0x8] sm:$0xff]  ;;  %v2975_v61 = vld [vmem:[#allocation25 + $0x1e0] sm:$0xff] }
 0x832   :  { %v2130_v3 = vadd.f32 %v2129_v0, %v2128_v16  ;;  %v2120_v5 = vrot.slane %v2119_v2, 2  ;;  %v2310_v16 = vld [vmem:[%s4900_s2 + $0x50] sm:$0xff]  ;;  %v2309_v0 = vld [vmem:[%s4900_s2 + $0x48] sm:$0xff] }
 0x833   :  { %2324 = vmatpush.msra.mxu3 %v2311_v62  ;;  %2214 = vmatpush.msra.mxu1 %v2199_v14  ;;  %v2971_v14 = vld [vmem:[#allocation25 + $0x1c0] sm:$0xff] }
 0x834   :  { %v2131_v7 = vrot.slane %v2130_v3, 2  ;;  %v2121_v10 = vadd.f32 %v2120_v5, %v2119_v2  ;;  %v2308_v2 = vld [vmem:[%s4900_s2 + $0x40] sm:$0xff]  ;;  %v2307_v5 = vld [vmem:[%s4900_s2 + $0x38] sm:$0xff] }
 0x835   :  { %2325 = vmatpush.msra.mxu3 %v2310_v16  ;;  %2215 = vmatpush.msra.mxu1 %v2198_v63  ;;  %v2967_v16 = vld [vmem:[#allocation25 + $0x1a0] sm:$0xff] }
 0x836   :  { %v2132_v11 = vadd.f32 %v2131_v7, %v2130_v3  ;;  %v2122_v59 = vrot.slane %v2121_v10, 1  ;;  %v2196_v3 = vld [vmem:[%s4899_s10 + $0x38] sm:$0xff]  ;;  %v2306_v7 = vld [vmem:[%s4900_s2 + $0x30] sm:$0xff] }
 0x837   :  { %2326 = vmatpush.msra.mxu3 %v2309_v0  ;;  %v2963_v63 = vld [vmem:[#allocation25 + $0x180] sm:$0xff] }
 0x838   :  { %v2133_v15 = vrot.slane %v2132_v11, 1  ;;  %v2123_v18 = vadd.f32 %v2122_v59, %v2121_v10  ;;  %v2193_v10 = vld [vmem:[%s4899_s10 + $0x20] sm:$0xff]  ;;  %v2191_v59 = vld [vmem:[%s4899_s10 + $0x10] sm:$0xff] }
 0x839   :  { %2327 = vmatpush.msra.mxu3 %v2308_v2  ;;  %v3039_v0 = vld [vmem:[#allocation25 + $0x3e0] sm:$0xff] }
 0x83a   :  { %v2134_v19 = vadd.f32 %v2133_v15, %v2132_v11  ;;  %v2304_v11 = vld [vmem:[%s4900_s2 + $0x20] sm:$0xff]  ;;  %v2959_v2 = vld [vmem:[#allocation25 + $0x160] sm:$0xff] }
 0x83b   :  { %2328 = vmatpush.msra.mxu3 %v2307_v5  ;;  %v2955_v5 = vld [vmem:[#allocation25 + $0x140] sm:$0xff] }
 0x83d   :  { %2329 = vmatpush.msra.mxu3 %v2306_v7  ;;  %v2951_v7 = vld [vmem:[#allocation25 + $0x120] sm:$0xff] }
 0x85f   :  { %s3531_s1 = spop %3530 }
 0x860   :  { %s4700_s18 = smul.f32 0.0078125, %s3531_s1 }
 0x861   :  { %s3533_s24 = spop %3532 }
 0x862   :  { %s2019_s3 = smul.f32 128.0, %s4700_s18  ;;  %v2035_v20 = vstv %s4700_s18 }
 0x863   :  { %v2036_v24 = vsub.f32 %v4685_v36, %v2035_v20  ;;  %v2274_v36 = vld [vmem:[%s4898_s22 + $0x10] sm:$0xff]  ;;  %v2189_v20 = vld [vmem:[%s4899_s10] sm:$0xff]  ;;  %s4903_s22 = sld [smem:[#allocation53_spill]] }
 0x864   :  { %s2020_s20 = smul.f32 %s2019_s3, %s4700_s18  ;;  %2293 = vmatpush.msra.mxu2 %v2274_v36  ;;  %v2642_v36 = vld [vmem:[#allocation22 + $0xa8] sm:$0xff] }
 0x866   :  { %s2021_s7 = ssub.f32 %s3533_s24, %s2020_s20  ;;  %2294 = vmatpush.msra.mxu2 %v2273_v47  ;;  %v2632_v47 = vld [vmem:[#allocation22 + $0x58] sm:$0xff] }
 0x868   :  { %s2022_s0 = smul.f32 0.007874016, %s2021_s7  ;;  %2295 = vmatpush.msra.mxu2 %v2272_v50  ;;  %v2630_v50 = vld [vmem:[#allocation22 + $0x48] sm:$0xff] }
 0x86a   :  { %v2023_v1 = vstv %s2022_s0 }
 0x86b   :  { %3653 = vrsqrt.f32 %v2023_v1  ;;  %vm2030_vm15 = vweird.f32 %v2023_v1 }
 0x871   :  { %v3654_v6 = vpop.eup %3653 }
 0x872   :  { %v2025_v8 = vmul.f32 %v3654_v6, %v2023_v1  ;;  %vm2031_vm14 = vweird.f32 %v3654_v6  ;;  %v2197_v1 = vld [vmem:[%s4899_s10 + $0x40] sm:$0xff] }
 0x873   :  { %vm2032_vm1 = vmor %vm2030_vm15, %vm2031_vm14  ;;  %2216 = vmatpush.msra.mxu1 %v2197_v1 }
 0x874   :  { %v2026_v9 = vmul.f32 %v3654_v6, %v2025_v8  ;;  %v2194_v8 = vld [vmem:[%s4899_s10 + $0x28] sm:$0xff] }
 0x875   :  { %2217 = vmatpush.msra.mxu1 %v2196_v3  ;;  %v3035_v3 = vld [vmem:[#allocation25 + $0x3c0] sm:$0xff] }
 0x876   :  { %v2027_v12 = vmul.f32 0.5, %v2026_v9  ;;  %v2305_v9 = vld [vmem:[%s4900_s2 + $0x28] sm:$0xff] }
 0x877   :  { %2330 = vmatpush.msra.mxu3 %v2305_v9  ;;  %v2947_v9 = vld [vmem:[#allocation25 + $0x100] sm:$0xff] }
 0x878   :  { %v2028_v13 = vsub.f32 1.5, %v2027_v12  ;;  %v2192_v12 = vld [vmem:[%s4899_s10 + $0x18] sm:$0xff] }
 0x879   :  { %2331 = vmatpush.msra.mxu3 %v2304_v11  ;;  %v2943_v11 = vld [vmem:[#allocation25 + $0xe0] sm:$0xff] }
 0x87a   :  { %v2029_v17 = vmul.f32 %v3654_v6, %v2028_v13  ;;  %v2303_v13 = vld [vmem:[%s4900_s2 + $0x18] sm:$0xff] }
 0x87b   :  { %2332 = vmatpush.msra.mxu3 %v2303_v13  ;;  %v2939_v13 = vld [vmem:[#allocation25 + $0xc0] sm:$0xff] }
 0x87c   :  { %v2033_v60 = vsel %vm2032_vm1, %v3654_v6, %v2029_v17  ;;  %v2195_v6 = vld [vmem:[%s4899_s10 + $0x30] sm:$0xff] }
 0x87d   :  { %3534 = vpush %v2033_v60  ;;  %2218 = vmatpush.msra.mxu1 %v2195_v6  ;;  %v2302_v17 = vld [vmem:[%s4900_s2 + $0x10] sm:$0xff]  ;;  %v2190_v60 = vld [vmem:[%s4899_s10 + $0x8] sm:$0xff]  ;;  %s4904_s10 = sld [smem:[#allocation54_spill]] }
 0x87e   :  { %3536 = vpush %v2123_v18  ;;  %v2301_v18 = vld [vmem:[%s4900_s2 + $0x8] sm:$0xff]  ;;  %2333 = vmatpush.msra.mxu3 %v2302_v17 }
 0x87f   :  { %3538 = vpush %v2134_v19  ;;  %2219 = vmatpush.msra.mxu1 %v2194_v8  ;;  %v3031_v6 = vld [vmem:[#allocation25 + $0x3a0] sm:$0xff] }
 0x880   :  { %2334 = vmatpush.msra.mxu3 %v2301_v18  ;;  %v3027_v8 = vld [vmem:[#allocation25 + $0x380] sm:$0xff] }
 0x881   :  { %2220 = vmatpush.msra.mxu1 %v2193_v10  ;;  %v3023_v10 = vld [vmem:[#allocation25 + $0x360] sm:$0xff] }
 0x882   :  { %v3011_v17 = vld [vmem:[#allocation25 + $0x300] sm:$0xff] }
 0x883   :  { %2221 = vmatpush.msra.mxu1 %v2192_v12  ;;  %v3019_v12 = vld [vmem:[#allocation25 + $0x340] sm:$0xff] }
 0x884   :  { %v3007_v18 = vld [vmem:[#allocation25 + $0x2e0] sm:$0xff] }
 0x885   :  { %2222 = vmatpush.msra.mxu1 %v2191_v59  ;;  %v3015_v59 = vld [vmem:[#allocation25 + $0x320] sm:$0xff] }
 0x887   :  { %2223 = vmatpush.msra.mxu1 %v2190_v60  ;;  %v2931_v60 = vld [vmem:[#allocation25 + $0x80] sm:$0xff] }
 0x889   :  { %2224 = vmatpush.msra.mxu1 %v2189_v20  ;;  %v2923_v20 = vld [vmem:[#allocation25 + $0x40] sm:$0xff] }
 0x88b   :  { %2653 = vmatpush.msrb.mxu1 %v2651_v23  ;;  %v2919_v23 = vld [vmem:[#allocation25 + $0x20] sm:$0xff] }
 0x8ae   :  { %s3535_s23 = spop %3534 }
 0x8af   :  { %v2037_v25 = vstv %s3535_s23  ;;  %s3537_s26 = spop %3536 }
 0x8b0   :  { %v4709_v31 = vmul.f32 %v2037_v25, %v2036_v24  ;;  %s4711_s28 = smul.f32 0.0078125, %s3537_s26  ;;  %s3539_s8 = spop %3538  ;;  %v2300_v24 = vld [vmem:[%s4900_s2] sm:$0xff]  ;;  %v2649_v25 = vld [vmem:[#allocation22 + $0xe0] sm:$0xff] }
 0x8b1   :  { %2335 = vmatpush.msra.mxu3 %v2300_v24  ;;  %2654 = vmatpush.msrb.mxu1 %v2649_v25  ;;  %v2995_v24 = vld [vmem:[#allocation25 + $0x280] sm:$0xff] }
 0x8b2   :  { %s2137_s19 = smul.f32 128.0, %s4711_s28  ;;  %v2153_v15 = vstv %s4711_s28 }
 0x8b3   :  { %v2154_v19 = vsub.f32 %v4693_v42, %v2153_v15  ;;  %v2647_v42 = vld [vmem:[#allocation22 + $0xd0] sm:$0xff]  ;;  %2673 = vmatpush.msrb.mxu3 %v2652_v27  ;;  %v2935_v15 = vld [vmem:[#allocation25 + $0xa0] sm:$0xff]  ;;  %v897_v27 = vstv %s4511_s21  ;;  %s4902_s21 = sld [smem:[#allocation50_spill]] }
 0x8b4   :  { %s2138_s29 = smul.f32 %s2137_s19, %s4711_s28  ;;  %2655 = vmatpush.msrb.mxu1 %v2647_v42  ;;  %v2991_v42 = vld [vmem:[#allocation25 + $0x260] sm:$0xff] }
 0x8b5   :  { %2674 = vmatpush.msrb.mxu3 %v2650_v29  ;;  %v2915_v29 = vld [vmem:[#allocation25] sm:$0xff] }
 0x8b6   :  { %s2139_s27 = ssub.f32 %s3539_s8, %s2138_s29  ;;  %2656 = vmatpush.msrb.mxu1 %v2645_v26  ;;  %v2977_v26 = vld [vmem:[#allocation25 + $0x1f0] sm:$0xff] }
 0x8b7   :  { %2675 = vmatpush.msrb.mxu3 %v2648_v30 }
 0x8b8   :  { %s2140_s9 = smul.f32 0.007874016, %s2139_s27  ;;  %2657 = vmatpush.msrb.mxu1 %v2643_v49  ;;  %v2973_v49 = vld [vmem:[#allocation25 + $0x1d0] sm:$0xff] }
 0x8b9   :  { %2676 = vmatpush.msrb.mxu3 %v2646_v33  ;;  %v2987_v33 = vld [vmem:[#allocation25 + $0x240] sm:$0xff] }
 0x8ba   :  { %v2141_v37 = vstv %s2140_s9  ;;  %2658 = vmatpush.msrb.mxu1 %v2641_v35 }
 0x8bb   :  { %3655 = vrsqrt.f32 %v2141_v37  ;;  %vm2148_vm3 = vweird.f32 %v2141_v37  ;;  %2677 = vmatpush.msrb.mxu3 %v2644_v34  ;;  %v2983_v34 = vld [vmem:[#allocation25 + $0x220] sm:$0xff] }
 0x8bd   :  { %2678 = vmatpush.msrb.mxu3 %v2642_v36  ;;  %v2969_v36 = vld [vmem:[#allocation25 + $0x1b0] sm:$0xff] }
 0x8c1   :  { %v3656_v38 = vpop.eup %3655 }
 0x8c2   :  { %v2143_v39 = vmul.f32 %v3656_v38, %v2141_v37  ;;  %vm2149_vm2 = vweird.f32 %v3656_v38  ;;  %v2639_v37 = vld [vmem:[#allocation22 + $0x90] sm:$0xff] }
 0x8c3   :  { %vm2150_vm4 = vmor %vm2148_vm3, %vm2149_vm2  ;;  %2659 = vmatpush.msrb.mxu1 %v2639_v37 }
 0x8c4   :  { %v2144_v40 = vmul.f32 %v3656_v38, %v2143_v39  ;;  %v2637_v39 = vld [vmem:[#allocation22 + $0x80] sm:$0xff] }
 0x8c5   :  { %2660 = vmatpush.msrb.mxu1 %v2637_v39  ;;  %v3041_v39 = vld [vmem:[#allocation25 + $0x3f0] sm:$0xff] }
 0x8c6   :  { %v2145_v41 = vmul.f32 0.5, %v2144_v40  ;;  %v2638_v40 = vld [vmem:[#allocation22 + $0x88] sm:$0xff] }
 0x8c8   :  { %v2146_v43 = vsub.f32 1.5, %v2145_v41  ;;  %v2635_v41 = vld [vmem:[#allocation22 + $0x70] sm:$0xff] }
 0x8c9   :  { %2661 = vmatpush.msrb.mxu1 %v2635_v41  ;;  %v3037_v41 = vld [vmem:[#allocation25 + $0x3d0] sm:$0xff] }
 0x8ca   :  { %v2147_v44 = vmul.f32 %v3656_v38, %v2146_v43  ;;  %v2636_v43 = vld [vmem:[#allocation22 + $0x78] sm:$0xff] }
 0x8cc   :  { %v2151_v45 = vsel %vm2150_vm4, %v3656_v38, %v2147_v44  ;;  %v2640_v38 = vld [vmem:[#allocation22 + $0x98] sm:$0xff]  ;;  %v2633_v44 = vld [vmem:[#allocation22 + $0x60] sm:$0xff] }
 0x8cd   :  { %3540 = vpush %v2151_v45  ;;  %2679 = vmatpush.msrb.mxu3 %v2640_v38  ;;  %v2634_v45 = vld [vmem:[#allocation22 + $0x68] sm:$0xff]  ;;  %2662 = vmatpush.msrb.mxu1 %v2633_v44  ;;  %v2965_v38 = vld [vmem:[#allocation25 + $0x190] sm:$0xff] }
 0x8ce   :  { %v3033_v44 = vld [vmem:[#allocation25 + $0x3b0] sm:$0xff] }
 0x8cf   :  { %2680 = vmatpush.msrb.mxu3 %v2638_v40  ;;  %2663 = vmatpush.msrb.mxu1 %v2631_v46  ;;  %v2961_v40 = vld [vmem:[#allocation25 + $0x170] sm:$0xff] }
 0x8d0   :  { %v2949_v46 = vld [vmem:[#allocation25 + $0x110] sm:$0xff] }
 0x8d1   :  { %2681 = vmatpush.msrb.mxu3 %v2636_v43  ;;  %2664 = vmatpush.msrb.mxu1 %v2629_v48  ;;  %v2957_v43 = vld [vmem:[#allocation25 + $0x150] sm:$0xff] }
 0x8d2   :  { %v2945_v48 = vld [vmem:[#allocation25 + $0xf0] sm:$0xff] }
 0x8d3   :  { %2682 = vmatpush.msrb.mxu3 %v2634_v45  ;;  %2665 = vmatpush.msrb.mxu1 %v2627_v51  ;;  %v3029_v45 = vld [vmem:[#allocation25 + $0x390] sm:$0xff] }
 0x8d4   :  { %v2941_v51 = vld [vmem:[#allocation25 + $0xd0] sm:$0xff] }
 0x8d5   :  { %2683 = vmatpush.msrb.mxu3 %v2632_v47  ;;  %2666 = vmatpush.msrb.mxu1 %v2625_v52  ;;  %v3025_v47 = vld [vmem:[#allocation25 + $0x370] sm:$0xff] }
 0x8d6   :  { %v3017_v52 = vld [vmem:[#allocation25 + $0x330] sm:$0xff] }
 0x8d7   :  { %2684 = vmatpush.msrb.mxu3 %v2630_v50  ;;  %2667 = vmatpush.msrb.mxu1 %v2623_v53  ;;  %v3021_v50 = vld [vmem:[#allocation25 + $0x350] sm:$0xff] }
 0x8d8   :  { %v2937_v53 = vld [vmem:[#allocation25 + $0xb0] sm:$0xff] }
 0x8d9   :  { %2668 = vmatpush.msrb.mxu1 %v2621_v54  ;;  %2685 = vmatpush.msrb.mxu3 %v2628_v55  ;;  %v3013_v54 = vld [vmem:[#allocation25 + $0x310] sm:$0xff] }
 0x8da   :  { %v2933_v55 = vld [vmem:[#allocation25 + $0x90] sm:$0xff] }
 0x8db   :  { %2686 = vmatpush.msrb.mxu3 %v2626_v56  ;;  %v3009_v56 = vld [vmem:[#allocation25 + $0x2f0] sm:$0xff] }
 0x8dd   :  { %2687 = vmatpush.msrb.mxu3 %v2624_v57  ;;  %v2929_v57 = vld [vmem:[#allocation25 + $0x70] sm:$0xff] }
 0x8df   :  { %2688 = vmatpush.msrb.mxu3 %v2622_v58  ;;  %v3005_v58 = vld [vmem:[#allocation25 + $0x2d0] sm:$0xff] }
 0x8fe   :  { %s3541_s4 = spop %3540 }
 0x8ff   :  { %v2155_v21 = vstv %s3541_s4 }
 0x900   :  { %v2156_v22 = vmul.f32 %v2155_v21, %v2154_v19  ;;  %v2927_v19 = vld [vmem:[#allocation25 + $0x60] sm:$0xff] }
 0x901   :  { %v2999_v21 = vld [vmem:[#allocation25 + $0x2a0] sm:$0xff] }
 0x902   :  { %3500 = vmatmul.msk.f32.vlgmr.msra.gmra.mxu0 %vm2165_vm5, %v2156_v22  ;;  %3501 = vmatmul.msk.f32.vlgmr.msra.gmra.mxu2 %vm2165_vm5, %v2156_v22  ;;  %v894_v22 = vstv %s4507_s13  ;;  %s4901_s13 = sld [smem:[#allocation52_spill]] }
 0x903   :  { %v895_v25 = vsub.f32 %v4478_v28, %v894_v22  ;;  %v896_v35 = vsub.f32 %v4480_v32, %v894_v22  ;;  %v2979_v28 = vld [vmem:[#allocation25 + $0x200] sm:$0xff]  ;;  %v2953_v32 = vld [vmem:[#allocation25 + $0x130] sm:$0xff] }
 0x905   :  { %v4761_v30 = vmul.f32 %v897_v27, %v895_v25  ;;  %v4765_v37 = vmul.f32 %v897_v27, %v896_v35  ;;  %v2386_v35 = vld [vmem:[#allocation16] sm:$0xff] }
 0x97f   :  { %v2186_v62 = vpop.f32.mrf.mxu0 }
 0x980   :  { %2225 = vmatmul.f32.vlgmr.msra.gmra.mxu1 %v2186_v62  ;;  %v3001_v62 = vld [vmem:[#allocation25 + $0x2b0] sm:$0xff] }
 0x981   :  { %3043 = vmatpush.msra.mxu1 %v2975_v61  ;;  %v2925_v61 = vld [vmem:[#allocation25 + $0x50] sm:$0xff] }
 0x983   :  { %3044 = vmatpush.msra.mxu1 %v2971_v14  ;;  %v2921_v14 = vld [vmem:[#allocation25 + $0x30] sm:$0xff] }
 0x985   :  { %3045 = vmatpush.msra.mxu1 %v2967_v16  ;;  %v2297_v1 = vpop.f32.mrf.mxu2  ;;  %v2997_v16 = vld [vmem:[#allocation25 + $0x290] sm:$0xff] }
 0x986   :  { %2336 = vmatmul.f32.vlgmr.msra.gmra.mxu3 %v2297_v1  ;;  %v2989_v1 = vld [vmem:[#allocation25 + $0x250] sm:$0xff] }
 0x987   :  { %3046 = vmatpush.msra.mxu1 %v2963_v63  ;;  %3063 = vmatpush.msra.mxu3 %v3039_v0  ;;  %v2917_v63 = vld [vmem:[#allocation25 + $0x10] sm:$0xff] }
 0x988   :  { %2669 = vmatmul.f32.vlgmr.msrb.gmra.mxu1 %v4612_v4  ;;  %v2993_v0 = vld [vmem:[#allocation25 + $0x270] sm:$0xff] }
 0x989   :  { %3047 = vmatpush.msra.mxu1 %v2959_v2  ;;  %3064 = vmatpush.msra.mxu3 %v3035_v3  ;;  %v2985_v2 = vld [vmem:[#allocation25 + $0x230] sm:$0xff] }
 0x98a   :  { %v2981_v3 = vld [vmem:[#allocation25 + $0x210] sm:$0xff] }
 0x98b   :  { %3048 = vmatpush.msra.mxu1 %v2955_v5  ;;  %3065 = vmatpush.msra.mxu3 %v3031_v6  ;;  %v3641_v5 = vld [vmem:[%s4901_s13] ss:$0 sm:$0xff] }
 0x98d   :  { %3049 = vmatpush.msra.mxu1 %v2951_v7  ;;  %3066 = vmatpush.msra.mxu3 %v3027_v8 }
 0x98e   :  { %2689 = vmatmul.f32.vlgmr.msrb.gmra.mxu3 %v4612_v4  ;;  %v3003_v4 = vld [vmem:[#allocation25 + $0x2c0] sm:$0xff] }
 0x98f   :  { %3050 = vmatpush.msra.mxu1 %v2947_v9  ;;  %3067 = vmatpush.msra.mxu3 %v3023_v10 }
 0x991   :  { %3051 = vmatpush.msra.mxu1 %v2943_v11  ;;  %3068 = vmatpush.msra.mxu3 %v3019_v12  ;;  %v3642_v11 = vld [vmem:[%s4902_s21] ss:$0 sm:$0xff] }
 0x993   :  { %3052 = vmatpush.msra.mxu1 %v2939_v13  ;;  %3069 = vmatpush.msra.mxu3 %v3015_v59 }
 0x995   :  { %3053 = vmatpush.msra.mxu1 %v2935_v15  ;;  %3070 = vmatpush.msra.mxu3 %v3011_v17 }
 0x997   :  { %3054 = vmatpush.msra.mxu1 %v2931_v60  ;;  %3071 = vmatpush.msra.mxu3 %v3007_v18 }
 0x999   :  { %3055 = vmatpush.msra.mxu1 %v2927_v19  ;;  %3072 = vmatpush.msra.mxu3 %v3003_v4 }
 0x99b   :  { %3056 = vmatpush.msra.mxu1 %v2923_v20  ;;  %3073 = vmatpush.msra.mxu3 %v2999_v21 }
 0x99d   :  { %3057 = vmatpush.msra.mxu1 %v2919_v23  ;;  %3074 = vmatpush.msra.mxu3 %v2995_v24 }
 0x99f   :  { %3058 = vmatpush.msra.mxu1 %v2915_v29  ;;  %3075 = vmatpush.msra.mxu3 %v2991_v42 }
 0x9a0   :  { %3059 = vmatmul.f32.vlgmr.msra.gmra.mxu1 %v4761_v30 }
 0x9a1   :  { %3123 = vmatpush.msrb.mxu1 %v2977_v26  ;;  %3076 = vmatpush.msra.mxu3 %v2987_v33  ;;  %v2389_v33 = vld [vmem:[#allocation16 + $0x18] sm:$0xff] }
 0x9a2   :  { %2406 = vmatpush.msrb.mxu0 %v2389_v33 }
 0x9a3   :  { %3124 = vmatpush.msrb.mxu1 %v2973_v49  ;;  %3077 = vmatpush.msra.mxu3 %v2983_v34  ;;  %v2388_v49 = vld [vmem:[#allocation16 + $0x10] sm:$0xff]  ;;  %v2387_v34 = vld [vmem:[#allocation16 + $0x8] sm:$0xff] }
 0x9a4   :  { %2407 = vmatpush.msrb.mxu0 %v2388_v49 }
 0x9a5   :  { %3125 = vmatpush.msrb.mxu1 %v2969_v36  ;;  %3078 = vmatpush.msra.mxu3 %v2979_v28  ;;  %v2497_v36 = vld [vmem:[#allocation19 + $0x38] sm:$0xff] }
 0x9a6   :  { %3079 = vmatmul.f32.vlgmr.msra.gmra.mxu3 %v4765_v37  ;;  %2408 = vmatpush.msrb.mxu0 %v2387_v34 }
 0x9a7   :  { %3126 = vmatpush.msrb.mxu1 %v2965_v38  ;;  %3143 = vmatpush.msrb.mxu3 %v3041_v39  ;;  %v2496_v39 = vld [vmem:[#allocation19 + $0x30] sm:$0xff] }
 0x9a8   :  { %2409 = vmatpush.msrb.mxu0 %v2386_v35 }
 0x9a9   :  { %3127 = vmatpush.msrb.mxu1 %v2961_v40  ;;  %3144 = vmatpush.msrb.mxu3 %v3037_v41 }
 0x9aa   :  { %2509 = vmatpush.msra.mxu0 %v2497_v36 }
 0x9ab   :  { %3128 = vmatpush.msrb.mxu1 %v2957_v43  ;;  %3145 = vmatpush.msrb.mxu3 %v3033_v44 }
 0x9ac   :  { %2510 = vmatpush.msra.mxu0 %v2496_v39 }
 0x9ad   :  { %3129 = vmatpush.msrb.mxu1 %v2953_v32  ;;  %3146 = vmatpush.msrb.mxu3 %v3029_v45 }
 0x9af   :  { %3130 = vmatpush.msrb.mxu1 %v2949_v46  ;;  %3147 = vmatpush.msrb.mxu3 %v3025_v47 }
 0x9b1   :  { %3131 = vmatpush.msrb.mxu1 %v2945_v48  ;;  %3148 = vmatpush.msrb.mxu3 %v3021_v50 }
 0x9b3   :  { %3132 = vmatpush.msrb.mxu1 %v2941_v51  ;;  %3149 = vmatpush.msrb.mxu3 %v3017_v52 }
 0x9b5   :  { %3133 = vmatpush.msrb.mxu1 %v2937_v53  ;;  %3150 = vmatpush.msrb.mxu3 %v3013_v54 }
 0x9b7   :  { %3134 = vmatpush.msrb.mxu1 %v2933_v55  ;;  %3151 = vmatpush.msrb.mxu3 %v3009_v56 }
 0x9b9   :  { %3135 = vmatpush.msrb.mxu1 %v2929_v57  ;;  %3152 = vmatpush.msrb.mxu3 %v3005_v58 }
 0x9bb   :  { %3136 = vmatpush.msrb.mxu1 %v2925_v61  ;;  %3153 = vmatpush.msrb.mxu3 %v3001_v62 }
 0x9bd   :  { %3137 = vmatpush.msrb.mxu1 %v2921_v14  ;;  %3154 = vmatpush.msrb.mxu3 %v2997_v16  ;;  %v2495_v14 = vld [vmem:[#allocation19 + $0x28] sm:$0xff]  ;;  %v2494_v16 = vld [vmem:[#allocation19 + $0x20] sm:$0xff] }
 0x9be   :  { %2511 = vmatpush.msra.mxu0 %v2495_v14  ;;  %v2483_v14 = vld [vmem:[#allocation18 + $0x8] sm:$0xff] }
 0x9bf   :  { %3138 = vmatpush.msrb.mxu1 %v2917_v63  ;;  %3155 = vmatpush.msrb.mxu3 %v2993_v0  ;;  %v2493_v63 = vld [vmem:[#allocation19 + $0x18] sm:$0xff]  ;;  %v2492_v0 = vld [vmem:[#allocation19 + $0x10] sm:$0xff] }
 0x9c0   :  { %3139 = vmatmul.f32.vlgmr.msrb.gmra.mxu1 %v4761_v30  ;;  %2512 = vmatpush.msra.mxu0 %v2494_v16  ;;  %v2482_v16 = vld [vmem:[#allocation18] sm:$0xff] }
 0x9c1   :  { %3156 = vmatpush.msrb.mxu3 %v2989_v1  ;;  %v2491_v1 = vld [vmem:[#allocation19 + $0x8] sm:$0xff] }
 0x9c2   :  { %2513 = vmatpush.msra.mxu0 %v2493_v63 }
 0x9c3   :  { %3157 = vmatpush.msrb.mxu3 %v2985_v2  ;;  %v2490_v2 = vld [vmem:[#allocation19] sm:$0xff] }
 0x9c4   :  { %2514 = vmatpush.msra.mxu0 %v2492_v0 }
 0x9c5   :  { %3158 = vmatpush.msrb.mxu3 %v2981_v3 }
 0x9c6   :  { %3159 = vmatmul.f32.vlgmr.msrb.gmra.mxu3 %v4765_v37  ;;  %2515 = vmatpush.msra.mxu0 %v2491_v1  ;;  %v3644_v1 = vld [vmem:[%s4904_s10] ss:$0 sm:$0xff] }
 0x9c8   :  { %2516 = vmatpush.msra.mxu0 %v2490_v2 }
 0x9fd   :  { %v2226_v6 = vpop.f32.mrf.mxu1 }
 0x9fe   :  { %v4771_v7 = vadd.f32 %v3641_v5, %v2226_v6  ;;  %v2385_v5 = vld [vmem:[#allocation15 + $0x18] sm:$0xff]  ;;  %v2384_v6 = vld [vmem:[#allocation15 + $0x10] sm:$0xff] }
 0x9ff   :  { %2429 = vmatpush.msrb.mxu2 %v2385_v5 }
 0xa00   :  { %v2230_v8 = vsel %vm2229_vm6, %v4771_v7, 0.0  ;;  %v2240_v9 = vmul.f32 %v4771_v7, %v4771_v7 }
 0xa01   :  { %2231 = vadd.xlane.f32.xlu0 %v2230_v8  ;;  %2430 = vmatpush.msrb.mxu2 %v2384_v6 }
 0xa02   :  { %v2241_v10 = vsel %vm2229_vm6, %v2240_v9, 0.0 }
 0xa03   :  { %2242 = vadd.xlane.f32.xlu1 %v2241_v10 }
 0xa09   :  { %v2337_v12 = vpop.f32.mrf.mxu3 }
 0xa0a   :  { %v4777_v13 = vadd.f32 %v3642_v11, %v2337_v12 }
 0xa0c   :  { %v2340_v59 = vsel %vm2229_vm6, %v4777_v13, 0.0  ;;  %v2350_v15 = vmul.f32 %v4777_v13, %v4777_v13 }
 0xa0d   :  { %2341 = vadd.xlane.f32.xlu2 %v2340_v59 }
 0xa0e   :  { %v2351_v17 = vsel %vm2229_vm6, %v2350_v15, 0.0 }
 0xa0f   :  { %2352 = vadd.xlane.f32.xlu0 %v2351_v17 }
 0xa74   :  { %v2232_v60 = vpop.xlane.xlu0 %2231 }
 0xa75   :  { %v2233_v18 = vrot.slane %v2232_v60, 4 }
 0xa76   :  { %v2243_v19 = vpop.xlane.xlu1 %2242 }
 0xa77   :  { %v2234_v4 = vadd.f32 %v2233_v18, %v2232_v60  ;;  %v2244_v20 = vrot.slane %v2243_v19, 4 }
 0xa79   :  { %v2235_v21 = vrot.slane %v2234_v4, 2  ;;  %v2245_v22 = vadd.f32 %v2244_v20, %v2243_v19  ;;  %v2383_v19 = vld [vmem:[#allocation15 + $0x8] sm:$0xff] }
 0xa7a   :  { %2431 = vmatpush.msrb.mxu2 %v2383_v19 }
 0xa7b   :  { %v2246_v23 = vrot.slane %v2245_v22, 2  ;;  %v2236_v24 = vadd.f32 %v2235_v21, %v2234_v4  ;;  %v2382_v4 = vld [vmem:[#allocation15] sm:$0xff] }
 0xa7c   :  { %2432 = vmatpush.msrb.mxu2 %v2382_v4 }
 0xa7d   :  { %v2237_v27 = vrot.slane %v2236_v24, 1  ;;  %v2247_v25 = vadd.f32 %v2246_v23, %v2245_v22  ;;  %v3643_v23 = vld [vmem:[%s4903_s22] ss:$0 sm:$0xff] }
 0xa7f   :  { %v2238_v29 = vadd.f32 %v2237_v27, %v2236_v24  ;;  %v2248_v42 = vrot.slane %v2247_v25, 1 }
 0xa80   :  { %v2342_v28 = vpop.xlane.xlu2 %2341 }
 0xa81   :  { %3542 = vpush %v2238_v29  ;;  %v2249_v26 = vadd.f32 %v2248_v42, %v2247_v25  ;;  %v2343_v40 = vrot.slane %v2342_v28, 4 }
 0xa82   :  { %v2353_v38 = vpop.xlane.xlu0 %2352 }
 0xa83   :  { %3544 = vpush %v2249_v26  ;;  %v2354_v41 = vrot.slane %v2353_v38, 4  ;;  %v2344_v44 = vadd.f32 %v2343_v40, %v2342_v28 }
 0xa85   :  { %v2355_v32 = vadd.f32 %v2354_v41, %v2353_v38  ;;  %v2345_v45 = vrot.slane %v2344_v44, 2 }
 0xa87   :  { %v2356_v47 = vrot.slane %v2355_v32, 2  ;;  %v2346_v51 = vadd.f32 %v2345_v45, %v2344_v44 }
 0xa89   :  { %v2357_v52 = vadd.f32 %v2356_v47, %v2355_v32  ;;  %v2347_v55 = vrot.slane %v2346_v51, 1  ;;  %v2488_v47 = vld [vmem:[#allocation18 + $0x30] sm:$0xff] }
 0xa8b   :  { %v2358_v56 = vrot.slane %v2357_v52, 1  ;;  %v2348_v61 = vadd.f32 %v2347_v55, %v2346_v51  ;;  %v2485_v51 = vld [vmem:[#allocation18 + $0x18] sm:$0xff] }
 0xa8d   :  { %v2359_v62 = vadd.f32 %v2358_v56, %v2357_v52  ;;  %v2484_v52 = vld [vmem:[#allocation18 + $0x10] sm:$0xff] }
 0xab2   :  { %s3543_s11 = spop %3542 }
 0xab3   :  { %s4782_s15 = smul.f32 0.015625, %s3543_s11 }
 0xab4   :  { %s3545_s6 = spop %3544 }
 0xab5   :  { %s2252_s30 = smul.f32 64.0, %s4782_s15  ;;  %v2268_v3 = vstv %s4782_s15 }
 0xab6   :  { %v2269_v8 = vsub.f32 %v4771_v7, %v2268_v3 }
 0xab7   :  { %s2253_s16 = smul.f32 %s2252_s30, %s4782_s15 }
 0xab9   :  { %s2254_s12 = ssub.f32 %s3545_s6, %s2253_s16 }
 0xabb   :  { %s2255_s25 = smul.f32 0.015873017, %s2254_s12  ;;  %s4905_s12 = sld [smem:[#allocation55_spill]] }
 0xabd   :  { %v2256_v43 = vstv %s2255_s25 }
 0xabe   :  { %3657 = vrsqrt.f32 %v2256_v43  ;;  %vm2263_vm8 = vweird.f32 %v2256_v43 }
 0xac4   :  { %v3658_v46 = vpop.eup %3657 }
 0xac5   :  { %v2258_v48 = vmul.f32 %v3658_v46, %v2256_v43  ;;  %vm2264_vm7 = vweird.f32 %v3658_v46 }
 0xac6   :  { %vm2265_vm9 = vmor %vm2263_vm8, %vm2264_vm7 }
 0xac7   :  { %v2259_v50 = vmul.f32 %v3658_v46, %v2258_v48  ;;  %v2487_v48 = vld [vmem:[#allocation18 + $0x28] sm:$0xff] }
 0xac9   :  { %v2260_v53 = vmul.f32 0.5, %v2259_v50  ;;  %v2486_v50 = vld [vmem:[#allocation18 + $0x20] sm:$0xff] }
 0xacb   :  { %v2261_v54 = vsub.f32 1.5, %v2260_v53 }
 0xacd   :  { %v2262_v57 = vmul.f32 %v3658_v46, %v2261_v54 }
 0xacf   :  { %v2266_v58 = vsel %vm2265_vm9, %v3658_v46, %v2262_v57  ;;  %v2489_v46 = vld [vmem:[#allocation18 + $0x38] sm:$0xff] }
 0xad0   :  { %3546 = vpush %v2266_v58  ;;  %2532 = vmatpush.msra.mxu2 %v2489_v46  ;;  %v2597_v46 = vld [vmem:[#allocation21 + $0x40] sm:$0xff] }
 0xad1   :  { %3548 = vpush %v2348_v61 }
 0xad2   :  { %3550 = vpush %v2359_v62  ;;  %2533 = vmatpush.msra.mxu2 %v2488_v47  ;;  %v2598_v47 = vld [vmem:[#allocation21 + $0x48] sm:$0xff] }
 0xad4   :  { %2534 = vmatpush.msra.mxu2 %v2487_v48 }
 0xad6   :  { %2535 = vmatpush.msra.mxu2 %v2486_v50  ;;  %v2595_v50 = vld [vmem:[#allocation21 + $0x30] sm:$0xff] }
 0xad8   :  { %2536 = vmatpush.msra.mxu2 %v2485_v51  ;;  %v2596_v51 = vld [vmem:[#allocation21 + $0x38] sm:$0xff] }
 0xada   :  { %2537 = vmatpush.msra.mxu2 %v2484_v52  ;;  %v2593_v52 = vld [vmem:[#allocation21 + $0x20] sm:$0xff] }
 0xadc   :  { %2538 = vmatpush.msra.mxu2 %v2483_v14 }
 0xade   :  { %2539 = vmatpush.msra.mxu2 %v2482_v16  ;;  %v2972_v16 = vld [vmem:[#allocation25 + $0x1c8] sm:$0xff] }
 0xb01   :  { %s3547_s14 = spop %3546 }
 0xb02   :  { %v2270_v9 = vstv %s3547_s14  ;;  %s3549_s1 = spop %3548 }
 0xb03   :  { %v2271_v10 = vmul.f32 %v2270_v9, %v2269_v8  ;;  %s2361_s18 = smul.f32 0.015625, %s3549_s1  ;;  %s3551_s24 = spop %3550 }
 0xb05   :  { %s2362_s3 = smul.f32 64.0, %s2361_s18  ;;  %3502 = vmatmul.msk.f32.vlgmr.msrb.gmra.mxu0 %vm2390_vm10, %v2271_v10  ;;  %v2378_v20 = vstv %s2361_s18 }
 0xb07   :  { %s2363_s20 = smul.f32 %s2362_s3, %s2361_s18 }
 0xb09   :  { %s2364_s7 = ssub.f32 %s3551_s24, %s2363_s20 }
 0xb0b   :  { %s2365_s0 = smul.f32 0.015873017, %s2364_s7 }
 0xb0d   :  { %v2366_v11 = vstv %s2365_s0  ;;  %3504 = vmatmul.msk.f32.vlgmr.msra.gmra.mxu0 %vm2165_vm5, %v4709_v31  ;;  %v2379_v31 = vsub.f32 %v4777_v13, %v2378_v20 }
 0xb0e   :  { %3659 = vrsqrt.f32 %v2366_v11  ;;  %vm2373_vm12 = vweird.f32 %v2366_v11 }
 0xb14   :  { %v3660_v7 = vpop.eup %3659 }
 0xb15   :  { %v2368_v12 = vmul.f32 %v3660_v7, %v2366_v11  ;;  %vm2374_vm11 = vweird.f32 %v3660_v7 }
 0xb16   :  { %vm2375_vm14 = vmor %vm2373_vm12, %vm2374_vm11  ;;  %vm3444_vm11 = vcmask 1045508   ;;  %vm3446_vm12 = vcmask 1043456  }
 0xb17   :  { %v2369_v59 = vmul.f32 %v3660_v7, %v2368_v12 }
 0xb19   :  { %v2370_v15 = vmul.f32 0.5, %v2369_v59 }
 0xb1b   :  { %v2371_v17 = vsub.f32 1.5, %v2370_v15 }
 0xb1d   :  { %v2372_v60 = vmul.f32 %v3660_v7, %v2371_v17 }
 0xb1f   :  { %v2376_v18 = vsel %vm2375_vm14, %v3660_v7, %v2372_v60 }
 0xb20   :  { %3552 = vpush %v2376_v18 }
 0xb51   :  { %s3553_s23 = spop %3552 }
 0xb52   :  { %v2380_v21 = vstv %s3553_s23 }
 0xb53   :  { %v2381_v22 = vmul.f32 %v2380_v21, %v2379_v31 }
 0xb55   :  { %3503 = vmatmul.msk.f32.vlgmr.msrb.gmra.mxu2 %vm2390_vm10, %v2381_v22 }
 0xb82   :  { %v2411_v24 = vpop.f32.mrf.mxu0 }
 0xb8a   :  { %v2518_v2 = vpop.f32.mrf.mxu0 }
 0xbd8   :  { %v2434_v27 = vpop.f32.mrf.mxu2 }
 0xbd9   :  { %v2435_v25 = vadd.f32 %v2434_v27, %v2411_v24  ;;  %v2620_v24 = vld [vmem:[#allocation21 + $0xf8] sm:$0xff]  ;;  %v2617_v27 = vld [vmem:[#allocation21 + $0xe0] sm:$0xff] }
 0xbda   :  { %2713 = vmatpush.msrb.mxu2 %v2620_v24  ;;  %v2932_v24 = vld [vmem:[#allocation25 + $0x88] sm:$0xff] }
 0xbdb   :  { %v2441_v29 = vadd.f32 %v3643_v23, %v2435_v25  ;;  %v2619_v23 = vld [vmem:[#allocation21 + $0xf0] sm:$0xff]  ;;  %v2618_v25 = vld [vmem:[#allocation21 + $0xe8] sm:$0xff] }
 0xbdc   :  { %2693 = vmatpush.msrb.mxu0 %v2619_v23  ;;  %2714 = vmatpush.msrb.mxu2 %v2618_v25  ;;  %v3000_v23 = vld [vmem:[#allocation25 + $0x2a8] sm:$0xff] }
 0xbdd   :  { %v2442_v42 = vsel %vm1996_vm13, %v2441_v29, 0.0  ;;  %v2452_v26 = vmul.f32 %v2441_v29, %v2441_v29  ;;  %v2928_v25 = vld [vmem:[#allocation25 + $0x68] sm:$0xff] }
 0xbde   :  { %2443 = vadd.xlane.f32.xlu1 %v2442_v42  ;;  %2694 = vmatpush.msrb.mxu0 %v2617_v27  ;;  %v2616_v42 = vld [vmem:[#allocation21 + $0xd8] sm:$0xff]  ;;  %v2996_v27 = vld [vmem:[#allocation25 + $0x288] sm:$0xff] }
 0xbdf   :  { %v2453_v33 = vsel %vm1996_vm13, %v2452_v26, 0.0  ;;  %v2613_v26 = vld [vmem:[#allocation21 + $0xc0] sm:$0xff]  ;;  %2715 = vmatpush.msrb.mxu2 %v2616_v42  ;;  %v2924_v42 = vld [vmem:[#allocation25 + $0x48] sm:$0xff] }
 0xbe0   :  { %2454 = vadd.xlane.f32.xlu2 %v2453_v33  ;;  %v2614_v33 = vld [vmem:[#allocation21 + $0xc8] sm:$0xff] }
 0xbe1   :  { %2716 = vmatpush.msrb.mxu2 %v2614_v33  ;;  %v2920_v33 = vld [vmem:[#allocation25 + $0x28] sm:$0xff] }
 0xc51   :  { %v2444_v49 = vpop.xlane.xlu1 %2443 }
 0xc52   :  { %v2445_v34 = vrot.slane %v2444_v49, 4 }
 0xc53   :  { %v2455_v35 = vpop.xlane.xlu2 %2454 }
 0xc54   :  { %v2446_v13 = vadd.f32 %v2445_v34, %v2444_v49  ;;  %v2456_v36 = vrot.slane %v2455_v35, 4  ;;  %v2611_v49 = vld [vmem:[#allocation21 + $0xb0] sm:$0xff]  ;;  %v2612_v34 = vld [vmem:[#allocation21 + $0xb8] sm:$0xff] }
 0xc55   :  { %2717 = vmatpush.msrb.mxu2 %v2612_v34  ;;  %v2916_v34 = vld [vmem:[#allocation25 + $0x8] sm:$0xff] }
 0xc56   :  { %v2447_v28 = vrot.slane %v2446_v13, 2  ;;  %v2457_v38 = vadd.f32 %v2456_v36, %v2455_v35  ;;  %v2609_v35 = vld [vmem:[#allocation21 + $0xa0] sm:$0xff]  ;;  %v2607_v36 = vld [vmem:[#allocation21 + $0x90] sm:$0xff] }
 0xc58   :  { %v2458_v39 = vrot.slane %v2457_v38, 2  ;;  %v2448_v40 = vadd.f32 %v2447_v28, %v2446_v13  ;;  %v2610_v13 = vld [vmem:[#allocation21 + $0xa8] sm:$0xff]  ;;  %v2608_v28 = vld [vmem:[#allocation21 + $0x98] sm:$0xff] }
 0xc59   :  { %2718 = vmatpush.msrb.mxu2 %v2610_v13 }
 0xc5a   :  { %v2449_v41 = vrot.slane %v2448_v40, 1  ;;  %v2459_v43 = vadd.f32 %v2458_v39, %v2457_v38  ;;  %v2605_v38 = vld [vmem:[#allocation21 + $0x80] sm:$0xff]  ;;  %v2606_v39 = vld [vmem:[#allocation21 + $0x88] sm:$0xff] }
 0xc5b   :  { %2719 = vmatpush.msrb.mxu2 %v2608_v28  ;;  %v2978_v28 = vld [vmem:[#allocation25 + $0x1f8] sm:$0xff] }
 0xc5c   :  { %v2450_v44 = vadd.f32 %v2449_v41, %v2448_v40  ;;  %v2460_v32 = vrot.slane %v2459_v43, 1  ;;  %v2603_v40 = vld [vmem:[#allocation21 + $0x70] sm:$0xff]  ;;  %v2604_v41 = vld [vmem:[#allocation21 + $0x78] sm:$0xff] }
 0xc5d   :  { %2720 = vmatpush.msrb.mxu2 %v2606_v39  ;;  %v2974_v39 = vld [vmem:[#allocation25 + $0x1d8] sm:$0xff] }
 0xc5e   :  { %3554 = vpush %v2450_v44  ;;  %v2461_v45 = vadd.f32 %v2460_v32, %v2459_v43  ;;  %v2601_v43 = vld [vmem:[#allocation21 + $0x60] sm:$0xff]  ;;  %v2602_v44 = vld [vmem:[#allocation21 + $0x68] sm:$0xff]  ;;  %v2599_v32 = vld [vmem:[#allocation21 + $0x50] sm:$0xff] }
 0xc5f   :  { %2721 = vmatpush.msrb.mxu2 %v2604_v41  ;;  %v2970_v41 = vld [vmem:[#allocation25 + $0x1b8] sm:$0xff] }
 0xc60   :  { %3556 = vpush %v2461_v45  ;;  %v2600_v45 = vld [vmem:[#allocation21 + $0x58] sm:$0xff] }
 0xc61   :  { %2722 = vmatpush.msrb.mxu2 %v2602_v44  ;;  %v2966_v44 = vld [vmem:[#allocation25 + $0x198] sm:$0xff] }
 0xc63   :  { %2723 = vmatpush.msrb.mxu2 %v2600_v45  ;;  %v2962_v45 = vld [vmem:[#allocation25 + $0x178] sm:$0xff] }
 0xc65   :  { %2724 = vmatpush.msrb.mxu2 %v2598_v47  ;;  %v3022_v47 = vld [vmem:[#allocation25 + $0x358] sm:$0xff] }
 0xc67   :  { %2725 = vmatpush.msrb.mxu2 %v2596_v51  ;;  %v2950_v51 = vld [vmem:[#allocation25 + $0x118] sm:$0xff] }
 0xc8f   :  { %s3555_s26 = spop %3554 }
 0xc90   :  { %s2463_s28 = smul.f32 0.0078125, %s3555_s26 }
 0xc91   :  { %s3557_s8 = spop %3556 }
 0xc92   :  { %s2464_s19 = smul.f32 128.0, %s2463_s28 }
 0xc94   :  { %s2465_s29 = smul.f32 %s2464_s19, %s2463_s28 }
 0xc96   :  { %s2466_s27 = ssub.f32 %s3557_s8, %s2465_s29 }
 0xc98   :  { %s2467_s9 = smul.f32 0.007874016, %s2466_s27 }
 0xc9a   :  { %v2468_v53 = vstv %s2467_s9 }
 0xc9b   :  { %3661 = vrsqrt.f32 %v2468_v53  ;;  %vm2475_vm15 = vweird.f32 %v2468_v53 }
 0xca1   :  { %v3662_v54 = vpop.eup %3661 }
 0xca2   :  { %v2470_v55 = vmul.f32 %v3662_v54, %v2468_v53  ;;  %vm2476_vm13 = vweird.f32 %v3662_v54  ;;  %v2594_v53 = vld [vmem:[#allocation21 + $0x28] sm:$0xff] }
 0xca3   :  { %vm2477_vm1 = vmor %vm2475_vm15, %vm2476_vm13  ;;  %2726 = vmatpush.msrb.mxu2 %v2594_v53  ;;  %v2946_v53 = vld [vmem:[#allocation25 + $0xf8] sm:$0xff] }
 0xca4   :  { %v2471_v56 = vmul.f32 %v3662_v54, %v2470_v55  ;;  %v2592_v55 = vld [vmem:[#allocation21 + $0x18] sm:$0xff] }
 0xca5   :  { %2727 = vmatpush.msrb.mxu2 %v2592_v55  ;;  %v2942_v55 = vld [vmem:[#allocation25 + $0xd8] sm:$0xff] }
 0xca6   :  { %v2472_v57 = vmul.f32 0.5, %v2471_v56  ;;  %v2589_v56 = vld [vmem:[#allocation21] sm:$0xff] }
 0xca8   :  { %v2473_v58 = vsub.f32 1.5, %v2472_v57  ;;  %v2590_v57 = vld [vmem:[#allocation21 + $0x8] sm:$0xff] }
 0xca9   :  { %2728 = vmatpush.msrb.mxu2 %v2590_v57  ;;  %v2938_v57 = vld [vmem:[#allocation25 + $0xb8] sm:$0xff] }
 0xcaa   :  { %v2474_v61 = vmul.f32 %v3662_v54, %v2473_v58 }
 0xcac   :  { %v2478_v62 = vsel %vm2477_vm1, %v3662_v54, %v2474_v61  ;;  %v2591_v54 = vld [vmem:[#allocation21 + $0x10] sm:$0xff]  ;;  %v2976_v61 = vld [vmem:[#allocation25 + $0x1e8] sm:$0xff] }
 0xcad   :  { %3558 = vpush %v2478_v62  ;;  %v3040_v62 = vld [vmem:[#allocation25 + $0x3e8] sm:$0xff] }
 0xcde   :  { %s3559_s2 = spop %3558 }
 0xcdf   :  { %v2480_v63 = vstv %s3559_s2 }
 0xce0   :  { %v2481_v0 = vmul.f32 %v2480_v63, %v2441_v29  ;;  %v2615_v29 = vld [vmem:[#allocation21 + $0xd0] sm:$0xff]  ;;  %v3036_v63 = vld [vmem:[#allocation25 + $0x3c8] sm:$0xff] }
 0xce1   :  { %2695 = vmatpush.msrb.mxu0 %v2615_v29  ;;  %v2992_v29 = vld [vmem:[#allocation25 + $0x268] sm:$0xff] }
 0xce2   :  { %3505 = vmatmul.msk.f32.vlgmr.msra.gmra.mxu2 %vm2165_vm5, %v2481_v0 }
 0xce3   :  { %2696 = vmatpush.msrb.mxu0 %v2613_v26  ;;  %3103 = vmatpush.msra.mxu2 %v3040_v62  ;;  %v2988_v26 = vld [vmem:[#allocation25 + $0x248] sm:$0xff]  ;;  %v2998_v62 = vld [vmem:[#allocation25 + $0x298] sm:$0xff] }
 0xce5   :  { %2697 = vmatpush.msrb.mxu0 %v2611_v49  ;;  %3104 = vmatpush.msra.mxu2 %v3036_v63  ;;  %v2984_v49 = vld [vmem:[#allocation25 + $0x228] sm:$0xff]  ;;  %v2926_v63 = vld [vmem:[#allocation25 + $0x58] sm:$0xff] }
 0xce7   :  { %2698 = vmatpush.msrb.mxu0 %v2609_v35  ;;  %v2980_v35 = vld [vmem:[#allocation25 + $0x208] sm:$0xff] }
 0xce9   :  { %2699 = vmatpush.msrb.mxu0 %v2607_v36 }
 0xceb   :  { %2700 = vmatpush.msrb.mxu0 %v2605_v38  ;;  %v3042_v38 = vld [vmem:[#allocation25 + $0x3f8] sm:$0xff] }
 0xced   :  { %2701 = vmatpush.msrb.mxu0 %v2603_v40  ;;  %v3038_v40 = vld [vmem:[#allocation25 + $0x3d8] sm:$0xff] }
 0xcef   :  { %2702 = vmatpush.msrb.mxu0 %v2601_v43  ;;  %v3034_v43 = vld [vmem:[#allocation25 + $0x3b8] sm:$0xff] }
 0xcf1   :  { %2703 = vmatpush.msrb.mxu0 %v2599_v32  ;;  %v3030_v32 = vld [vmem:[#allocation25 + $0x398] sm:$0xff] }
 0xcf3   :  { %2704 = vmatpush.msrb.mxu0 %v2597_v46  ;;  %v3026_v46 = vld [vmem:[#allocation25 + $0x378] sm:$0xff] }
 0xcf5   :  { %2705 = vmatpush.msrb.mxu0 %v2595_v50  ;;  %v3018_v50 = vld [vmem:[#allocation25 + $0x338] sm:$0xff] }
 0xcf7   :  { %2706 = vmatpush.msrb.mxu0 %v2593_v52  ;;  %v3014_v52 = vld [vmem:[#allocation25 + $0x318] sm:$0xff] }
 0xcf9   :  { %2707 = vmatpush.msrb.mxu0 %v2591_v54  ;;  %v3010_v54 = vld [vmem:[#allocation25 + $0x2f8] sm:$0xff] }
 0xcfb   :  { %2708 = vmatpush.msrb.mxu0 %v2589_v56  ;;  %v3006_v56 = vld [vmem:[#allocation25 + $0x2d8] sm:$0xff] }
 0xcfd   :  { %3083 = vmatpush.msra.mxu0 %v2976_v61  ;;  %v2934_v61 = vld [vmem:[#allocation25 + $0x98] sm:$0xff] }
 0xcff   :  { %3084 = vmatpush.msra.mxu0 %v2972_v16  ;;  %v2994_v16 = vld [vmem:[#allocation25 + $0x278] sm:$0xff] }
 0xd65   :  { %v2541_v3 = vpop.f32.mrf.mxu2 }
 0xd66   :  { %v2542_v5 = vadd.f32 %v2541_v3, %v2518_v2  ;;  %v3032_v2 = vld [vmem:[#allocation25 + $0x3a8] sm:$0xff] }
 0xd67   :  { %3105 = vmatpush.msra.mxu2 %v3032_v2  ;;  %v2986_v2 = vld [vmem:[#allocation25 + $0x238] sm:$0xff] }
 0xd68   :  { %v4798_v6 = vadd.f32 %v3644_v1, %v2542_v5  ;;  %v2968_v1 = vld [vmem:[#allocation25 + $0x1a8] sm:$0xff] }
 0xd69   :  { %v2964_v5 = vld [vmem:[#allocation25 + $0x188] sm:$0xff]  ;;  %3085 = vmatpush.msra.mxu0 %v2968_v1  ;;  %v2922_v1 = vld [vmem:[#allocation25 + $0x38] sm:$0xff] }
 0xd6a   :  { %v2549_v8 = vsel %vm850_vm0, %v4798_v6, 0.0  ;;  %v2559_v9 = vmul.f32 %v4798_v6, %v4798_v6 }
 0xd6b   :  { %2550 = vadd.xlane.f32.xlu0 %v2549_v8  ;;  %v3028_v8 = vld [vmem:[#allocation25 + $0x388] sm:$0xff]  ;;  %3086 = vmatpush.msra.mxu0 %v2964_v5  ;;  %v2982_v5 = vld [vmem:[#allocation25 + $0x218] sm:$0xff] }
 0xd6c   :  { %v2560_v10 = vsel %vm850_vm0, %v2559_v9, 0.0  ;;  %3106 = vmatpush.msra.mxu2 %v3028_v8  ;;  %v2733_v8 = vld [vmem:[%s4905_s12] sm:$0x3] }
 0xd6d   :  { %2561 = vadd.xlane.f32.xlu1 %v2560_v10  ;;  %v2960_v10 = vld [vmem:[#allocation25 + $0x168] sm:$0xff] }
 0xd6e   :  { %3087 = vmatpush.msra.mxu0 %v2960_v10 }
 0xdde   :  { %v2551_v11 = vpop.xlane.xlu0 %2550 }
 0xddf   :  { %v2552_v7 = vrot.slane %v2551_v11, 4 }
 0xde0   :  { %v2562_v12 = vpop.xlane.xlu1 %2561 }
 0xde1   :  { %v2553_v59 = vadd.f32 %v2552_v7, %v2551_v11  ;;  %v2563_v15 = vrot.slane %v2562_v12, 4  ;;  %v3024_v11 = vld [vmem:[#allocation25 + $0x368] sm:$0xff] }
 0xde2   :  { %3107 = vmatpush.msra.mxu2 %v3024_v11 }
 0xde3   :  { %v2554_v17 = vrot.slane %v2553_v59, 2  ;;  %v2564_v60 = vadd.f32 %v2563_v15, %v2562_v12  ;;  %v2956_v12 = vld [vmem:[#allocation25 + $0x148] sm:$0xff] }
 0xde4   :  { %3088 = vmatpush.msra.mxu0 %v2956_v12 }
 0xde5   :  { %v2565_v18 = vrot.slane %v2564_v60, 2  ;;  %v2555_v19 = vadd.f32 %v2554_v17, %v2553_v59  ;;  %v3020_v59 = vld [vmem:[#allocation25 + $0x348] sm:$0xff] }
 0xde6   :  { %v2952_v17 = vld [vmem:[#allocation25 + $0x128] sm:$0xff]  ;;  %3108 = vmatpush.msra.mxu2 %v3020_v59  ;;  %v2736_v59 = vperm.slane %v2733_v8, 1 }
 0xde7   :  { %v2556_v4 = vrot.slane %v2555_v19, 1  ;;  %v2566_v20 = vadd.f32 %v2565_v18, %v2564_v60  ;;  %v3016_v60 = vld [vmem:[#allocation25 + $0x328] sm:$0xff]  ;;  %3089 = vmatpush.msra.mxu0 %v2952_v17 }
 0xde8   :  { %v2948_v18 = vld [vmem:[#allocation25 + $0x108] sm:$0xff]  ;;  %3109 = vmatpush.msra.mxu2 %v3016_v60 }
 0xde9   :  { %v2557_v31 = vadd.f32 %v2556_v4, %v2555_v19  ;;  %v2567_v21 = vrot.slane %v2566_v20, 1  ;;  %v3012_v19 = vld [vmem:[#allocation25 + $0x308] sm:$0xff]  ;;  %3090 = vmatpush.msra.mxu0 %v2948_v18 }
 0xdea   :  { %v2944_v4 = vld [vmem:[#allocation25 + $0xe8] sm:$0xff]  ;;  %3110 = vmatpush.msra.mxu2 %v3012_v19 }
 0xdeb   :  { %3560 = vpush %v2557_v31  ;;  %v2568_v22 = vadd.f32 %v2567_v21, %v2566_v20  ;;  %v3008_v20 = vld [vmem:[#allocation25 + $0x2e8] sm:$0xff]  ;;  %3091 = vmatpush.msra.mxu0 %v2944_v4 }
 0xdec   :  { %v2940_v31 = vld [vmem:[#allocation25 + $0xc8] sm:$0xff]  ;;  %3111 = vmatpush.msra.mxu2 %v3008_v20 }
 0xded   :  { %3562 = vpush %v2568_v22  ;;  %v3004_v21 = vld [vmem:[#allocation25 + $0x2c8] sm:$0xff]  ;;  %3092 = vmatpush.msra.mxu0 %v2940_v31 }
 0xdee   :  { %v2936_v22 = vld [vmem:[#allocation25 + $0xa8] sm:$0xff]  ;;  %3112 = vmatpush.msra.mxu2 %v3004_v21 }
 0xdef   :  { %3093 = vmatpush.msra.mxu0 %v2936_v22 }
 0xdf0   :  { %3113 = vmatpush.msra.mxu2 %v3000_v23 }
 0xdf1   :  { %3094 = vmatpush.msra.mxu0 %v2932_v24 }
 0xdf2   :  { %3114 = vmatpush.msra.mxu2 %v2996_v27 }
 0xdf3   :  { %3095 = vmatpush.msra.mxu0 %v2928_v25 }
 0xdf4   :  { %3115 = vmatpush.msra.mxu2 %v2992_v29 }
 0xdf5   :  { %3096 = vmatpush.msra.mxu0 %v2924_v42 }
 0xdf6   :  { %3116 = vmatpush.msra.mxu2 %v2988_v26 }
 0xdf7   :  { %3097 = vmatpush.msra.mxu0 %v2920_v33 }
 0xdf8   :  { %3117 = vmatpush.msra.mxu2 %v2984_v49 }
 0xdf9   :  { %3098 = vmatpush.msra.mxu0 %v2916_v34 }
 0xdfa   :  { %3118 = vmatpush.msra.mxu2 %v2980_v35 }
 0xe1c   :  { %s3561_s4 = spop %3560 }
 0xe1d   :  { %s2570_s13 = smul.f32 0.00390625, %s3561_s4 }
 0xe1e   :  { %s3563_s15 = spop %3562 }
 0xe1f   :  { %s2571_s21 = smul.f32 256.0, %s2570_s13 }
 0xe21   :  { %s2572_s11 = smul.f32 %s2571_s21, %s2570_s13 }
 0xe23   :  { %s2573_s30 = ssub.f32 %s3563_s15, %s2572_s11 }
 0xe25   :  { %s2574_s16 = smul.f32 0.003921569, %s2573_s30 }
 0xe27   :  { %v2575_v48 = vstv %s2574_s16 }
 0xe28   :  { %3663 = vrsqrt.f32 %v2575_v48  ;;  %vm2582_vm3 = vweird.f32 %v2575_v48 }
 0xe2e   :  { %v3664_v58 = vpop.eup %3663 }
 0xe2f   :  { %v2577_v14 = vmul.f32 %v3664_v58, %v2575_v48  ;;  %vm2583_vm2 = vweird.f32 %v3664_v58  ;;  %v2954_v48 = vld [vmem:[#allocation25 + $0x138] sm:$0xff] }
 0xe30   :  { %vm2584_vm4 = vmor %vm2582_vm3, %vm2583_vm2 }
 0xe31   :  { %v2578_v0 = vmul.f32 %v3664_v58, %v2577_v14  ;;  %v2930_v14 = vld [vmem:[#allocation25 + $0x78] sm:$0xff] }
 0xe33   :  { %v2579_v3 = vmul.f32 0.5, %v2578_v0  ;;  %v2990_v0 = vld [vmem:[#allocation25 + $0x258] sm:$0xff] }
 0xe35   :  { %v2580_v9 = vsub.f32 1.5, %v2579_v3  ;;  %v2918_v3 = vld [vmem:[#allocation25 + $0x18] sm:$0xff] }
 0xe37   :  { %v2581_v7 = vmul.f32 %v3664_v58, %v2580_v9  ;;  %v2670_v9 = vpop.f32.mrf.mxu1 }
 0xe39   :  { %v2585_v15 = vsel %vm2584_vm4, %v3664_v58, %v2581_v7  ;;  %v3002_v58 = vld [vmem:[#allocation25 + $0x2b8] sm:$0xff]  ;;  %v2735_v7 = vperm.slane %v2733_v8, 0  ;;  %v2884_v8 = vld [vmem:[#allocation24 + $0x308] sm:$0xff] }
 0xe3a   :  { %3564 = vpush %v2585_v15  ;;  %v2690_v15 = vpop.f32.mrf.mxu3 }
 0xe6b   :  { %s3565_s6 = spop %3564 }
 0xe6c   :  { %v2587_v13 = vstv %s3565_s6 }
 0xe6d   :  { %v2588_v36 = vmul.f32 %v2587_v13, %v4798_v6  ;;  %v2958_v6 = vld [vmem:[#allocation25 + $0x158] sm:$0xff] }
 0xe6f   :  { %2709 = vmatmul.f32.vlgmr.msrb.gmra.mxu0 %v2588_v36  ;;  %2729 = vmatmul.f32.vlgmr.msrb.gmra.mxu2 %v2588_v36 }
 0xe70   :  { %3163 = vmatpush.msrb.mxu0 %v2978_v28  ;;  %3183 = vmatpush.msrb.mxu2 %v3042_v38  ;;  %v2847_v38 = vld [vmem:[#allocation24 + $0x1e0] sm:$0xff] }
 0xe71   :  { %3203 = vmatpush.msra.mxu1 %v2847_v38 }
 0xe72   :  { %3164 = vmatpush.msrb.mxu0 %v2974_v39  ;;  %3184 = vmatpush.msrb.mxu2 %v3038_v40  ;;  %v2911_v39 = vld [vmem:[#allocation24 + $0x3e0] sm:$0xff]  ;;  %v2848_v40 = vld [vmem:[#allocation24 + $0x1e8] sm:$0xff] }
 0xe73   :  { %3223 = vmatpush.msra.mxu3 %v2911_v39  ;;  %v2792_v39 = vld [vmem:[#allocation24 + $0x28] sm:$0xff] }
 0xe74   :  { %3165 = vmatpush.msrb.mxu0 %v2970_v41  ;;  %3185 = vmatpush.msrb.mxu2 %v3034_v43  ;;  %v2912_v41 = vld [vmem:[#allocation24 + $0x3e8] sm:$0xff]  ;;  %v2843_v43 = vld [vmem:[#allocation24 + $0x1c0] sm:$0xff] }
 0xe75   :  { %3204 = vmatpush.msra.mxu1 %v2843_v43  ;;  %v2851_v43 = vld [vmem:[#allocation24 + $0x200] sm:$0xff] }
 0xe76   :  { %3166 = vmatpush.msrb.mxu0 %v2966_v44  ;;  %3186 = vmatpush.msrb.mxu2 %v3030_v32  ;;  %v2907_v44 = vld [vmem:[#allocation24 + $0x3c0] sm:$0xff]  ;;  %v2844_v32 = vld [vmem:[#allocation24 + $0x1c8] sm:$0xff] }
 0xe77   :  { %3099 = vmatmul.f32.vlgmr.msra.gmra.mxu0 %v4761_v30  ;;  %3119 = vmatmul.f32.vlgmr.msra.gmra.mxu2 %v4765_v37 }
 0xe78   :  { %3167 = vmatpush.msrb.mxu0 %v2962_v45  ;;  %3187 = vmatpush.msrb.mxu2 %v3026_v46  ;;  %v2908_v45 = vld [vmem:[#allocation24 + $0x3c8] sm:$0xff]  ;;  %v2839_v46 = vld [vmem:[#allocation24 + $0x1a0] sm:$0xff] }
 0xe79   :  { %3224 = vmatpush.msra.mxu3 %v2907_v44  ;;  %3205 = vmatpush.msra.mxu1 %v2839_v46  ;;  %v2849_v46 = vld [vmem:[#allocation24 + $0x1f0] sm:$0xff] }
 0xe7a   :  { %3168 = vmatpush.msrb.mxu0 %v2958_v6  ;;  %3188 = vmatpush.msrb.mxu2 %v3022_v47  ;;  %v2903_v6 = vld [vmem:[#allocation24 + $0x3a0] sm:$0xff]  ;;  %v2840_v47 = vld [vmem:[#allocation24 + $0x1a8] sm:$0xff] }
 0xe7b   :  { %3225 = vmatpush.msra.mxu3 %v2903_v6  ;;  %v2913_v6 = vld [vmem:[#allocation24 + $0x3f0] sm:$0xff] }
 0xe7c   :  { %3169 = vmatpush.msrb.mxu0 %v2954_v48  ;;  %3189 = vmatpush.msrb.mxu2 %v3018_v50  ;;  %v2904_v48 = vld [vmem:[#allocation24 + $0x3a8] sm:$0xff]  ;;  %v2835_v50 = vld [vmem:[#allocation24 + $0x180] sm:$0xff] }
 0xe7d   :  { %3206 = vmatpush.msra.mxu1 %v2835_v50  ;;  %v2914_v50 = vld [vmem:[#allocation24 + $0x3f8] sm:$0xff] }
 0xe7e   :  { %3170 = vmatpush.msrb.mxu0 %v2950_v51  ;;  %3190 = vmatpush.msrb.mxu2 %v3014_v52  ;;  %v2899_v51 = vld [vmem:[#allocation24 + $0x380] sm:$0xff]  ;;  %v2836_v52 = vld [vmem:[#allocation24 + $0x188] sm:$0xff] }
 0xe7f   :  { %3226 = vmatpush.msra.mxu3 %v2899_v51  ;;  %v2845_v51 = vld [vmem:[#allocation24 + $0x1d0] sm:$0xff] }
 0xe80   :  { %3171 = vmatpush.msrb.mxu0 %v2946_v53  ;;  %3191 = vmatpush.msrb.mxu2 %v3010_v54  ;;  %v2900_v53 = vld [vmem:[#allocation24 + $0x388] sm:$0xff]  ;;  %v2831_v54 = vld [vmem:[#allocation24 + $0x160] sm:$0xff] }
 0xe81   :  { %3207 = vmatpush.msra.mxu1 %v2831_v54  ;;  %v2846_v54 = vld [vmem:[#allocation24 + $0x1d8] sm:$0xff] }
 0xe82   :  { %3172 = vmatpush.msrb.mxu0 %v2942_v55  ;;  %3192 = vmatpush.msrb.mxu2 %v3006_v56  ;;  %v2895_v55 = vld [vmem:[#allocation24 + $0x360] sm:$0xff]  ;;  %v2832_v56 = vld [vmem:[#allocation24 + $0x168] sm:$0xff] }
 0xe83   :  { %3227 = vmatpush.msra.mxu3 %v2895_v55  ;;  %v2910_v55 = vld [vmem:[#allocation24 + $0x3d8] sm:$0xff] }
 0xe84   :  { %3173 = vmatpush.msrb.mxu0 %v2938_v57  ;;  %3193 = vmatpush.msrb.mxu2 %v3002_v58  ;;  %v2896_v57 = vld [vmem:[#allocation24 + $0x368] sm:$0xff]  ;;  %v2827_v58 = vld [vmem:[#allocation24 + $0x140] sm:$0xff] }
 0xe85   :  { %3208 = vmatpush.msra.mxu1 %v2827_v58  ;;  %v2842_v58 = vld [vmem:[#allocation24 + $0x1b8] sm:$0xff] }
 0xe86   :  { %3174 = vmatpush.msrb.mxu0 %v2934_v61  ;;  %3194 = vmatpush.msrb.mxu2 %v2998_v62  ;;  %v2891_v61 = vld [vmem:[#allocation24 + $0x340] sm:$0xff]  ;;  %v2828_v62 = vld [vmem:[#allocation24 + $0x148] sm:$0xff] }
 0xe87   :  { %3228 = vmatpush.msra.mxu3 %v2891_v61  ;;  %v2906_v61 = vld [vmem:[#allocation24 + $0x3b8] sm:$0xff] }
 0xe88   :  { %3175 = vmatpush.msrb.mxu0 %v2930_v14  ;;  %3195 = vmatpush.msrb.mxu2 %v2994_v16  ;;  %v2892_v14 = vld [vmem:[#allocation24 + $0x348] sm:$0xff]  ;;  %v2823_v16 = vld [vmem:[#allocation24 + $0x120] sm:$0xff] }
 0xe89   :  { %3209 = vmatpush.msra.mxu1 %v2823_v16  ;;  %v2838_v16 = vld [vmem:[#allocation24 + $0x198] sm:$0xff] }
 0xe8a   :  { %3176 = vmatpush.msrb.mxu0 %v2926_v63  ;;  %3196 = vmatpush.msrb.mxu2 %v2990_v0  ;;  %v2887_v63 = vld [vmem:[#allocation24 + $0x320] sm:$0xff]  ;;  %v2824_v0 = vld [vmem:[#allocation24 + $0x128] sm:$0xff] }
 0xe8b   :  { %3229 = vmatpush.msra.mxu3 %v2887_v63  ;;  %v2902_v63 = vld [vmem:[#allocation24 + $0x398] sm:$0xff] }
 0xe8c   :  { %3177 = vmatpush.msrb.mxu0 %v2922_v1  ;;  %3197 = vmatpush.msrb.mxu2 %v2986_v2  ;;  %v2888_v1 = vld [vmem:[#allocation24 + $0x328] sm:$0xff]  ;;  %v2819_v2 = vld [vmem:[#allocation24 + $0x100] sm:$0xff] }
 0xe8d   :  { %3210 = vmatpush.msra.mxu1 %v2819_v2  ;;  %v2834_v2 = vld [vmem:[#allocation24 + $0x178] sm:$0xff] }
 0xe8e   :  { %3178 = vmatpush.msrb.mxu0 %v2918_v3  ;;  %3198 = vmatpush.msrb.mxu2 %v2982_v5  ;;  %v2883_v3 = vld [vmem:[#allocation24 + $0x300] sm:$0xff]  ;;  %v2820_v5 = vld [vmem:[#allocation24 + $0x108] sm:$0xff] }
 0xe8f   :  { %3179 = vmatmul.f32.vlgmr.msrb.gmra.mxu0 %v4761_v30  ;;  %3199 = vmatmul.f32.vlgmr.msrb.gmra.mxu2 %v4765_v37 }
 0xe90   :  { %3243 = vmatpush.msra.mxu0 %v2848_v40  ;;  %3263 = vmatpush.msra.mxu2 %v2912_v41  ;;  %v2856_v40 = vld [vmem:[#allocation24 + $0x228] sm:$0xff]  ;;  %v2787_v41 = vld [vmem:[#allocation24] sm:$0xff] }
 0xe91   :  { %3230 = vmatpush.msra.mxu3 %v2883_v3  ;;  %v2898_v3 = vld [vmem:[#allocation24 + $0x378] sm:$0xff] }
 0xe92   :  { %3244 = vmatpush.msra.mxu0 %v2844_v32  ;;  %3264 = vmatpush.msra.mxu2 %v2908_v45  ;;  %v2788_v32 = vld [vmem:[#allocation24 + $0x8] sm:$0xff] }
 0xe93   :  { %v2852_v45 = vld [vmem:[#allocation24 + $0x208] sm:$0xff] }
 0xe94   :  { %3245 = vmatpush.msra.mxu0 %v2840_v47  ;;  %3265 = vmatpush.msra.mxu2 %v2904_v48  ;;  %v2850_v48 = vld [vmem:[#allocation24 + $0x1f8] sm:$0xff] }
 0xe96   :  { %3246 = vmatpush.msra.mxu0 %v2836_v52  ;;  %3266 = vmatpush.msra.mxu2 %v2900_v53  ;;  %v2909_v52 = vld [vmem:[#allocation24 + $0x3d0] sm:$0xff] }
 0xe98   :  { %3247 = vmatpush.msra.mxu0 %v2832_v56  ;;  %3267 = vmatpush.msra.mxu2 %v2896_v57  ;;  %v2841_v56 = vld [vmem:[#allocation24 + $0x1b0] sm:$0xff] }
 0xe99   :  { %v2905_v57 = vld [vmem:[#allocation24 + $0x3b0] sm:$0xff] }
 0xe9a   :  { %3248 = vmatpush.msra.mxu0 %v2828_v62  ;;  %3268 = vmatpush.msra.mxu2 %v2892_v14  ;;  %v2837_v62 = vld [vmem:[#allocation24 + $0x190] sm:$0xff] }
 0xe9b   :  { %v2901_v14 = vld [vmem:[#allocation24 + $0x390] sm:$0xff] }
 0xe9c   :  { %3249 = vmatpush.msra.mxu0 %v2824_v0  ;;  %3269 = vmatpush.msra.mxu2 %v2888_v1  ;;  %v2833_v0 = vld [vmem:[#allocation24 + $0x170] sm:$0xff] }
 0xe9d   :  { %v2897_v1 = vld [vmem:[#allocation24 + $0x370] sm:$0xff] }
 0xe9e   :  { %3250 = vmatpush.msra.mxu0 %v2820_v5  ;;  %3270 = vmatpush.msra.mxu2 %v2884_v8  ;;  %v2829_v5 = vld [vmem:[#allocation24 + $0x150] sm:$0xff] }
 0xe9f   :  { %v2893_v8 = vld [vmem:[#allocation24 + $0x350] sm:$0xff] }
 0xeec   :  { %v2710_v10 = vpop.f32.mrf.mxu0 }
 0xeed   :  { %v2711_v11 = vadd.f32 %v2710_v10, %v2670_v9  ;;  %v2815_v9 = vld [vmem:[#allocation24 + $0xe0] sm:$0xff] }
 0xeee   :  { %v2879_v10 = vld [vmem:[#allocation24 + $0x2e0] sm:$0xff]  ;;  %3211 = vmatpush.msra.mxu1 %v2815_v9  ;;  %v2830_v9 = vld [vmem:[#allocation24 + $0x158] sm:$0xff] }
 0xeef   :  { %v4811_v12 = vadd.f32 %v2735_v7, %v2711_v11  ;;  %v2816_v7 = vld [vmem:[#allocation24 + $0xe8] sm:$0xff]  ;;  %3231 = vmatpush.msra.mxu3 %v2879_v10  ;;  %v2894_v10 = vld [vmem:[#allocation24 + $0x358] sm:$0xff] }
 0xef0   :  { %3251 = vmatpush.msra.mxu0 %v2816_v7  ;;  %v2889_v7 = vld [vmem:[#allocation24 + $0x330] sm:$0xff] }
 0xef1   :  { %v2753_v19 = vmul.f32 %v4811_v12, %v4811_v12  ;;  %v2741_v30 = vsel %vm850_vm0, %v4811_v12, 0.0 }
 0xef2   :  { %v2730_v17 = vpop.f32.mrf.mxu2 }
 0xef3   :  { %v2731_v60 = vadd.f32 %v2730_v17, %v2690_v15  ;;  %v2755_v31 = vsel %vm850_vm0, %v2753_v19, 0.0  ;;  %v2811_v15 = vld [vmem:[#allocation24 + $0xc0] sm:$0xff]  ;;  %v2876_v19 = vld [vmem:[#allocation24 + $0x2c8] sm:$0xff] }
 0xef4   :  { %v2875_v17 = vld [vmem:[#allocation24 + $0x2c0] sm:$0xff]  ;;  %3212 = vmatpush.msra.mxu1 %v2811_v15  ;;  %v2890_v15 = vld [vmem:[#allocation24 + $0x338] sm:$0xff] }
 0xef5   :  { %v4813_v18 = vadd.f32 %v2736_v59, %v2731_v60  ;;  %v2880_v59 = vld [vmem:[#allocation24 + $0x2e8] sm:$0xff]  ;;  %3232 = vmatpush.msra.mxu3 %v2875_v17  ;;  %v2821_v17 = vld [vmem:[#allocation24 + $0x110] sm:$0xff] }
 0xef6   :  { %v2812_v60 = vld [vmem:[#allocation24 + $0xc8] sm:$0xff]  ;;  %3271 = vmatpush.msra.mxu2 %v2880_v59  ;;  %v2826_v59 = vld [vmem:[#allocation24 + $0x138] sm:$0xff] }
 0xef7   :  { %v2742_v37 = vsel %vm850_vm0, %v4813_v18, 0.0  ;;  %v2754_v4 = vmul.f32 %v4813_v18, %v4813_v18  ;;  %3252 = vmatpush.msra.mxu0 %v2812_v60  ;;  %v2885_v60 = vld [vmem:[#allocation24 + $0x310] sm:$0xff] }
 0xef8   :  { %v2743_v20 = vadd.f32 %v2742_v37, %v2741_v30  ;;  %v2807_v30 = vld [vmem:[#allocation24 + $0xa0] sm:$0xff]  ;;  %3272 = vmatpush.msra.mxu2 %v2876_v19  ;;  %v2822_v19 = vld [vmem:[#allocation24 + $0x118] sm:$0xff] }
 0xef9   :  { %v2756_v21 = vsel %vm850_vm0, %v2754_v4, 0.0  ;;  %v2871_v37 = vld [vmem:[#allocation24 + $0x2a0] sm:$0xff]  ;;  %v2808_v4 = vld [vmem:[#allocation24 + $0xa8] sm:$0xff]  ;;  %3213 = vmatpush.msra.mxu1 %v2807_v30  ;;  %v2886_v30 = vld [vmem:[#allocation24 + $0x318] sm:$0xff] }
 0xefa   :  { %2744 = vadd.xlane.f32.xlu2 %v2743_v20  ;;  %v2757_v22 = vadd.f32 %v2756_v21, %v2755_v31  ;;  %v2872_v20 = vld [vmem:[#allocation24 + $0x2a8] sm:$0xff]  ;;  %v2803_v31 = vld [vmem:[#allocation24 + $0x80] sm:$0xff]  ;;  %3233 = vmatpush.msra.mxu3 %v2871_v37  ;;  %v2817_v37 = vld [vmem:[#allocation24 + $0xf0] sm:$0xff] }
 0xefb   :  { %v2867_v21 = vld [vmem:[#allocation24 + $0x280] sm:$0xff]  ;;  %3253 = vmatpush.msra.mxu0 %v2808_v4  ;;  %3273 = vmatpush.msra.mxu2 %v2872_v20  ;;  %v2881_v4 = vld [vmem:[#allocation24 + $0x2f0] sm:$0xff]  ;;  %v2818_v20 = vld [vmem:[#allocation24 + $0xf8] sm:$0xff] }
 0xefc   :  { %2758 = vadd.xlane.f32.xlu0 %v2757_v22  ;;  %v2804_v22 = vld [vmem:[#allocation24 + $0x88] sm:$0xff]  ;;  %3214 = vmatpush.msra.mxu1 %v2803_v31  ;;  %v2882_v31 = vld [vmem:[#allocation24 + $0x2f8] sm:$0xff] }
 0xefd   :  { %3234 = vmatpush.msra.mxu3 %v2867_v21  ;;  %3254 = vmatpush.msra.mxu0 %v2804_v22  ;;  %v2813_v21 = vld [vmem:[#allocation24 + $0xd0] sm:$0xff] }
 0xefe   :  { %v2877_v22 = vld [vmem:[#allocation24 + $0x2d0] sm:$0xff] }
 0xf6d   :  { %v2745_v23 = vpop.xlane.xlu2 %2744 }
 0xf6e   :  { %v2746_v24 = vrot.slane %v2745_v23, 4 }
 0xf6f   :  { %v2759_v27 = vpop.xlane.xlu0 %2758 }
 0xf70   :  { %v2747_v25 = vadd.f32 %v2746_v24, %v2745_v23  ;;  %v2760_v29 = vrot.slane %v2759_v27, 4  ;;  %v2868_v23 = vld [vmem:[#allocation24 + $0x288] sm:$0xff] }
 0xf71   :  { %3274 = vmatpush.msra.mxu2 %v2868_v23  ;;  %v2814_v23 = vld [vmem:[#allocation24 + $0xd8] sm:$0xff] }
 0xf72   :  { %v2748_v42 = vrot.slane %v2747_v25, 2  ;;  %v2761_v26 = vadd.f32 %v2760_v29, %v2759_v27  ;;  %v2799_v27 = vld [vmem:[#allocation24 + $0x60] sm:$0xff] }
 0xf73   :  { %3215 = vmatpush.msra.mxu1 %v2799_v27  ;;  %v2809_v27 = vld [vmem:[#allocation24 + $0xb0] sm:$0xff] }
 0xf74   :  { %v2762_v33 = vrot.slane %v2761_v26, 2  ;;  %v2749_v49 = vadd.f32 %v2748_v42, %v2747_v25  ;;  %v2863_v25 = vld [vmem:[#allocation24 + $0x260] sm:$0xff]  ;;  %v2800_v42 = vld [vmem:[#allocation24 + $0x68] sm:$0xff] }
 0xf75   :  { %3235 = vmatpush.msra.mxu3 %v2863_v25  ;;  %3255 = vmatpush.msra.mxu0 %v2800_v42  ;;  %v2873_v25 = vld [vmem:[#allocation24 + $0x2b0] sm:$0xff]  ;;  %v2874_v42 = vld [vmem:[#allocation24 + $0x2b8] sm:$0xff] }
 0xf76   :  { %v2763_v34 = vadd.f32 %v2762_v33, %v2761_v26  ;;  %v2750_v35 = vrot.slane %v2749_v49, 1  ;;  %v2864_v26 = vld [vmem:[#allocation24 + $0x268] sm:$0xff]  ;;  %v2795_v33 = vld [vmem:[#allocation24 + $0x40] sm:$0xff] }
 0xf77   :  { %3275 = vmatpush.msra.mxu2 %v2864_v26  ;;  %3216 = vmatpush.msra.mxu1 %v2795_v33  ;;  %v2805_v26 = vld [vmem:[#allocation24 + $0x90] sm:$0xff] }
 0xf78   :  { %v2751_v13 = vadd.f32 %v2750_v35, %v2749_v49  ;;  %v2764_v36 = vrot.slane %v2763_v34, 1  ;;  %v2859_v49 = vld [vmem:[#allocation24 + $0x240] sm:$0xff]  ;;  %v2796_v35 = vld [vmem:[#allocation24 + $0x48] sm:$0xff]  ;;  %v2869_v33 = vld [vmem:[#allocation24 + $0x290] sm:$0xff] }
 0xf79   :  { %3236 = vmatpush.msra.mxu3 %v2859_v49  ;;  %3256 = vmatpush.msra.mxu0 %v2796_v35  ;;  %v2806_v49 = vld [vmem:[#allocation24 + $0x98] sm:$0xff]  ;;  %v2801_v35 = vld [vmem:[#allocation24 + $0x70] sm:$0xff] }
 0xf7a   :  { %3566 = vpush %v2751_v13  ;;  %v2765_v28 = vadd.f32 %v2764_v36, %v2763_v34  ;;  %v2860_v13 = vld [vmem:[#allocation24 + $0x248] sm:$0xff]  ;;  %v2791_v36 = vld [vmem:[#allocation24 + $0x20] sm:$0xff] }
 0xf7b   :  { %3276 = vmatpush.msra.mxu2 %v2860_v13  ;;  %3217 = vmatpush.msra.mxu1 %v2791_v36  ;;  %v2865_v13 = vld [vmem:[#allocation24 + $0x270] sm:$0xff]  ;;  %v2802_v36 = vld [vmem:[#allocation24 + $0x78] sm:$0xff] }
 0xf7c   :  { %3568 = vpush %v2765_v28  ;;  %v2855_v28 = vld [vmem:[#allocation24 + $0x220] sm:$0xff]  ;;  %3257 = vmatpush.msra.mxu0 %v2792_v39  ;;  %v2861_v39 = vld [vmem:[#allocation24 + $0x250] sm:$0xff] }
 0xf7d   :  { %3237 = vmatpush.msra.mxu3 %v2855_v28  ;;  %3277 = vmatpush.msra.mxu2 %v2856_v40  ;;  %v2866_v28 = vld [vmem:[#allocation24 + $0x278] sm:$0xff] }
 0xf7e   :  { %3218 = vmatpush.msra.mxu1 %v2787_v41  ;;  %3258 = vmatpush.msra.mxu0 %v2788_v32  ;;  %v2798_v40 = vld [vmem:[#allocation24 + $0x58] sm:$0xff] }
 0xf7f   :  { %3238 = vmatpush.msra.mxu3 %v2851_v43  ;;  %3278 = vmatpush.msra.mxu2 %v2852_v45  ;;  %v2862_v41 = vld [vmem:[#allocation24 + $0x258] sm:$0xff]  ;;  %v2793_v43 = vld [vmem:[#allocation24 + $0x30] sm:$0xff] }
 0xf80   :  { %3283 = vmatpush.msrb.mxu1 %v2849_v46  ;;  %3323 = vmatpush.msrb.mxu0 %v2850_v48  ;;  %v2794_v32 = vld [vmem:[#allocation24 + $0x38] sm:$0xff]  ;;  %v2789_v46 = vld [vmem:[#allocation24 + $0x10] sm:$0xff] }
 0xf81   :  { %3303 = vmatpush.msrb.mxu3 %v2913_v6  ;;  %3343 = vmatpush.msrb.mxu2 %v2914_v50  ;;  %v2858_v45 = vld [vmem:[#allocation24 + $0x238] sm:$0xff]  ;;  %v2853_v6 = vld [vmem:[#allocation24 + $0x210] sm:$0xff] }
 0xf82   :  { %3284 = vmatpush.msrb.mxu1 %v2845_v51  ;;  %3324 = vmatpush.msrb.mxu0 %v2846_v54  ;;  %v2854_v48 = vld [vmem:[#allocation24 + $0x218] sm:$0xff]  ;;  %v3100_v54 = vpop.f32.mrf.mxu0 }
 0xf83   :  { %3304 = vmatpush.msrb.mxu3 %v2909_v52  ;;  %3344 = vmatpush.msrb.mxu2 %v2910_v55  ;;  %v3080_v55 = vpop.f32.mrf.mxu3 }
 0xf84   :  { %3285 = vmatpush.msrb.mxu1 %v2841_v56  ;;  %3325 = vmatpush.msrb.mxu0 %v2842_v58  ;;  %v3120_v56 = vpop.f32.mrf.mxu2 }
 0xf85   :  { %3305 = vmatpush.msrb.mxu3 %v2905_v57  ;;  %3345 = vmatpush.msrb.mxu2 %v2906_v61 }
 0xf86   :  { %3286 = vmatpush.msrb.mxu1 %v2837_v62  ;;  %3326 = vmatpush.msrb.mxu0 %v2838_v16 }
 0xf87   :  { %3306 = vmatpush.msrb.mxu3 %v2901_v14  ;;  %3346 = vmatpush.msrb.mxu2 %v2902_v63  ;;  %v3121_v63 = vadd.f32 %v3120_v56, %v3100_v54 }
 0xf88   :  { %3287 = vmatpush.msrb.mxu1 %v2833_v0  ;;  %3327 = vmatpush.msrb.mxu0 %v2834_v2 }
 0xf89   :  { %3307 = vmatpush.msrb.mxu3 %v2897_v1  ;;  %3347 = vmatpush.msrb.mxu2 %v2898_v3 }
 0xf8a   :  { %3288 = vmatpush.msrb.mxu1 %v2829_v5  ;;  %3328 = vmatpush.msrb.mxu0 %v2830_v9  ;;  %v3180_v58 = vpop.f32.mrf.mxu0 }
 0xf8b   :  { %3308 = vmatpush.msrb.mxu3 %v2893_v8  ;;  %3348 = vmatpush.msrb.mxu2 %v2894_v10  ;;  %v3160_v61 = vpop.f32.mrf.mxu3 }
 0xf8c   :  { %3329 = vmatpush.msrb.mxu0 %v2826_v59  ;;  %v3200_v62 = vpop.f32.mrf.mxu2 }
 0xf8d   :  { %3309 = vmatpush.msrb.mxu3 %v2889_v7  ;;  %3349 = vmatpush.msrb.mxu2 %v2890_v15 }
 0xf8e   :  { %3330 = vmatpush.msrb.mxu0 %v2822_v19 }
 0xf8f   :  { %3310 = vmatpush.msrb.mxu3 %v2885_v60  ;;  %3350 = vmatpush.msrb.mxu2 %v2886_v30  ;;  %v3201_v60 = vadd.f32 %v3200_v62, %v3180_v58 }
 0xf90   :  { %3331 = vmatpush.msrb.mxu0 %v2818_v20 }
 0xf91   :  { %3311 = vmatpush.msrb.mxu3 %v2881_v4  ;;  %3351 = vmatpush.msrb.mxu2 %v2882_v31 }
 0xf92   :  { %3332 = vmatpush.msrb.mxu0 %v2814_v23 }
 0xf93   :  { %3312 = vmatpush.msrb.mxu3 %v2877_v22 }
 0xf95   :  { %3313 = vmatpush.msrb.mxu3 %v2873_v25 }
 0xf97   :  { %3314 = vmatpush.msrb.mxu3 %v2869_v33 }
 0xf99   :  { %3315 = vmatpush.msrb.mxu3 %v2865_v13 }
 0xf9b   :  { %3316 = vmatpush.msrb.mxu3 %v2861_v39 }
 0xfab   :  { %s3567_s25 = spop %3566 }
 0xfac   :  { %s2767_s14 = smul.f32 0.001953125, %s3567_s25 }
 0xfad   :  { %s3569_s3 = spop %3568 }
 0xfae   :  { %s2768_s1 = smul.f32 512.0, %s2767_s14 }
 0xfb0   :  { %s2769_s18 = smul.f32 %s2768_s1, %s2767_s14 }
 0xfb2   :  { %s2770_s20 = ssub.f32 %s3569_s3, %s2769_s18 }
 0xfb4   :  { %s2771_s24 = smul.f32 0.0019569471, %s2770_s20 }
 0xfb6   :  { %v4825_v11 = vstv %s2771_s24 }
 0xfb7   :  { %3665 = vrsqrt.f32 %v4825_v11  ;;  %vm2779_vm6 = vweird.f32 %v4825_v11 }
 0xfbd   :  { %v3666_v24 = vpop.eup %3665 }
 0xfbe   :  { %v2774_v29 = vmul.f32 %v3666_v24, %v4825_v11  ;;  %vm2780_vm5 = vweird.f32 %v3666_v24  ;;  %v2825_v11 = vld [vmem:[#allocation24 + $0x130] sm:$0xff] }
 0xfbf   :  { %vm2781_vm7 = vmor %vm2779_vm6, %vm2780_vm5  ;;  %3289 = vmatpush.msrb.mxu1 %v2825_v11 }
 0xfc0   :  { %v2775_v34 = vmul.f32 %v3666_v24, %v2774_v29  ;;  %v2810_v29 = vld [vmem:[#allocation24 + $0xb8] sm:$0xff] }
 0xfc1   :  { %3290 = vmatpush.msrb.mxu1 %v2821_v17  ;;  %3333 = vmatpush.msrb.mxu0 %v2810_v29 }
 0xfc2   :  { %v2776_v38 = vmul.f32 0.5, %v2775_v34  ;;  %v2870_v34 = vld [vmem:[#allocation24 + $0x298] sm:$0xff] }
 0xfc3   :  { %3291 = vmatpush.msrb.mxu1 %v2817_v37  ;;  %3334 = vmatpush.msrb.mxu0 %v2806_v49 }
 0xfc4   :  { %v2777_v44 = vsub.f32 1.5, %v2776_v38  ;;  %v2797_v38 = vld [vmem:[#allocation24 + $0x50] sm:$0xff] }
 0xfc5   :  { %3292 = vmatpush.msrb.mxu1 %v2813_v21  ;;  %3335 = vmatpush.msrb.mxu0 %v2802_v36 }
 0xfc6   :  { %v2778_v47 = vmul.f32 %v3666_v24, %v2777_v44  ;;  %v2857_v44 = vld [vmem:[#allocation24 + $0x230] sm:$0xff] }
 0xfc7   :  { %3293 = vmatpush.msrb.mxu1 %v2809_v27  ;;  %3336 = vmatpush.msrb.mxu0 %v2798_v40 }
 0xfc8   :  { %v2782_v53 = vsel %vm2781_vm7, %v3666_v24, %v2778_v47  ;;  %v2878_v24 = vld [vmem:[#allocation24 + $0x2d8] sm:$0xff]  ;;  %3317 = vmatpush.msrb.mxu3 %v2857_v44 }
 0xfc9   :  { %3570 = vpush %v2782_v53  ;;  %3352 = vmatpush.msrb.mxu2 %v2878_v24  ;;  %3294 = vmatpush.msrb.mxu1 %v2805_v26  ;;  %v2790_v47 = vld [vmem:[#allocation24 + $0x18] sm:$0xff]  ;;  %v3060_v53 = vpop.f32.mrf.mxu1 }
 0xfca   :  { %3337 = vmatpush.msrb.mxu0 %v2794_v32  ;;  %3318 = vmatpush.msrb.mxu3 %v2853_v6  ;;  %v3081_v16 = vadd.f32 %v3080_v55, %v3060_v53 }
 0xfcb   :  { %3353 = vmatpush.msrb.mxu2 %v2874_v42  ;;  %3295 = vmatpush.msrb.mxu1 %v2801_v35 }
 0xfcc   :  { %3338 = vmatpush.msrb.mxu0 %v2790_v47 }
 0xfcd   :  { %3354 = vmatpush.msrb.mxu2 %v2870_v34  ;;  %3296 = vmatpush.msrb.mxu1 %v2797_v38 }
 0xfcf   :  { %3355 = vmatpush.msrb.mxu2 %v2866_v28  ;;  %3297 = vmatpush.msrb.mxu1 %v2793_v43 }
 0xfd1   :  { %3356 = vmatpush.msrb.mxu2 %v2862_v41  ;;  %3298 = vmatpush.msrb.mxu1 %v2789_v46  ;;  %v3140_v57 = vpop.f32.mrf.mxu1 }
 0xfd2   :  { %v3161_v15 = vadd.f32 %v3160_v61, %v3140_v57 }
 0xfd3   :  { %3357 = vmatpush.msrb.mxu2 %v2858_v45 }
 0xfd5   :  { %3358 = vmatpush.msrb.mxu2 %v2854_v48 }
 0xffa   :  { %s3571_s7 = spop %3570 }
 0xffb   :  { %v2784_v50 = vstv %s3571_s7 }
 0xffc   :  { %v2785_v51 = vmul.f32 %v2784_v50, %v4811_v12  ;;  %v2786_v52 = vmul.f32 %v2784_v50, %v4813_v18  ;;  %v3363_v18 = vld [vmem:[%s4318_s5] sm:$0xf] }
 0xffd   :  { %v3365_v1 = vperm.slane %v3363_v18, 0  ;;  %v3366_v5 = vperm.slane %v3363_v18, 1  ;;  %v3367_v4 = vperm.slane %v3363_v18, 2  ;;  %v3368_v21 = vperm.slane %v3363_v18, 3 }
 0xffe   :  { %3219 = vmatmul.f32.vlgmr.msra.gmra.mxu1 %v2785_v51  ;;  %3239 = vmatmul.f32.vlgmr.msra.gmra.mxu3 %v2786_v52 }
 0xfff   :  { %3259 = vmatmul.f32.vlgmr.msra.gmra.mxu0 %v2785_v51  ;;  %3279 = vmatmul.f32.vlgmr.msra.gmra.mxu2 %v2786_v52 }
0x1006   :  { %3299 = vmatmul.f32.vlgmr.msrb.gmra.mxu1 %v2785_v51  ;;  %3319 = vmatmul.f32.vlgmr.msrb.gmra.mxu3 %v2786_v52 }
0x1007   :  { %3339 = vmatmul.f32.vlgmr.msrb.gmra.mxu0 %v2785_v51  ;;  %3359 = vmatmul.f32.vlgmr.msrb.gmra.mxu2 %v2786_v52 }
0x107b   :  { %v3220_v12 = vpop.f32.mrf.mxu1 }
0x107c   :  { %v3260_v14 = vpop.f32.mrf.mxu0  ;;  %v3221_v0 = vadd.f32 %v3220_v12, %v3081_v16 }
0x107d   :  { %v3261_v2 = vadd.f32 %v3260_v14, %v3121_v63 }
0x1081   :  { %v3240_v3 = vpop.f32.mrf.mxu3 }
0x1082   :  { %v3241_v8 = vadd.f32 %v3240_v3, %v3221_v0  ;;  %v3280_v9 = vpop.f32.mrf.mxu2 }
0x1083   :  { %v3281_v10 = vadd.f32 %v3280_v9, %v3261_v2  ;;  %v3300_v59 = vpop.f32.mrf.mxu1 }
0x1084   :  { %v4834_v11 = vadd.f32 %v3365_v1, %v3241_v8  ;;  %v3340_v17 = vpop.f32.mrf.mxu0  ;;  %v3301_v37 = vadd.f32 %v3300_v59, %v3161_v15 }
0x1085   :  { %v4836_v7 = vadd.f32 %v3366_v5, %v3281_v10  ;;  %v3341_v20 = vadd.f32 %v3340_v17, %v3201_v60 }
0x1086   :  { %v3393_v19 = vmul.f32 %v4834_v11, %v4834_v11  ;;  %v3377_v24 = vsel %vm850_vm0, %v4834_v11, 0.0 }
0x1087   :  { %v3394_v30 = vmul.f32 %v4836_v7, %v4836_v7  ;;  %v3378_v27 = vsel %vm850_vm0, %v4836_v7, 0.0 }
0x1088   :  { %v3397_v42 = vsel %vm850_vm0, %v3393_v19, 0.0  ;;  %v3379_v49 = vadd.f32 %v3378_v27, %v3377_v24 }
0x1089   :  { %v3320_v31 = vpop.f32.mrf.mxu3  ;;  %v3398_v26 = vsel %vm850_vm0, %v3394_v30, 0.0 }
0x108a   :  { %v3321_v22 = vadd.f32 %v3320_v31, %v3301_v37  ;;  %v3360_v23 = vpop.f32.mrf.mxu2  ;;  %v3399_v28 = vadd.f32 %v3398_v26, %v3397_v42 }
0x108b   :  { %v3361_v25 = vadd.f32 %v3360_v23, %v3341_v20 }
0x108c   :  { %v3375_v29 = vadd.f32 %v3367_v4, %v3321_v22 }
0x108d   :  { %v3376_v33 = vadd.f32 %v3368_v21, %v3361_v25 }
0x108e   :  { %v3380_v34 = vsel %vm850_vm0, %v3375_v29, 0.0  ;;  %v3395_v35 = vmul.f32 %v3375_v29, %v3375_v29 }
0x108f   :  { %v3381_v13 = vadd.f32 %v3380_v34, %v3379_v49  ;;  %v3396_v36 = vmul.f32 %v3376_v33, %v3376_v33  ;;  %v3382_v38 = vsel %vm850_vm0, %v3376_v33, 0.0 }
0x1090   :  { %v3400_v39 = vsel %vm850_vm0, %v3395_v35, 0.0 }
0x1091   :  { %v3383_v40 = vadd.f32 %v3382_v38, %v3381_v13  ;;  %v3401_v41 = vadd.f32 %v3400_v39, %v3399_v28  ;;  %v3402_v43 = vsel %vm850_vm0, %v3396_v36, 0.0 }
0x1093   :  { %3384 = vadd.xlane.f32.xlu1 %v3383_v40  ;;  %v3403_v44 = vadd.f32 %v3402_v43, %v3401_v41 }
0x1095   :  { %3404 = vadd.xlane.f32.xlu2 %v3403_v44 }
0x1106   :  { %v3385_v32 = vpop.xlane.xlu1 %3384 }
0x1107   :  { %v3386_v45 = vrot.slane %v3385_v32, 4 }
0x1108   :  { %v3405_v46 = vpop.xlane.xlu2 %3404 }
0x1109   :  { %v3387_v6 = vadd.f32 %v3386_v45, %v3385_v32  ;;  %v3406_v47 = vrot.slane %v3405_v46, 4 }
0x110b   :  { %v3388_v48 = vrot.slane %v3387_v6, 2  ;;  %v3407_v50 = vadd.f32 %v3406_v47, %v3405_v46 }
0x110d   :  { %v3389_v51 = vadd.f32 %v3388_v48, %v3387_v6  ;;  %v3408_v52 = vrot.slane %v3407_v50, 2 }
0x110f   :  { %v3409_v53 = vadd.f32 %v3408_v52, %v3407_v50  ;;  %v3390_v54 = vrot.slane %v3389_v51, 1 }
0x1111   :  { %v3391_v55 = vadd.f32 %v3390_v54, %v3389_v51  ;;  %v3410_v56 = vrot.slane %v3409_v53, 1 }
0x1113   :  { %3572 = vpush %v3391_v55  ;;  %v3411_v57 = vadd.f32 %v3410_v56, %v3409_v53 }
0x1115   :  { %3574 = vpush %v3411_v57 }
0x1144   :  { %s3573_s5 = spop %3572 }
0x1145   :  { %s3413_s0 = smul.f32 0.0009765625, %s3573_s5 }
0x1146   :  { %s3575_s26 = spop %3574 }
0x1147   :  { %s3414_s22 = smul.f32 1024.0, %s3413_s0 }
0x1149   :  { %s3415_s23 = smul.f32 %s3414_s22, %s3413_s0 }
0x114b   :  { %s3416_s28 = ssub.f32 %s3575_s26, %s3415_s23 }
0x114d   :  { %s3417_s19 = smul.f32 0.0009775171, %s3416_s28 }
0x114f   :  { %v3418_v58 = vstv %s3417_s19 }
0x1150   :  { %3667 = vrsqrt.f32 %v3418_v58  ;;  %vm3425_vm9 = vweird.f32 %v3418_v58 }
0x1156   :  { %v3668_v61 = vpop.eup %3667 }
0x1157   :  { %v3420_v62 = vmul.f32 %v3668_v61, %v3418_v58  ;;  %vm3426_vm8 = vweird.f32 %v3668_v61 }
0x1158   :  { %vm3427_vm10 = vmor %vm3425_vm9, %vm3426_vm8 }
0x1159   :  { %v3421_v12 = vmul.f32 %v3668_v61, %v3420_v62 }
0x115b   :  { %v3422_v14 = vmul.f32 0.5, %v3421_v12 }
0x115d   :  { %v3423_v18 = vsub.f32 1.5, %v3422_v14 }
0x115f   :  { %v3424_v16 = vmul.f32 %v3668_v61, %v3423_v18 }
0x1161   :  { %v3428_v63 = vsel %vm3427_vm10, %v3668_v61, %v3424_v16 }
0x1162   :  { %3576 = vpush %v3428_v63 }
0x1193   :  { %s3577_s29 = spop %3576 }
0x1194   :  { %s3430_s8 = smul.f32 0.5, %s3577_s29 }
0x1196   :  { %v3431_v0 = vstv %s3430_s8 }
0x1197   :  { %v3433_v1 = vmul.f32 %v3431_v0, %v4836_v7  ;;  %v3434_v2 = vmul.f32 %v3431_v0, %v3375_v29  ;;  %v3435_v3 = vmul.f32 %v3431_v0, %v3376_v33  ;;  %v3432_v5 = vmul.f32 %v3431_v0, %v4834_v11 }
0x1199   :  { %v3440_v8 = vrot.slane %v3433_v1, 6  ;;  %v3441_v9 = vrot.slane %v3434_v2, 4  ;;  %v3442_v10 = vrot.slane %v3435_v3, 2 }
0x119b   :  { %v3443_v59 = vsel %vm850_vm0, %v3432_v5, %v3440_v8  ;;  %v3445_v15 = vsel %vm3444_vm11, %v3441_v9, %v3442_v10 }
0x119c   :  { %v3447_v17 = vsel %vm3446_vm12, %v3443_v59, %v3445_v15 }
0x119d   :  { %3449 = vst [vmem:[%s4323_s17] sm:$0xff] %v3447_v17 }
0x119e   :  { %3454 = vsyncpa [#allocation3], 1 }
0x119f   :  { %3455 = vsyncpa [#allocation5], 1 }
0x11a0   :  { %3456 = vsyncpa [#allocation8], 1 }
0x11a1   :  { %3457 = vsyncpa [#allocation11], 1 }
0x11a2   :  { %3458 = vsyncpa [#allocation14], 1 }
0x11a3   :  { %3459 = vsyncpa [#allocation17], 1 }
0x11a4   :  { %3460 = vsyncpa [#allocation20], 1 }
0x11a5   :  { %3461 = vsyncpa [#allocation23], 1 }
0x11a6   :  { %3462 = vsyncpa [#allocation26], 1 }

</bundles_post_ra>
